<compile_context>
chip_gen: v7x
topology: tpu7x:2x2x1
jax: 0.10.0
libtpu: 0.0.40
codegen_flags: <defaults>
</compile_context>

<pallas_src>
import math

import jax
import jax.numpy as jnp
from jax.experimental import pallas as pl
from jax.experimental.pallas import tpu as pltpu


# ---------------------------- tiling policy ----------------------------------
_GN_CAP = 64                            # max linears per grid step (unroll cap)
_TB_CAP = 512                           # max batch rows per grid step
_VMEM_TILE_BUDGET = 24 * 1024 * 1024    # bytes for double-buffered blocks
_VMEM_LIMIT_BYTES = 48 * 1024 * 1024    # explicit scoped-VMEM request (< v7x 64 MiB)


def _block_vmem_bytes(tb, gn, i, o, itemsize):
    elems = tb * gn * i + gn * i * o + gn * o + tb * gn * o
    return 2 * elems * itemsize         # x2: Pallas double-buffers every block


def _select_tiles(b, n, i, o, itemsize, budget=_VMEM_TILE_BUDGET):
    """Pick (batch_tile, group_size); None if nothing fits the VMEM budget."""
    gn_cands = []
    if n <= _GN_CAP:
        gn_cands.append(n)              # full extent is always layout-legal
    g = (min(_GN_CAP, n) // 8) * 8
    while g >= 8:                       # multiples of 8 satisfy the (8,128) rule
        if n % g == 0 and g not in gn_cands:
            gn_cands.append(g)
        g -= 8
    tb_cands = [d for d in range(min(b, _TB_CAP), 0, -1) if b % d == 0]
    for gn in gn_cands:                 # biggest group first -> big weight DMAs
        for tb in tb_cands:             # then biggest batch tile that fits
            if _block_vmem_bytes(tb, gn, i, o, itemsize) <= budget:
                return tb, gn
    return None


# ------------------------------- kernel --------------------------------------
def _l_group_kernel(x_ref, w_ref, b_ref, o_ref):
    # x_ref: (tB, Gn, I)  w_ref: (Gn, I, O)  b_ref: (Gn, 1, O)  o_ref: (tB, Gn, O)
    gn = w_ref.shape[0]
    prec = jax.lax.Precision.HIGHEST if o_ref.dtype == jnp.float32 else None
    for g in range(gn):                 # short static unroll over the group
        acc = jnp.dot(x_ref[:, g, :], w_ref[g],
                      preferred_element_type=jnp.float32,
                      precision=prec)                      # (tB, O) on the MXU
        o_ref[:, g, :] = (acc + b_ref[g]).astype(o_ref.dtype)


# ------------------------------- wrapper --------------------------------------
def l_forward(x, weight, bias, *, batch_tile=None, group_size=None):
    """x: [B, N, I]; weight: [N, I, O]; bias: [N, O] -> [B, N, O]."""
    B, N, I = x.shape
    Nw, Iw, O = weight.shape
    assert (Nw, Iw) == (N, I) and bias.shape == (N, O)

    itemsize = jnp.dtype(x.dtype).itemsize
    if batch_tile is None or group_size is None:
        sel = _select_tiles(B, N, I, O, itemsize)
        if sel is None:
            # TODO(synk): add an I/O-tiled (reduction-axis) kernel variant; fall
            # back to XLA's batched matmul when a single linear's blocks cannot
            # fit the VMEM budget (or N has no layout-legal group size).
            out = jnp.einsum("bni,nio->bno", x, weight,
                             precision=jax.lax.Precision.HIGHEST)
            return (out + bias[None, :, :]).astype(x.dtype)
        tB, Gn = sel
    else:
        tB, Gn = batch_tile, group_size
    assert B % tB == 0 and N % Gn == 0 and (Gn % 8 == 0 or Gn == N), (tB, Gn)

    grid = (N // Gn, B // tB)           # batch innermost: weight block stays resident
    bias3 = bias.reshape(N, 1, O)

    cost = pl.CostEstimate(
        flops=2 * B * N * I * O,
        transcendentals=0,
        bytes_accessed=itemsize * (B * N * I + N * I * O + N * O + B * N * O))

    return pl.pallas_call(
        _l_group_kernel,
        out_shape=jax.ShapeDtypeStruct((B, N, O), x.dtype),
        grid_spec=pltpu.PrefetchScalarGridSpec(
            num_scalar_prefetch=0,
            grid=grid,
            in_specs=[
                pl.BlockSpec((tB, Gn, I), lambda ni, bi: (bi, ni, 0)),
                pl.BlockSpec((Gn, I, O), lambda ni, bi: (ni, 0, 0)),
                pl.BlockSpec((Gn, 1, O), lambda ni, bi: (ni, 0, 0)),
            ],
            out_specs=pl.BlockSpec((tB, Gn, O), lambda ni, bi: (bi, ni, 0)),
        ),
        compiler_params=pltpu.CompilerParams(
            dimension_semantics=("parallel", "parallel"),
            vmem_limit_bytes=_VMEM_LIMIT_BYTES),
        cost_estimate=cost,
    )(x, weight, bias3)


def init_params(key, num_linear, input_features, output_features, dtype=jnp.float32):
    # Matches nn.init.uniform_(-sqrt(1/in), +sqrt(1/in)) for weight and bias.
    bound = math.sqrt(1.0 / input_features)
    kw, kb = jax.random.split(key)
    weight = jax.random.uniform(
        kw, (num_linear, input_features, output_features),
        minval=-bound, maxval=bound, dtype=dtype)
    bias = jax.random.uniform(
        kb, (num_linear, output_features),
        minval=-bound, maxval=bound, dtype=dtype)
    return weight, bias


if __name__ == "__main__":
    batch = 16
    num_linear = 16
    input_features = 32
    output_features = 32

    key = jax.random.PRNGKey(0)
    kx, kp = jax.random.split(key)

    x = jax.random.normal(kx, (batch, num_linear, input_features), dtype=jnp.float32)
    weight, bias = init_params(kp, num_linear, input_features, output_features)

    # Pure-JAX reference of the PyTorch semantics.
    ref = jnp.einsum("bni,nio->bno", x, weight,
                     precision=jax.lax.Precision.HIGHEST) + bias[None, :, :]

    # 1) Auto-selected tiles (single grid step at these small shapes).
    out = jax.block_until_ready(l_forward(x, weight, bias))
    assert out.shape == (batch, num_linear, output_features)
    assert jnp.allclose(out, ref, atol=1e-5, rtol=1e-5), "mismatch vs reference"

    # 2) Forced small tiles to exercise a multi-step (2, 2) grid / index maps
    #    (weight block resident across the inner batch axis).
    out_tiled = jax.block_until_ready(
        l_forward(x, weight, bias, batch_tile=8, group_size=8))
    assert jnp.allclose(out_tiled, ref, atol=1e-5, rtol=1e-5), "tiled mismatch"

    print("KERNEL_OK")
</pallas_src>

<mosaic_0001>
module attributes {stable_mosaic.version = 11 : i64} {
  func.func @_l_group_kernel(%arg0: i32, %arg1: i32, %arg2: memref<16x16x32xf32, #tpu.memory_space<vmem>>, %arg3: memref<16x32x32xf32, #tpu.memory_space<vmem>>, %arg4: memref<16x1x32xf32, #tpu.memory_space<vmem>>, %arg5: memref<16x16x32xf32, #tpu.memory_space<vmem>>) attributes {dimension_semantics = [#tpu.dimension_semantics<parallel>, #tpu.dimension_semantics<parallel>], iteration_bounds = array<i64: 1, 1>, scalar_prefetch = 0 : i64, scratch_operands = 0 : i64, tpu.core_type = #tpu.core_type<tc>, window_params = [{transform_indices = @transform_0, window_bounds = array<i64: 16, 16, 32>}, {transform_indices = @transform_1, window_bounds = array<i64: 16, 32, 32>}, {transform_indices = @transform_2, window_bounds = array<i64: 16, 1, 32>}, {transform_indices = @transform_3, window_bounds = array<i64: 16, 16, 32>}]} {
    %c0 = arith.constant 0 : index
    %c0_0 = arith.constant 0 : index
    %c0_1 = arith.constant 0 : index
    %0 = vector.load %arg2[%c0, %c0_0, %c0_1] : memref<16x16x32xf32, #tpu.memory_space<vmem>>, vector<16x1x32xf32>
    %1 = vector.shape_cast %0 : vector<16x1x32xf32> to vector<16x32xf32>
    %c0_2 = arith.constant 0 : index
    %c0_3 = arith.constant 0 : index
    %c0_4 = arith.constant 0 : index
    %2 = vector.load %arg3[%c0_2, %c0_3, %c0_4] : memref<16x32x32xf32, #tpu.memory_space<vmem>>, vector<1x32x32xf32>
    %3 = vector.shape_cast %2 : vector<1x32x32xf32> to vector<32x32xf32>
    %cst = arith.constant dense<0.000000e+00> : vector<16x32xf32>
    %4 = tpu.matmul %1, %3, %cst {dimension_numbers = #tpu.dot_dimension_numbers<[1], [0], [0], [1], [0, 0, 1, 1], [], []>, precision = #tpu.contract_precision<fp32>} : vector<16x32xf32>, vector<32x32xf32>, vector<16x32xf32> -> vector<16x32xf32>
    %c0_5 = arith.constant 0 : index
    %c0_6 = arith.constant 0 : index
    %c0_7 = arith.constant 0 : index
    %5 = vector.load %arg4[%c0_5, %c0_6, %c0_7] : memref<16x1x32xf32, #tpu.memory_space<vmem>>, vector<1x1x32xf32>
    %6 = vector.shape_cast %5 : vector<1x1x32xf32> to vector<1x32xf32>
    %7 = vector.broadcast %6 : vector<1x32xf32> to vector<16x32xf32>
    %8 = arith.addf %4, %7 : vector<16x32xf32>
    %c0_8 = arith.constant 0 : index
    %c0_9 = arith.constant 0 : index
    %c0_10 = arith.constant 0 : index
    %9 = vector.load %arg5[%c0_8, %c0_9, %c0_10] : memref<16x16x32xf32, #tpu.memory_space<vmem>>, vector<16x1x32xf32>
    %10 = vector.shape_cast %9 : vector<16x1x32xf32> to vector<16x32xf32>
    %11 = vector.shape_cast %8 : vector<16x32xf32> to vector<16x1x32xf32>
    tpu.vector_store %arg5[%c0_8, %c0_9, %c0_10], %11 {strides = array<i32>} : memref<16x16x32xf32, #tpu.memory_space<vmem>>, vector<16x1x32xf32>,
    %c0_11 = arith.constant 0 : index
    %c1 = arith.constant 1 : index
    %c0_12 = arith.constant 0 : index
    %12 = vector.load %arg2[%c0_11, %c1, %c0_12] : memref<16x16x32xf32, #tpu.memory_space<vmem>>, vector<16x1x32xf32>
    %13 = vector.shape_cast %12 : vector<16x1x32xf32> to vector<16x32xf32>
    %c1_13 = arith.constant 1 : index
    %c0_14 = arith.constant 0 : index
    %c0_15 = arith.constant 0 : index
    %14 = vector.load %arg3[%c1_13, %c0_14, %c0_15] : memref<16x32x32xf32, #tpu.memory_space<vmem>>, vector<1x32x32xf32>
    %15 = vector.shape_cast %14 : vector<1x32x32xf32> to vector<32x32xf32>
    %cst_16 = arith.constant dense<0.000000e+00> : vector<16x32xf32>
    %16 = tpu.matmul %13, %15, %cst_16 {dimension_numbers = #tpu.dot_dimension_numbers<[1], [0], [0], [1], [0, 0, 1, 1], [], []>, precision = #tpu.contract_precision<fp32>} : vector<16x32xf32>, vector<32x32xf32>, vector<16x32xf32> -> vector<16x32xf32>
    %c1_17 = arith.constant 1 : index
    %c0_18 = arith.constant 0 : index
    %c0_19 = arith.constant 0 : index
    %17 = vector.load %arg4[%c1_17, %c0_18, %c0_19] : memref<16x1x32xf32, #tpu.memory_space<vmem>>, vector<1x1x32xf32>
    %18 = vector.shape_cast %17 : vector<1x1x32xf32> to vector<1x32xf32>
    %19 = vector.broadcast %18 : vector<1x32xf32> to vector<16x32xf32>
    %20 = arith.addf %16, %19 : vector<16x32xf32>
    %c0_20 = arith.constant 0 : index
    %c1_21 = arith.constant 1 : index
    %c0_22 = arith.constant 0 : index
    %21 = vector.load %arg5[%c0_20, %c1_21, %c0_22] : memref<16x16x32xf32, #tpu.memory_space<vmem>>, vector<16x1x32xf32>
    %22 = vector.shape_cast %21 : vector<16x1x32xf32> to vector<16x32xf32>
    %23 = vector.shape_cast %20 : vector<16x32xf32> to vector<16x1x32xf32>
    tpu.vector_store %arg5[%c0_20, %c1_21, %c0_22], %23 {strides = array<i32>} : memref<16x16x32xf32, #tpu.memory_space<vmem>>, vector<16x1x32xf32>,
    %c0_23 = arith.constant 0 : index
    %c2 = arith.constant 2 : index
    %c0_24 = arith.constant 0 : index
    %24 = vector.load %arg2[%c0_23, %c2, %c0_24] : memref<16x16x32xf32, #tpu.memory_space<vmem>>, vector<16x1x32xf32>
    %25 = vector.shape_cast %24 : vector<16x1x32xf32> to vector<16x32xf32>
    %c2_25 = arith.constant 2 : index
    %c0_26 = arith.constant 0 : index
    %c0_27 = arith.constant 0 : index
    %26 = vector.load %arg3[%c2_25, %c0_26, %c0_27] : memref<16x32x32xf32, #tpu.memory_space<vmem>>, vector<1x32x32xf32>
    %27 = vector.shape_cast %26 : vector<1x32x32xf32> to vector<32x32xf32>
    %cst_28 = arith.constant dense<0.000000e+00> : vector<16x32xf32>
    %28 = tpu.matmul %25, %27, %cst_28 {dimension_numbers = #tpu.dot_dimension_numbers<[1], [0], [0], [1], [0, 0, 1, 1], [], []>, precision = #tpu.contract_precision<fp32>} : vector<16x32xf32>, vector<32x32xf32>, vector<16x32xf32> -> vector<16x32xf32>
    %c2_29 = arith.constant 2 : index
    %c0_30 = arith.constant 0 : index
    %c0_31 = arith.constant 0 : index
    %29 = vector.load %arg4[%c2_29, %c0_30, %c0_31] : memref<16x1x32xf32, #tpu.memory_space<vmem>>, vector<1x1x32xf32>
    %30 = vector.shape_cast %29 : vector<1x1x32xf32> to vector<1x32xf32>
    %31 = vector.broadcast %30 : vector<1x32xf32> to vector<16x32xf32>
    %32 = arith.addf %28, %31 : vector<16x32xf32>
    %c0_32 = arith.constant 0 : index
    %c2_33 = arith.constant 2 : index
    %c0_34 = arith.constant 0 : index
    %33 = vector.load %arg5[%c0_32, %c2_33, %c0_34] : memref<16x16x32xf32, #tpu.memory_space<vmem>>, vector<16x1x32xf32>
    %34 = vector.shape_cast %33 : vector<16x1x32xf32> to vector<16x32xf32>
    %35 = vector.shape_cast %32 : vector<16x32xf32> to vector<16x1x32xf32>
    tpu.vector_store %arg5[%c0_32, %c2_33, %c0_34], %35 {strides = array<i32>} : memref<16x16x32xf32, #tpu.memory_space<vmem>>, vector<16x1x32xf32>,
    %c0_35 = arith.constant 0 : index
    %c3 = arith.constant 3 : index
    %c0_36 = arith.constant 0 : index
    %36 = vector.load %arg2[%c0_35, %c3, %c0_36] : memref<16x16x32xf32, #tpu.memory_space<vmem>>, vector<16x1x32xf32>
    %37 = vector.shape_cast %36 : vector<16x1x32xf32> to vector<16x32xf32>
    %c3_37 = arith.constant 3 : index
    %c0_38 = arith.constant 0 : index
    %c0_39 = arith.constant 0 : index
    %38 = vector.load %arg3[%c3_37, %c0_38, %c0_39] : memref<16x32x32xf32, #tpu.memory_space<vmem>>, vector<1x32x32xf32>
    %39 = vector.shape_cast %38 : vector<1x32x32xf32> to vector<32x32xf32>
    %cst_40 = arith.constant dense<0.000000e+00> : vector<16x32xf32>
    %40 = tpu.matmul %37, %39, %cst_40 {dimension_numbers = #tpu.dot_dimension_numbers<[1], [0], [0], [1], [0, 0, 1, 1], [], []>, precision = #tpu.contract_precision<fp32>} : vector<16x32xf32>, vector<32x32xf32>, vector<16x32xf32> -> vector<16x32xf32>
    %c3_41 = arith.constant 3 : index
    %c0_42 = arith.constant 0 : index
    %c0_43 = arith.constant 0 : index
    %41 = vector.load %arg4[%c3_41, %c0_42, %c0_43] : memref<16x1x32xf32, #tpu.memory_space<vmem>>, vector<1x1x32xf32>
    %42 = vector.shape_cast %41 : vector<1x1x32xf32> to vector<1x32xf32>
    %43 = vector.broadcast %42 : vector<1x32xf32> to vector<16x32xf32>
    %44 = arith.addf %40, %43 : vector<16x32xf32>
    %c0_44 = arith.constant 0 : index
    %c3_45 = arith.constant 3 : index
    %c0_46 = arith.constant 0 : index
    %45 = vector.load %arg5[%c0_44, %c3_45, %c0_46] : memref<16x16x32xf32, #tpu.memory_space<vmem>>, vector<16x1x32xf32>
    %46 = vector.shape_cast %45 : vector<16x1x32xf32> to vector<16x32xf32>
    %47 = vector.shape_cast %44 : vector<16x32xf32> to vector<16x1x32xf32>
    tpu.vector_store %arg5[%c0_44, %c3_45, %c0_46], %47 {strides = array<i32>} : memref<16x16x32xf32, #tpu.memory_space<vmem>>, vector<16x1x32xf32>,
    %c0_47 = arith.constant 0 : index
    %c4 = arith.constant 4 : index
    %c0_48 = arith.constant 0 : index
    %48 = vector.load %arg2[%c0_47, %c4, %c0_48] : memref<16x16x32xf32, #tpu.memory_space<vmem>>, vector<16x1x32xf32>
    %49 = vector.shape_cast %48 : vector<16x1x32xf32> to vector<16x32xf32>
    %c4_49 = arith.constant 4 : index
    %c0_50 = arith.constant 0 : index
    %c0_51 = arith.constant 0 : index
    %50 = vector.load %arg3[%c4_49, %c0_50, %c0_51] : memref<16x32x32xf32, #tpu.memory_space<vmem>>, vector<1x32x32xf32>
    %51 = vector.shape_cast %50 : vector<1x32x32xf32> to vector<32x32xf32>
    %cst_52 = arith.constant dense<0.000000e+00> : vector<16x32xf32>
    %52 = tpu.matmul %49, %51, %cst_52 {dimension_numbers = #tpu.dot_dimension_numbers<[1], [0], [0], [1], [0, 0, 1, 1], [], []>, precision = #tpu.contract_precision<fp32>} : vector<16x32xf32>, vector<32x32xf32>, vector<16x32xf32> -> vector<16x32xf32>
    %c4_53 = arith.constant 4 : index
    %c0_54 = arith.constant 0 : index
    %c0_55 = arith.constant 0 : index
    %53 = vector.load %arg4[%c4_53, %c0_54, %c0_55] : memref<16x1x32xf32, #tpu.memory_space<vmem>>, vector<1x1x32xf32>
    %54 = vector.shape_cast %53 : vector<1x1x32xf32> to vector<1x32xf32>
    %55 = vector.broadcast %54 : vector<1x32xf32> to vector<16x32xf32>
    %56 = arith.addf %52, %55 : vector<16x32xf32>
    %c0_56 = arith.constant 0 : index
    %c4_57 = arith.constant 4 : index
    %c0_58 = arith.constant 0 : index
    %57 = vector.load %arg5[%c0_56, %c4_57, %c0_58] : memref<16x16x32xf32, #tpu.memory_space<vmem>>, vector<16x1x32xf32>
    %58 = vector.shape_cast %57 : vector<16x1x32xf32> to vector<16x32xf32>
    %59 = vector.shape_cast %56 : vector<16x32xf32> to vector<16x1x32xf32>
    tpu.vector_store %arg5[%c0_56, %c4_57, %c0_58], %59 {strides = array<i32>} : memref<16x16x32xf32, #tpu.memory_space<vmem>>, vector<16x1x32xf32>,
    %c0_59 = arith.constant 0 : index
    %c5 = arith.constant 5 : index
    %c0_60 = arith.constant 0 : index
    %60 = vector.load %arg2[%c0_59, %c5, %c0_60] : memref<16x16x32xf32, #tpu.memory_space<vmem>>, vector<16x1x32xf32>
    %61 = vector.shape_cast %60 : vector<16x1x32xf32> to vector<16x32xf32>
    %c5_61 = arith.constant 5 : index
    %c0_62 = arith.constant 0 : index
    %c0_63 = arith.constant 0 : index
    %62 = vector.load %arg3[%c5_61, %c0_62, %c0_63] : memref<16x32x32xf32, #tpu.memory_space<vmem>>, vector<1x32x32xf32>
    %63 = vector.shape_cast %62 : vector<1x32x32xf32> to vector<32x32xf32>
    %cst_64 = arith.constant dense<0.000000e+00> : vector<16x32xf32>
    %64 = tpu.matmul %61, %63, %cst_64 {dimension_numbers = #tpu.dot_dimension_numbers<[1], [0], [0], [1], [0, 0, 1, 1], [], []>, precision = #tpu.contract_precision<fp32>} : vector<16x32xf32>, vector<32x32xf32>, vector<16x32xf32> -> vector<16x32xf32>
    %c5_65 = arith.constant 5 : index
    %c0_66 = arith.constant 0 : index
    %c0_67 = arith.constant 0 : index
    %65 = vector.load %arg4[%c5_65, %c0_66, %c0_67] : memref<16x1x32xf32, #tpu.memory_space<vmem>>, vector<1x1x32xf32>
    %66 = vector.shape_cast %65 : vector<1x1x32xf32> to vector<1x32xf32>
    %67 = vector.broadcast %66 : vector<1x32xf32> to vector<16x32xf32>
    %68 = arith.addf %64, %67 : vector<16x32xf32>
    %c0_68 = arith.constant 0 : index
    %c5_69 = arith.constant 5 : index
    %c0_70 = arith.constant 0 : index
    %69 = vector.load %arg5[%c0_68, %c5_69, %c0_70] : memref<16x16x32xf32, #tpu.memory_space<vmem>>, vector<16x1x32xf32>
    %70 = vector.shape_cast %69 : vector<16x1x32xf32> to vector<16x32xf32>
    %71 = vector.shape_cast %68 : vector<16x32xf32> to vector<16x1x32xf32>
    tpu.vector_store %arg5[%c0_68, %c5_69, %c0_70], %71 {strides = array<i32>} : memref<16x16x32xf32, #tpu.memory_space<vmem>>, vector<16x1x32xf32>,
    %c0_71 = arith.constant 0 : index
    %c6 = arith.constant 6 : index
    %c0_72 = arith.constant 0 : index
    %72 = vector.load %arg2[%c0_71, %c6, %c0_72] : memref<16x16x32xf32, #tpu.memory_space<vmem>>, vector<16x1x32xf32>
    %73 = vector.shape_cast %72 : vector<16x1x32xf32> to vector<16x32xf32>
    %c6_73 = arith.constant 6 : index
    %c0_74 = arith.constant 0 : index
    %c0_75 = arith.constant 0 : index
    %74 = vector.load %arg3[%c6_73, %c0_74, %c0_75] : memref<16x32x32xf32, #tpu.memory_space<vmem>>, vector<1x32x32xf32>
    %75 = vector.shape_cast %74 : vector<1x32x32xf32> to vector<32x32xf32>
    %cst_76 = arith.constant dense<0.000000e+00> : vector<16x32xf32>
    %76 = tpu.matmul %73, %75, %cst_76 {dimension_numbers = #tpu.dot_dimension_numbers<[1], [0], [0], [1], [0, 0, 1, 1], [], []>, precision = #tpu.contract_precision<fp32>} : vector<16x32xf32>, vector<32x32xf32>, vector<16x32xf32> -> vector<16x32xf32>
    %c6_77 = arith.constant 6 : index
    %c0_78 = arith.constant 0 : index
    %c0_79 = arith.constant 0 : index
    %77 = vector.load %arg4[%c6_77, %c0_78, %c0_79] : memref<16x1x32xf32, #tpu.memory_space<vmem>>, vector<1x1x32xf32>
    %78 = vector.shape_cast %77 : vector<1x1x32xf32> to vector<1x32xf32>
    %79 = vector.broadcast %78 : vector<1x32xf32> to vector<16x32xf32>
    %80 = arith.addf %76, %79 : vector<16x32xf32>
    %c0_80 = arith.constant 0 : index
    %c6_81 = arith.constant 6 : index
    %c0_82 = arith.constant 0 : index
    %81 = vector.load %arg5[%c0_80, %c6_81, %c0_82] : memref<16x16x32xf32, #tpu.memory_space<vmem>>, vector<16x1x32xf32>
    %82 = vector.shape_cast %81 : vector<16x1x32xf32> to vector<16x32xf32>
    %83 = vector.shape_cast %80 : vector<16x32xf32> to vector<16x1x32xf32>
    tpu.vector_store %arg5[%c0_80, %c6_81, %c0_82], %83 {strides = array<i32>} : memref<16x16x32xf32, #tpu.memory_space<vmem>>, vector<16x1x32xf32>,
    %c0_83 = arith.constant 0 : index
    %c7 = arith.constant 7 : index
    %c0_84 = arith.constant 0 : index
    %84 = vector.load %arg2[%c0_83, %c7, %c0_84] : memref<16x16x32xf32, #tpu.memory_space<vmem>>, vector<16x1x32xf32>
    %85 = vector.shape_cast %84 : vector<16x1x32xf32> to vector<16x32xf32>
    %c7_85 = arith.constant 7 : index
    %c0_86 = arith.constant 0 : index
    %c0_87 = arith.constant 0 : index
    %86 = vector.load %arg3[%c7_85, %c0_86, %c0_87] : memref<16x32x32xf32, #tpu.memory_space<vmem>>, vector<1x32x32xf32>
    %87 = vector.shape_cast %86 : vector<1x32x32xf32> to vector<32x32xf32>
    %cst_88 = arith.constant dense<0.000000e+00> : vector<16x32xf32>
    %88 = tpu.matmul %85, %87, %cst_88 {dimension_numbers = #tpu.dot_dimension_numbers<[1], [0], [0], [1], [0, 0, 1, 1], [], []>, precision = #tpu.contract_precision<fp32>} : vector<16x32xf32>, vector<32x32xf32>, vector<16x32xf32> -> vector<16x32xf32>
    %c7_89 = arith.constant 7 : index
    %c0_90 = arith.constant 0 : index
    %c0_91 = arith.constant 0 : index
    %89 = vector.load %arg4[%c7_89, %c0_90, %c0_91] : memref<16x1x32xf32, #tpu.memory_space<vmem>>, vector<1x1x32xf32>
    %90 = vector.shape_cast %89 : vector<1x1x32xf32> to vector<1x32xf32>
    %91 = vector.broadcast %90 : vector<1x32xf32> to vector<16x32xf32>
    %92 = arith.addf %88, %91 : vector<16x32xf32>
    %c0_92 = arith.constant 0 : index
    %c7_93 = arith.constant 7 : index
    %c0_94 = arith.constant 0 : index
    %93 = vector.load %arg5[%c0_92, %c7_93, %c0_94] : memref<16x16x32xf32, #tpu.memory_space<vmem>>, vector<16x1x32xf32>
    %94 = vector.shape_cast %93 : vector<16x1x32xf32> to vector<16x32xf32>
    %95 = vector.shape_cast %92 : vector<16x32xf32> to vector<16x1x32xf32>
    tpu.vector_store %arg5[%c0_92, %c7_93, %c0_94], %95 {strides = array<i32>} : memref<16x16x32xf32, #tpu.memory_space<vmem>>, vector<16x1x32xf32>,
    %c0_95 = arith.constant 0 : index
    %c8 = arith.constant 8 : index
    %c0_96 = arith.constant 0 : index
    %96 = vector.load %arg2[%c0_95, %c8, %c0_96] : memref<16x16x32xf32, #tpu.memory_space<vmem>>, vector<16x1x32xf32>
    %97 = vector.shape_cast %96 : vector<16x1x32xf32> to vector<16x32xf32>
    %c8_97 = arith.constant 8 : index
    %c0_98 = arith.constant 0 : index
    %c0_99 = arith.constant 0 : index
    %98 = vector.load %arg3[%c8_97, %c0_98, %c0_99] : memref<16x32x32xf32, #tpu.memory_space<vmem>>, vector<1x32x32xf32>
    %99 = vector.shape_cast %98 : vector<1x32x32xf32> to vector<32x32xf32>
    %cst_100 = arith.constant dense<0.000000e+00> : vector<16x32xf32>
    %100 = tpu.matmul %97, %99, %cst_100 {dimension_numbers = #tpu.dot_dimension_numbers<[1], [0], [0], [1], [0, 0, 1, 1], [], []>, precision = #tpu.contract_precision<fp32>} : vector<16x32xf32>, vector<32x32xf32>, vector<16x32xf32> -> vector<16x32xf32>
    %c8_101 = arith.constant 8 : index
    %c0_102 = arith.constant 0 : index
    %c0_103 = arith.constant 0 : index
    %101 = vector.load %arg4[%c8_101, %c0_102, %c0_103] : memref<16x1x32xf32, #tpu.memory_space<vmem>>, vector<1x1x32xf32>
    %102 = vector.shape_cast %101 : vector<1x1x32xf32> to vector<1x32xf32>
    %103 = vector.broadcast %102 : vector<1x32xf32> to vector<16x32xf32>
    %104 = arith.addf %100, %103 : vector<16x32xf32>
    %c0_104 = arith.constant 0 : index
    %c8_105 = arith.constant 8 : index
    %c0_106 = arith.constant 0 : index
    %105 = vector.load %arg5[%c0_104, %c8_105, %c0_106] : memref<16x16x32xf32, #tpu.memory_space<vmem>>, vector<16x1x32xf32>
    %106 = vector.shape_cast %105 : vector<16x1x32xf32> to vector<16x32xf32>
    %107 = vector.shape_cast %104 : vector<16x32xf32> to vector<16x1x32xf32>
    tpu.vector_store %arg5[%c0_104, %c8_105, %c0_106], %107 {strides = array<i32>} : memref<16x16x32xf32, #tpu.memory_space<vmem>>, vector<16x1x32xf32>,
    %c0_107 = arith.constant 0 : index
    %c9 = arith.constant 9 : index
    %c0_108 = arith.constant 0 : index
    %108 = vector.load %arg2[%c0_107, %c9, %c0_108] : memref<16x16x32xf32, #tpu.memory_space<vmem>>, vector<16x1x32xf32>
    %109 = vector.shape_cast %108 : vector<16x1x32xf32> to vector<16x32xf32>
    %c9_109 = arith.constant 9 : index
    %c0_110 = arith.constant 0 : index
    %c0_111 = arith.constant 0 : index
    %110 = vector.load %arg3[%c9_109, %c0_110, %c0_111] : memref<16x32x32xf32, #tpu.memory_space<vmem>>, vector<1x32x32xf32>
    %111 = vector.shape_cast %110 : vector<1x32x32xf32> to vector<32x32xf32>
    %cst_112 = arith.constant dense<0.000000e+00> : vector<16x32xf32>
    %112 = tpu.matmul %109, %111, %cst_112 {dimension_numbers = #tpu.dot_dimension_numbers<[1], [0], [0], [1], [0, 0, 1, 1], [], []>, precision = #tpu.contract_precision<fp32>} : vector<16x32xf32>, vector<32x32xf32>, vector<16x32xf32> -> vector<16x32xf32>
    %c9_113 = arith.constant 9 : index
    %c0_114 = arith.constant 0 : index
    %c0_115 = arith.constant 0 : index
    %113 = vector.load %arg4[%c9_113, %c0_114, %c0_115] : memref<16x1x32xf32, #tpu.memory_space<vmem>>, vector<1x1x32xf32>
    %114 = vector.shape_cast %113 : vector<1x1x32xf32> to vector<1x32xf32>
    %115 = vector.broadcast %114 : vector<1x32xf32> to vector<16x32xf32>
    %116 = arith.addf %112, %115 : vector<16x32xf32>
    %c0_116 = arith.constant 0 : index
    %c9_117 = arith.constant 9 : index
    %c0_118 = arith.constant 0 : index
    %117 = vector.load %arg5[%c0_116, %c9_117, %c0_118] : memref<16x16x32xf32, #tpu.memory_space<vmem>>, vector<16x1x32xf32>
    %118 = vector.shape_cast %117 : vector<16x1x32xf32> to vector<16x32xf32>
    %119 = vector.shape_cast %116 : vector<16x32xf32> to vector<16x1x32xf32>
    tpu.vector_store %arg5[%c0_116, %c9_117, %c0_118], %119 {strides = array<i32>} : memref<16x16x32xf32, #tpu.memory_space<vmem>>, vector<16x1x32xf32>,
    %c0_119 = arith.constant 0 : index
    %c10 = arith.constant 10 : index
    %c0_120 = arith.constant 0 : index
    %120 = vector.load %arg2[%c0_119, %c10, %c0_120] : memref<16x16x32xf32, #tpu.memory_space<vmem>>, vector<16x1x32xf32>
    %121 = vector.shape_cast %120 : vector<16x1x32xf32> to vector<16x32xf32>
    %c10_121 = arith.constant 10 : index
    %c0_122 = arith.constant 0 : index
    %c0_123 = arith.constant 0 : index
    %122 = vector.load %arg3[%c10_121, %c0_122, %c0_123] : memref<16x32x32xf32, #tpu.memory_space<vmem>>, vector<1x32x32xf32>
    %123 = vector.shape_cast %122 : vector<1x32x32xf32> to vector<32x32xf32>
    %cst_124 = arith.constant dense<0.000000e+00> : vector<16x32xf32>
    %124 = tpu.matmul %121, %123, %cst_124 {dimension_numbers = #tpu.dot_dimension_numbers<[1], [0], [0], [1], [0, 0, 1, 1], [], []>, precision = #tpu.contract_precision<fp32>} : vector<16x32xf32>, vector<32x32xf32>, vector<16x32xf32> -> vector<16x32xf32>
    %c10_125 = arith.constant 10 : index
    %c0_126 = arith.constant 0 : index
    %c0_127 = arith.constant 0 : index
    %125 = vector.load %arg4[%c10_125, %c0_126, %c0_127] : memref<16x1x32xf32, #tpu.memory_space<vmem>>, vector<1x1x32xf32>
    %126 = vector.shape_cast %125 : vector<1x1x32xf32> to vector<1x32xf32>
    %127 = vector.broadcast %126 : vector<1x32xf32> to vector<16x32xf32>
    %128 = arith.addf %124, %127 : vector<16x32xf32>
    %c0_128 = arith.constant 0 : index
    %c10_129 = arith.constant 10 : index
    %c0_130 = arith.constant 0 : index
    %129 = vector.load %arg5[%c0_128, %c10_129, %c0_130] : memref<16x16x32xf32, #tpu.memory_space<vmem>>, vector<16x1x32xf32>
    %130 = vector.shape_cast %129 : vector<16x1x32xf32> to vector<16x32xf32>
    %131 = vector.shape_cast %128 : vector<16x32xf32> to vector<16x1x32xf32>
    tpu.vector_store %arg5[%c0_128, %c10_129, %c0_130], %131 {strides = array<i32>} : memref<16x16x32xf32, #tpu.memory_space<vmem>>, vector<16x1x32xf32>,
    %c0_131 = arith.constant 0 : index
    %c11 = arith.constant 11 : index
    %c0_132 = arith.constant 0 : index
    %132 = vector.load %arg2[%c0_131, %c11, %c0_132] : memref<16x16x32xf32, #tpu.memory_space<vmem>>, vector<16x1x32xf32>
    %133 = vector.shape_cast %132 : vector<16x1x32xf32> to vector<16x32xf32>
    %c11_133 = arith.constant 11 : index
    %c0_134 = arith.constant 0 : index
    %c0_135 = arith.constant 0 : index
    %134 = vector.load %arg3[%c11_133, %c0_134, %c0_135] : memref<16x32x32xf32, #tpu.memory_space<vmem>>, vector<1x32x32xf32>
    %135 = vector.shape_cast %134 : vector<1x32x32xf32> to vector<32x32xf32>
    %cst_136 = arith.constant dense<0.000000e+00> : vector<16x32xf32>
    %136 = tpu.matmul %133, %135, %cst_136 {dimension_numbers = #tpu.dot_dimension_numbers<[1], [0], [0], [1], [0, 0, 1, 1], [], []>, precision = #tpu.contract_precision<fp32>} : vector<16x32xf32>, vector<32x32xf32>, vector<16x32xf32> -> vector<16x32xf32>
    %c11_137 = arith.constant 11 : index
    %c0_138 = arith.constant 0 : index
    %c0_139 = arith.constant 0 : index
    %137 = vector.load %arg4[%c11_137, %c0_138, %c0_139] : memref<16x1x32xf32, #tpu.memory_space<vmem>>, vector<1x1x32xf32>
    %138 = vector.shape_cast %137 : vector<1x1x32xf32> to vector<1x32xf32>
    %139 = vector.broadcast %138 : vector<1x32xf32> to vector<16x32xf32>
    %140 = arith.addf %136, %139 : vector<16x32xf32>
    %c0_140 = arith.constant 0 : index
    %c11_141 = arith.constant 11 : index
    %c0_142 = arith.constant 0 : index
    %141 = vector.load %arg5[%c0_140, %c11_141, %c0_142] : memref<16x16x32xf32, #tpu.memory_space<vmem>>, vector<16x1x32xf32>
    %142 = vector.shape_cast %141 : vector<16x1x32xf32> to vector<16x32xf32>
    %143 = vector.shape_cast %140 : vector<16x32xf32> to vector<16x1x32xf32>
    tpu.vector_store %arg5[%c0_140, %c11_141, %c0_142], %143 {strides = array<i32>} : memref<16x16x32xf32, #tpu.memory_space<vmem>>, vector<16x1x32xf32>,
    %c0_143 = arith.constant 0 : index
    %c12 = arith.constant 12 : index
    %c0_144 = arith.constant 0 : index
    %144 = vector.load %arg2[%c0_143, %c12, %c0_144] : memref<16x16x32xf32, #tpu.memory_space<vmem>>, vector<16x1x32xf32>
    %145 = vector.shape_cast %144 : vector<16x1x32xf32> to vector<16x32xf32>
    %c12_145 = arith.constant 12 : index
    %c0_146 = arith.constant 0 : index
    %c0_147 = arith.constant 0 : index
    %146 = vector.load %arg3[%c12_145, %c0_146, %c0_147] : memref<16x32x32xf32, #tpu.memory_space<vmem>>, vector<1x32x32xf32>
    %147 = vector.shape_cast %146 : vector<1x32x32xf32> to vector<32x32xf32>
    %cst_148 = arith.constant dense<0.000000e+00> : vector<16x32xf32>
    %148 = tpu.matmul %145, %147, %cst_148 {dimension_numbers = #tpu.dot_dimension_numbers<[1], [0], [0], [1], [0, 0, 1, 1], [], []>, precision = #tpu.contract_precision<fp32>} : vector<16x32xf32>, vector<32x32xf32>, vector<16x32xf32> -> vector<16x32xf32>
    %c12_149 = arith.constant 12 : index
    %c0_150 = arith.constant 0 : index
    %c0_151 = arith.constant 0 : index
    %149 = vector.load %arg4[%c12_149, %c0_150, %c0_151] : memref<16x1x32xf32, #tpu.memory_space<vmem>>, vector<1x1x32xf32>
    %150 = vector.shape_cast %149 : vector<1x1x32xf32> to vector<1x32xf32>
    %151 = vector.broadcast %150 : vector<1x32xf32> to vector<16x32xf32>
    %152 = arith.addf %148, %151 : vector<16x32xf32>
    %c0_152 = arith.constant 0 : index
    %c12_153 = arith.constant 12 : index
    %c0_154 = arith.constant 0 : index
    %153 = vector.load %arg5[%c0_152, %c12_153, %c0_154] : memref<16x16x32xf32, #tpu.memory_space<vmem>>, vector<16x1x32xf32>
    %154 = vector.shape_cast %153 : vector<16x1x32xf32> to vector<16x32xf32>
    %155 = vector.shape_cast %152 : vector<16x32xf32> to vector<16x1x32xf32>
    tpu.vector_store %arg5[%c0_152, %c12_153, %c0_154], %155 {strides = array<i32>} : memref<16x16x32xf32, #tpu.memory_space<vmem>>, vector<16x1x32xf32>,
    %c0_155 = arith.constant 0 : index
    %c13 = arith.constant 13 : index
    %c0_156 = arith.constant 0 : index
    %156 = vector.load %arg2[%c0_155, %c13, %c0_156] : memref<16x16x32xf32, #tpu.memory_space<vmem>>, vector<16x1x32xf32>
    %157 = vector.shape_cast %156 : vector<16x1x32xf32> to vector<16x32xf32>
    %c13_157 = arith.constant 13 : index
    %c0_158 = arith.constant 0 : index
    %c0_159 = arith.constant 0 : index
    %158 = vector.load %arg3[%c13_157, %c0_158, %c0_159] : memref<16x32x32xf32, #tpu.memory_space<vmem>>, vector<1x32x32xf32>
    %159 = vector.shape_cast %158 : vector<1x32x32xf32> to vector<32x32xf32>
    %cst_160 = arith.constant dense<0.000000e+00> : vector<16x32xf32>
    %160 = tpu.matmul %157, %159, %cst_160 {dimension_numbers = #tpu.dot_dimension_numbers<[1], [0], [0], [1], [0, 0, 1, 1], [], []>, precision = #tpu.contract_precision<fp32>} : vector<16x32xf32>, vector<32x32xf32>, vector<16x32xf32> -> vector<16x32xf32>
    %c13_161 = arith.constant 13 : index
    %c0_162 = arith.constant 0 : index
    %c0_163 = arith.constant 0 : index
    %161 = vector.load %arg4[%c13_161, %c0_162, %c0_163] : memref<16x1x32xf32, #tpu.memory_space<vmem>>, vector<1x1x32xf32>
    %162 = vector.shape_cast %161 : vector<1x1x32xf32> to vector<1x32xf32>
    %163 = vector.broadcast %162 : vector<1x32xf32> to vector<16x32xf32>
    %164 = arith.addf %160, %163 : vector<16x32xf32>
    %c0_164 = arith.constant 0 : index
    %c13_165 = arith.constant 13 : index
    %c0_166 = arith.constant 0 : index
    %165 = vector.load %arg5[%c0_164, %c13_165, %c0_166] : memref<16x16x32xf32, #tpu.memory_space<vmem>>, vector<16x1x32xf32>
    %166 = vector.shape_cast %165 : vector<16x1x32xf32> to vector<16x32xf32>
    %167 = vector.shape_cast %164 : vector<16x32xf32> to vector<16x1x32xf32>
    tpu.vector_store %arg5[%c0_164, %c13_165, %c0_166], %167 {strides = array<i32>} : memref<16x16x32xf32, #tpu.memory_space<vmem>>, vector<16x1x32xf32>,
    %c0_167 = arith.constant 0 : index
    %c14 = arith.constant 14 : index
    %c0_168 = arith.constant 0 : index
    %168 = vector.load %arg2[%c0_167, %c14, %c0_168] : memref<16x16x32xf32, #tpu.memory_space<vmem>>, vector<16x1x32xf32>
    %169 = vector.shape_cast %168 : vector<16x1x32xf32> to vector<16x32xf32>
    %c14_169 = arith.constant 14 : index
    %c0_170 = arith.constant 0 : index
    %c0_171 = arith.constant 0 : index
    %170 = vector.load %arg3[%c14_169, %c0_170, %c0_171] : memref<16x32x32xf32, #tpu.memory_space<vmem>>, vector<1x32x32xf32>
    %171 = vector.shape_cast %170 : vector<1x32x32xf32> to vector<32x32xf32>
    %cst_172 = arith.constant dense<0.000000e+00> : vector<16x32xf32>
    %172 = tpu.matmul %169, %171, %cst_172 {dimension_numbers = #tpu.dot_dimension_numbers<[1], [0], [0], [1], [0, 0, 1, 1], [], []>, precision = #tpu.contract_precision<fp32>} : vector<16x32xf32>, vector<32x32xf32>, vector<16x32xf32> -> vector<16x32xf32>
    %c14_173 = arith.constant 14 : index
    %c0_174 = arith.constant 0 : index
    %c0_175 = arith.constant 0 : index
    %173 = vector.load %arg4[%c14_173, %c0_174, %c0_175] : memref<16x1x32xf32, #tpu.memory_space<vmem>>, vector<1x1x32xf32>
    %174 = vector.shape_cast %173 : vector<1x1x32xf32> to vector<1x32xf32>
    %175 = vector.broadcast %174 : vector<1x32xf32> to vector<16x32xf32>
    %176 = arith.addf %172, %175 : vector<16x32xf32>
    %c0_176 = arith.constant 0 : index
    %c14_177 = arith.constant 14 : index
    %c0_178 = arith.constant 0 : index
    %177 = vector.load %arg5[%c0_176, %c14_177, %c0_178] : memref<16x16x32xf32, #tpu.memory_space<vmem>>, vector<16x1x32xf32>
    %178 = vector.shape_cast %177 : vector<16x1x32xf32> to vector<16x32xf32>
    %179 = vector.shape_cast %176 : vector<16x32xf32> to vector<16x1x32xf32>
    tpu.vector_store %arg5[%c0_176, %c14_177, %c0_178], %179 {strides = array<i32>} : memref<16x16x32xf32, #tpu.memory_space<vmem>>, vector<16x1x32xf32>,
    %c0_179 = arith.constant 0 : index
    %c15 = arith.constant 15 : index
    %c0_180 = arith.constant 0 : index
    %180 = vector.load %arg2[%c0_179, %c15, %c0_180] : memref<16x16x32xf32, #tpu.memory_space<vmem>>, vector<16x1x32xf32>
    %181 = vector.shape_cast %180 : vector<16x1x32xf32> to vector<16x32xf32>
    %c15_181 = arith.constant 15 : index
    %c0_182 = arith.constant 0 : index
    %c0_183 = arith.constant 0 : index
    %182 = vector.load %arg3[%c15_181, %c0_182, %c0_183] : memref<16x32x32xf32, #tpu.memory_space<vmem>>, vector<1x32x32xf32>
    %183 = vector.shape_cast %182 : vector<1x32x32xf32> to vector<32x32xf32>
    %cst_184 = arith.constant dense<0.000000e+00> : vector<16x32xf32>
    %184 = tpu.matmul %181, %183, %cst_184 {dimension_numbers = #tpu.dot_dimension_numbers<[1], [0], [0], [1], [0, 0, 1, 1], [], []>, precision = #tpu.contract_precision<fp32>} : vector<16x32xf32>, vector<32x32xf32>, vector<16x32xf32> -> vector<16x32xf32>
    %c15_185 = arith.constant 15 : index
    %c0_186 = arith.constant 0 : index
    %c0_187 = arith.constant 0 : index
    %185 = vector.load %arg4[%c15_185, %c0_186, %c0_187] : memref<16x1x32xf32, #tpu.memory_space<vmem>>, vector<1x1x32xf32>
    %186 = vector.shape_cast %185 : vector<1x1x32xf32> to vector<1x32xf32>
    %187 = vector.broadcast %186 : vector<1x32xf32> to vector<16x32xf32>
    %188 = arith.addf %184, %187 : vector<16x32xf32>
    %c0_188 = arith.constant 0 : index
    %c15_189 = arith.constant 15 : index
    %c0_190 = arith.constant 0 : index
    %189 = vector.load %arg5[%c0_188, %c15_189, %c0_190] : memref<16x16x32xf32, #tpu.memory_space<vmem>>, vector<16x1x32xf32>
    %190 = vector.shape_cast %189 : vector<16x1x32xf32> to vector<16x32xf32>
    %191 = vector.shape_cast %188 : vector<16x32xf32> to vector<16x1x32xf32>
    tpu.vector_store %arg5[%c0_188, %c15_189, %c0_190], %191 {strides = array<i32>} : memref<16x16x32xf32, #tpu.memory_space<vmem>>, vector<16x1x32xf32>,
    return
  }
  func.func @transform_0(%arg0: i32, %arg1: i32) -> (i32, i32, i32) {
    %c0_i32 = arith.constant 0 : i32
    %c0_i32_0 = arith.constant 0 : i32
    return %arg1, %arg0, %c0_i32 : i32, i32, i32
  }
  func.func @transform_1(%arg0: i32, %arg1: i32) -> (i32, i32, i32) {
    %c0_i32 = arith.constant 0 : i32
    %c0_i32_0 = arith.constant 0 : i32
    %c0_i32_1 = arith.constant 0 : i32
    return %arg0, %c0_i32, %c0_i32_0 : i32, i32, i32
  }
  func.func @transform_2(%arg0: i32, %arg1: i32) -> (i32, i32, i32) {
    %c0_i32 = arith.constant 0 : i32
    %c0_i32_0 = arith.constant 0 : i32
    %c0_i32_1 = arith.constant 0 : i32
    return %arg0, %c0_i32, %c0_i32_0 : i32, i32, i32
  }
  func.func @transform_3(%arg0: i32, %arg1: i32) -> (i32, i32, i32) {
    %c0_i32 = arith.constant 0 : i32
    %c0_i32_0 = arith.constant 0 : i32
    return %arg1, %arg0, %c0_i32 : i32, i32, i32
  }
}

</mosaic_0001>

<bundles_post_ra>
// kernel: tpu_custom_call.1
= control target key start
LH: loop header
LB: loop body
LE: loop exit
PB: predicated region body
PF: predicated region fallthrough
CT: control target
= control target key end

     0   :  { %8 = vsyncpa [#allocation3], 0  ;;  %s17062_s0 = inlined_call_operand.hbm [shape: f32[16,16,32], index: 0, kind: input, shape index: {}]   ;;  %s17063_s1 = inlined_call_operand.hbm [shape: f32[16,32,32], index: 1, kind: input, shape index: {}]   ;;  %s17064_s2 = inlined_call_operand.hbm [shape: f32[16,1,32], index: 2, kind: input, shape index: {}]   ;;  %s17065_s3 = inlined_call_operand.hbm [shape: f32[16,16,32], index: 3, kind: output, shape index: {}]  }
   0x1   :  { %9 = vsyncpa [#allocation6], 0 }
   0x2   :  { %10 = vsyncpa [#allocation4], 0  ;;  %s14584_s12 = smov [#allocation5]   ;;  %s14585_s14 = smov [#allocation2]  }
   0x3   :  { %s28_s13 = sshll.u32 %s14584_s12, 4  ;;  %s16_s15 = sshll.u32 %s14585_s14, 4  ;;  %s29_s13 = int_to_ptr.vmem [resolvable:$true] %s28_s13  ;;  %s14613_s15 = int_to_ptr.vmem [resolvable:$true] %s16_s15 }
   0x4   :  { %s14490_s18 = scalar_lea.hbm %s17063_s1, 8192 }
   0x5   :  { %p14491_p0 = scmp.ne.s32.totalorder %s17063_s1, %s14490_s18  ;;  %p14494_p1 = scmp.lt.u32.totalorder %s14490_s18, %s17063_s1 }
   0x7   :  { %p14496_p2 = pnand %p14494_p1, %p14491_p0 }
   0x9   :  { %14499 = shalt.err (!%p14496_p2)
}
   0xa   :  { %s14500_s23 = scalar_lea.vmem %s29_s13, 8192  ;;  %p14505_p4 = scmp.lt.s32.totalorder %s29_s13, %s29_s13 }
   0xb   :  { %p14501_p3 = scmp.ne.s32.totalorder %s29_s13, %s14500_s23  ;;  %p14506_p5 = scmp.lt.s32.totalorder %s14500_s23, %s14500_s23 }
   0xd   :  { %p14507_p6 = por %p14506_p5, %p14505_p4 }
   0xf   :  { %p14508_p7 = pnand %p14507_p6, %p14501_p3 }
  0x11   :  { %14511 = shalt.err (!%p14508_p7)
}
  0x12   :  { %s14586_s24 = smov 128   ;;  %s14587_s25 = smov 8  }
  0x13   :  { %34 = dma.hbm_to_vmem [thread:$0]  %s17063_s1, 8192, %s29_s13, [#allocation6], %s14586_s24, %s14586_s24, %s14587_s25  }
  0x14   :  { %s14512_s30 = scalar_lea.hbm %s17062_s0, 4096 }
  0x15   :  { %p14513_p8 = scmp.ne.s32.totalorder %s17062_s0, %s14512_s30  ;;  %p14516_p9 = scmp.lt.u32.totalorder %s14512_s30, %s17062_s0 }
  0x17   :  { %p14518_p10 = pnand %p14516_p9, %p14513_p8 }
  0x19   :  { %14521 = shalt.err (!%p14518_p10)
}
  0x1a   :  { %s14522_s8 = scalar_lea.vmem %s14613_s15, 4096  ;;  %p14527_p12 = scmp.lt.s32.totalorder %s14613_s15, %s14613_s15 }
  0x1b   :  { %p14523_p11 = scmp.ne.s32.totalorder %s14613_s15, %s14522_s8  ;;  %p14528_p13 = scmp.lt.s32.totalorder %s14522_s8, %s14522_s8 }
  0x1d   :  { %p14529_p0 = por %p14528_p13, %p14527_p12 }
  0x1f   :  { %p14530_p1 = pnand %p14529_p0, %p14523_p11 }
  0x21   :  { %14533 = shalt.err (!%p14530_p1)
}
  0x22   :  { %22 = dma.hbm_to_vmem [thread:$0]  %s17062_s0, 4096, %s14613_s15, [#allocation3], %s14586_s24, %s14586_s24, %s14587_s25  }
  0x23   :  { %s14588_s10 = smov [#allocation7]   ;;  %s14534_s14 = scalar_lea.hbm %s17064_s2, 256 }
  0x24   :  { %s40_s11 = sshll.u32 %s14588_s10, 4  ;;  %p14535_p2 = scmp.ne.s32.totalorder %s17064_s2, %s14534_s14  ;;  %s41_s11 = int_to_ptr.vmem [resolvable:$true] %s40_s11 }
  0x25   :  { %p14538_p3 = scmp.lt.u32.totalorder %s14534_s14, %s17064_s2 }
  0x27   :  { %p14540_p4 = pnand %p14538_p3, %p14535_p2 }
  0x29   :  { %14543 = shalt.err (!%p14540_p4)
}
  0x2a   :  { %s14544_s20 = scalar_lea.vmem %s41_s11, 256  ;;  %p14549_p6 = scmp.lt.s32.totalorder %s41_s11, %s41_s11 }
  0x2b   :  { %p14545_p5 = scmp.ne.s32.totalorder %s41_s11, %s14544_s20  ;;  %p14550_p7 = scmp.lt.s32.totalorder %s14544_s20, %s14544_s20 }
  0x2d   :  { %p14551_p8 = por %p14550_p7, %p14549_p6 }
  0x2f   :  { %p14552_p9 = pnand %p14551_p8, %p14545_p5 }
  0x31   :  { %14555 = shalt.err (!%p14552_p9)
}
  0x32   :  { %s14589_s0 = smov 16   ;;  %s14590_s15 = smov 1  }
  0x33   :  { %46 = dma.hbm_to_vmem [thread:$0]  %s17064_s2, 256, %s41_s11, [#allocation6], %s14589_s0, %s14589_s0, %s14590_s15  }
  0x34   :  { %14578 = dma.done.wait [#allocation3], 4096  }
  0x35   :  { %14579 = vsyncadd [#allocation3], 4294963200 }
  0x36   :  { %14580 = dma.done.wait [#allocation6], 8448  }
  0x37   :  { %14581 = vsyncadd [#allocation6], 4294958848  ;;  %vm100_vm0 = vcmask 1041409   ;;  %v72_v0 = vld [vmem:[#allocation5] sm:$0xff]  ;;  %v73_v1 = vld [vmem:[#allocation5 + $0x8] sm:$0xff]  ;;  %vm103_vm1 = vcmask 1042434  }
  0x38   :  { %v817_v2 = vld [vmem:[#allocation5 + $0x20] sm:$0xff]  ;;  %vm106_vm2 = vcmask 1043459   ;;  %vm109_vm3 = vcmask 1044484   ;;  %v140_v3 = vand.u32 4294901760, %v72_v0  ;;  %v143_v4 = vand.u32 4294901760, %v73_v1  ;;  %v818_v5 = vld [vmem:[#allocation5 + $0x28] sm:$0xff] }
  0x39   :  { %v878_v6 = vand.u32 4294901760, %v817_v2  ;;  %v74_v7 = vld [vmem:[#allocation5 + $0x10] sm:$0xff]  ;;  %v75_v8 = vld [vmem:[#allocation5 + $0x18] sm:$0xff]  ;;  %vm112_vm4 = vcmask 1045509   ;;  %v881_v9 = vand.u32 4294901760, %v818_v5  ;;  %vm115_vm5 = vcmask 1046534  }
  0x3a   :  { %v146_v10 = vand.u32 4294901760, %v74_v7  ;;  %v149_v11 = vand.u32 4294901760, %v75_v8  ;;  %v819_v12 = vld [vmem:[#allocation5 + $0x30] sm:$0xff]  ;;  %v820_v13 = vld [vmem:[#allocation5 + $0x38] sm:$0xff]  ;;  %v14662_v14 = vpack.c.bf16 %v143_v4, %v140_v3  ;;  %v56_v17 = vld [vmem:[#allocation2] sm:$0x1]  ;;  %v14664_v19 = vsub.f32 %v72_v0, %v140_v3 }
  0x3b   :  { %v884_v15 = vand.u32 4294901760, %v819_v12  ;;  %v887_v16 = vand.u32 4294901760, %v820_v13  ;;  %v57_v18 = vld [vmem:[#allocation2 + $0x10] sm:$0x1]  ;;  %vm118_vm6 = vcmask 1047559   ;;  %v14666_v20 = vpack.c.bf16 %v881_v9, %v878_v6  ;;  %s14592_s2 = smov [#allocation8]  }
  0x3c   :  { %v14668_v21 = vpack.c.bf16 %v149_v11, %v146_v10  ;;  %v58_v22 = vld [vmem:[#allocation2 + $0x20] sm:$0x1]  ;;  %v59_v23 = vld [vmem:[#allocation2 + $0x30] sm:$0x1]  ;;  %vm134_vm7 = vcmask 261120   ;;  %v14670_v25 = vsub.f32 %v73_v1, %v143_v4  ;;  %13522 = vmatprep.subr.bf16.mxu0 %v14662_v14  ;;  %v14675_v30 = vsub.f32 %v817_v2, %v878_v6  ;;  %s11860_s23 = sshll.u32 %s14592_s2, 4  ;;  %s11861_s23 = int_to_ptr.vmem [resolvable:$true] %s11860_s23 }
  0x3d   :  { %v60_v24 = vld [vmem:[#allocation2 + $0x40] sm:$0x1]  ;;  %v14673_v26 = vpack.c.bf16 %v887_v16, %v884_v15  ;;  %v61_v27 = vld [vmem:[#allocation2 + $0x50] sm:$0x1]  ;;  %v14677_v31 = vsub.f32 %v818_v5, %v881_v9  ;;  %v14679_v32 = vsub.f32 %v74_v7, %v146_v10  ;;  %13570 = vmatprep.subr.bf16.mxu1 %v14666_v20  ;;  %13524 = vmatpush3.bf16.msra.mxu0 %v14662_v14  ;;  %v99_v33 = vrot.slane %v57_v18, 7  ;;  %s14556_s26 = scalar_lea.vmem %s11861_s23, 4096  ;;  %p14561_p11 = scmp.lt.s32.totalorder %s11861_s23, %s11861_s23 }
  0x3e   :  { %v62_v28 = vld [vmem:[#allocation2 + $0x60] sm:$0x1]  ;;  %v63_v29 = vld [vmem:[#allocation2 + $0x70] sm:$0x1]  ;;  %v102_v34 = vrot.slane %v58_v22, 6  ;;  %v105_v35 = vrot.slane %v59_v23, 5  ;;  %13572 = vmatpush3.bf16.msra.mxu1 %v14666_v20  ;;  %13526 = vmatprep.subr.bf16.mxu0 %v14668_v21  ;;  %v14689_v48 = vsub.f32 %v75_v8, %v149_v11  ;;  %v14695_v53 = vsub.f32 %v819_v12, %v884_v15  ;;  %p14557_p10 = scmp.ne.s32.totalorder %s11861_s23, %s14556_s26  ;;  %p14562_p12 = scmp.lt.s32.totalorder %s14556_s26, %s14556_s26 }
  0x3f   :  { %v108_v36 = vrot.slane %v60_v24, 4  ;;  %v800_v37 = vld [vmem:[#allocation2 + $0x1] sm:$0x1]  ;;  %v111_v38 = vrot.slane %v61_v27, 3  ;;  %v114_v39 = vrot.slane %v62_v28, 2  ;;  %v117_v40 = vrot.slane %v63_v29, 1  ;;  %13574 = vmatprep.subr.bf16.mxu1 %v14673_v26 }
  0x40   :  { %v231_v41 = vand.u32 4294901760, %v14664_v19  ;;  %v801_v42 = vld [vmem:[#allocation2 + $0x11] sm:$0x1]  ;;  %v101_v43 = vsel %vm100_vm0, %v99_v33, %v56_v17  ;;  %v238_v44 = vand.u32 4294901760, %v14670_v25  ;;  %v802_v45 = vld [vmem:[#allocation2 + $0x21] sm:$0x1]  ;;  %v14697_v54 = vsub.f32 %v820_v13, %v887_v16  ;;  %p14563_p13 = por %p14562_p12, %p14561_p11 }
  0x41   :  { %v803_v46 = vld [vmem:[#allocation2 + $0x31] sm:$0x1]  ;;  %v845_v47 = vrot.slane %v801_v42, 7  ;;  %v104_v49 = vsel %vm103_vm1, %v102_v34, %v101_v43  ;;  %v804_v51 = vld [vmem:[#allocation2 + $0x41] sm:$0x1]  ;;  %13528 = vmatpush3.bf16.msra.mxu0 %v14668_v21  ;;  %v847_v60 = vrot.slane %v802_v45, 6 }
  0x42   :  { %v232_v50 = vsub.f32 %v14664_v19, %v231_v41  ;;  %v805_v52 = vld [vmem:[#allocation2 + $0x51] sm:$0x1]  ;;  %v107_v55 = vsel %vm106_vm2, %v105_v35, %v104_v49  ;;  %v239_v56 = vsub.f32 %v14670_v25, %v238_v44  ;;  %v806_v57 = vld [vmem:[#allocation2 + $0x61] sm:$0x1]  ;;  %13576 = vmatpush3.bf16.msra.mxu1 %v14673_v26  ;;  %v849_v63 = vrot.slane %v803_v46, 5  ;;  %p14564_p0 = pnand %p14563_p13, %p14557_p10 }
  0x43   :  { %v807_v58 = vld [vmem:[#allocation2 + $0x71] sm:$0x1]  ;;  %v846_v59 = vsel %vm100_vm0, %v845_v47, %v800_v37  ;;  %v110_v61 = vsel %vm109_vm3, %v108_v36, %v107_v55  ;;  %v851_v0 = vrot.slane %v804_v51, 4  ;;  %v853_v4 = vrot.slane %v805_v52, 3  ;;  %v65_v5 = vld [vmem:[#allocation2 + $0x90] sm:$0x1] }
  0x44   :  { %v233_v62 = vand.u32 4294901760, %v232_v50  ;;  %v113_v1 = vsel %vm112_vm4, %v111_v38, %v110_v61  ;;  %v240_v2 = vand.u32 4294901760, %v239_v56  ;;  %v848_v3 = vsel %vm103_vm1, %v847_v60, %v846_v59  ;;  %v66_v10 = vld [vmem:[#allocation2 + $0xa0] sm:$0x1]  ;;  %v67_v17 = vld [vmem:[#allocation2 + $0xb0] sm:$0x1] }
  0x45   :  { %v116_v6 = vsel %vm115_vm5, %v114_v39, %v113_v1  ;;  %v850_v7 = vsel %vm106_vm2, %v849_v63, %v848_v3  ;;  %v855_v8 = vrot.slane %v806_v57, 2  ;;  %v857_v9 = vrot.slane %v807_v58, 1  ;;  %v64_v16 = vld [vmem:[#allocation2 + $0x80] sm:$0x1]  ;;  %v69_v34 = vld [vmem:[#allocation2 + $0xd0] sm:$0x1] }
  0x46   :  { %v119_v11 = vsel %vm118_vm6, %v117_v40, %v116_v6  ;;  %v14712_v12 = vpack.c.bf16 %v240_v2, %v233_v62  ;;  %v852_v13 = vsel %vm109_vm3, %v851_v0, %v850_v7  ;;  %v969_v15 = vand.u32 4294901760, %v14675_v30  ;;  %v68_v33 = vld [vmem:[#allocation2 + $0xc0] sm:$0x1]  ;;  %v71_v39 = vld [vmem:[#allocation2 + $0xf0] sm:$0x1] }
  0x47   :  { %v135_v18 = vsel %vm134_vm7, %v119_v11, 0  ;;  %v854_v22 = vsel %vm112_vm4, %v853_v4, %v852_v13  ;;  %v976_v23 = vand.u32 4294901760, %v14677_v31  ;;  %v120_v24 = vrot.slane %v65_v5, 7  ;;  %v70_v38 = vld [vmem:[#allocation2 + $0xe0] sm:$0x1] }
  0x48   :  { %v14719_v27 = vand.u32 4294901760, %v135_v18  ;;  %13530 = vmatprep.subr.bf16.mxu0 %v14712_v12  ;;  %v856_v28 = vsel %vm115_vm5, %v855_v8, %v854_v22  ;;  %v970_v29 = vsub.f32 %v14675_v30, %v969_v15  ;;  %v122_v35 = vrot.slane %v66_v10, 6  ;;  %v808_v49 = vld [vmem:[#allocation2 + $0x81] sm:$0x1]  ;;  %v809_v50 = vld [vmem:[#allocation2 + $0x91] sm:$0x1] }
  0x49   :  { %v858_v36 = vsel %vm118_vm6, %v857_v9, %v856_v28  ;;  %v977_v37 = vsub.f32 %v14677_v31, %v976_v23  ;;  %v121_v40 = vsel %vm100_vm0, %v120_v24, %v64_v16  ;;  %v124_v42 = vrot.slane %v67_v17, 5  ;;  %v810_v51 = vld [vmem:[#allocation2 + $0xa1] sm:$0x1]  ;;  %v811_v58 = vld [vmem:[#allocation2 + $0xb1] sm:$0x1] }
  0x4a   :  { %v14732_v43 = vsub.f32 %v135_v18, %v14719_v27  ;;  %v873_v45 = vsel %vm134_vm7, %v858_v36, 0  ;;  %v971_v46 = vand.u32 4294901760, %v970_v29  ;;  %v123_v47 = vsel %vm103_vm1, %v122_v35, %v121_v40  ;;  %v812_v63 = vld [vmem:[#allocation2 + $0xc1] sm:$0x1]  ;;  %v813_v3 = vld [vmem:[#allocation2 + $0xd1] sm:$0x1] }
  0x4b   :  { %v14736_v52 = vand.u32 4294901760, %v873_v45  ;;  %v978_v55 = vand.u32 4294901760, %v977_v37  ;;  %v125_v56 = vsel %vm106_vm2, %v124_v42, %v123_v47  ;;  %v126_v57 = vrot.slane %v68_v33, 4  ;;  %v814_v7 = vld [vmem:[#allocation2 + $0xe1] sm:$0x1] }
  0x4c   :  { %v210_v59 = vand.u32 4294901760, %v14732_v43  ;;  %v128_v60 = vrot.slane %v69_v34, 3  ;;  %v130_v61 = vrot.slane %v70_v38, 2  ;;  %v132_v62 = vrot.slane %v71_v39, 1  ;;  %v815_v13 = vld [vmem:[#allocation2 + $0xf1] sm:$0x1] }
  0x4d   :  { %v14741_v0 = vsub.f32 %v873_v45, %v14736_v52  ;;  %v14743_v1 = vpack.c.bf16 %v978_v55, %v971_v46  ;;  %v127_v2 = vsel %vm109_vm3, %v126_v57, %v125_v56  ;;  %v859_v4 = vrot.slane %v809_v50, 7 }
  0x4e   :  { %v211_v5 = vsub.f32 %v14732_v43, %v210_v59  ;;  %v129_v6 = vsel %vm112_vm4, %v128_v60, %v127_v2  ;;  %v861_v8 = vrot.slane %v810_v51, 6  ;;  %v863_v9 = vrot.slane %v811_v58, 5 }
  0x4f   :  { %v948_v10 = vand.u32 4294901760, %v14741_v0  ;;  %13578 = vmatprep.subr.bf16.mxu1 %v14743_v1  ;;  %v131_v11 = vsel %vm115_vm5, %v130_v61, %v129_v6  ;;  %v860_v16 = vsel %vm100_vm0, %v859_v4, %v808_v49  ;;  %v865_v17 = vrot.slane %v812_v63, 4 }
  0x50   :  { %v212_v18 = vand.u32 4294901760, %v211_v5  ;;  %v133_v22 = vsel %vm118_vm6, %v132_v62, %v131_v11  ;;  %v862_v24 = vsel %vm103_vm1, %v861_v8, %v860_v16  ;;  %v867_v28 = vrot.slane %v813_v3, 3  ;;  %v1539_v8 = vld [vmem:[#allocation2 + $0x22] sm:$0x1]  ;;  %v1540_v16 = vld [vmem:[#allocation2 + $0x32] sm:$0x1] }
  0x51   :  { %v949_v29 = vsub.f32 %v14741_v0, %v948_v10  ;;  %v137_v33 = vsel %vm134_vm7, %v133_v22, 0  ;;  %v864_v34 = vsel %vm106_vm2, %v863_v9, %v862_v24  ;;  %v869_v35 = vrot.slane %v814_v7, 2  ;;  %v1538_v7 = vld [vmem:[#allocation2 + $0x12] sm:$0x1] }
  0x52   :  { %12473 = vmatprep.mubr.f32.mxu0 %v212_v18  ;;  %v14761_v36 = vand.u32 4294901760, %v137_v33  ;;  %v866_v37 = vsel %vm109_vm3, %v865_v17, %v864_v34  ;;  %v871_v38 = vrot.slane %v815_v13, 1  ;;  %v245_v39 = vand.u32 4294901760, %v14679_v32  ;;  %v1537_v17 = vld [vmem:[#allocation2 + $0x2] sm:$0x1] }
  0x53   :  { %v950_v40 = vand.u32 4294901760, %v949_v29  ;;  %v868_v42 = vsel %vm112_vm4, %v867_v28, %v866_v37  ;;  %v252_v45 = vand.u32 4294901760, %v14689_v48  ;;  %v983_v46 = vand.u32 4294901760, %v14695_v53  ;;  %v1541_v18 = vld [vmem:[#allocation2 + $0x42] sm:$0x1] }
  0x54   :  { %v14769_v47 = vsub.f32 %v137_v33, %v14761_v36  ;;  %v870_v49 = vsel %vm115_vm5, %v869_v35, %v868_v42  ;;  %v246_v50 = vsub.f32 %v14679_v32, %v245_v39  ;;  %v990_v51 = vand.u32 4294901760, %v14697_v54  ;;  %v1542_v24 = vld [vmem:[#allocation2 + $0x52] sm:$0x1]  ;;  %v2275_v29 = vld [vmem:[#allocation2 + $0x13] sm:$0x1] }
  0x55   :  { %12539 = vmatprep.mubr.f32.mxu1 %v950_v40  ;;  %v872_v55 = vsel %vm118_vm6, %v871_v38, %v870_v49  ;;  %v253_v56 = vsub.f32 %v14689_v48, %v252_v45  ;;  %v984_v63 = vsub.f32 %v14695_v53, %v983_v46  ;;  %v1582_v28 = vrot.slane %v1538_v7, 7  ;;  %v2276_v37 = vld [vmem:[#allocation2 + $0x23] sm:$0x1]  ;;  %v2277_v38 = vld [vmem:[#allocation2 + $0x33] sm:$0x1] }
  0x56   :  { %v220_v57 = vand.u32 4294901760, %v14769_v47  ;;  %v875_v58 = vsel %vm134_vm7, %v872_v55, 0  ;;  %v247_v60 = vand.u32 4294901760, %v246_v50  ;;  %v991_v2 = vsub.f32 %v14697_v54, %v990_v51  ;;  %v2274_v55 = vld [vmem:[#allocation2 + $0x3] sm:$0x1] }
  0x57   :  { %v14782_v61 = vand.u32 4294901760, %v875_v58  ;;  %v254_v62 = vand.u32 4294901760, %v253_v56  ;;  %v985_v11 = vand.u32 4294901760, %v984_v63  ;;  %v13537_v33 = vpack.c.bf16 %v14670_v25, %v14664_v19  ;;  %v2278_v56 = vld [vmem:[#allocation2 + $0x43] sm:$0x1] }
  0x58   :  { %v221_v3 = vsub.f32 %v14769_v47, %v220_v57  ;;  %v992_v13 = vand.u32 4294901760, %v991_v2  ;;  %v1584_v34 = vrot.slane %v1539_v8, 6  ;;  %v1586_v35 = vrot.slane %v1540_v16, 5  ;;  %v1547_v63 = vld [vmem:[#allocation2 + $0xa2] sm:$0x1] }
  0x59   :  { %v14794_v4 = vsub.f32 %v875_v58, %v14782_v61  ;;  %v13533_v6 = vpack.c.bf16 %v254_v62, %v247_v60  ;;  %v1583_v49 = vsel %vm100_vm0, %v1582_v28, %v1537_v17  ;;  %v1588_v50 = vrot.slane %v1541_v18, 4  ;;  %v1546_v62 = vld [vmem:[#allocation2 + $0x92] sm:$0x1]  ;;  %v1545_v17 = vld [vmem:[#allocation2 + $0x82] sm:$0x1] }
  0x5a   :  { %v222_v5 = vand.u32 4294901760, %v221_v3  ;;  %v13581_v42 = vpack.c.bf16 %v992_v13, %v985_v11  ;;  %v1585_v58 = vsel %vm103_vm1, %v1584_v34, %v1583_v49  ;;  %v2319_v60 = vrot.slane %v2275_v29, 7  ;;  %v1548_v8 = vld [vmem:[#allocation2 + $0xb2] sm:$0x1]  ;;  %v1549_v18 = vld [vmem:[#allocation2 + $0xc2] sm:$0x1] }
  0x5b   :  { %v958_v9 = vand.u32 4294901760, %v14794_v4  ;;  %v1587_v2 = vsel %vm106_vm2, %v1586_v35, %v1585_v58  ;;  %v1590_v3 = vrot.slane %v1542_v24, 3  ;;  %v2323_v7 = vrot.slane %v2277_v38, 5  ;;  %v1544_v29 = vld [vmem:[#allocation2 + $0x72] sm:$0x1] }
  0x5c   :  { %12474 = vmatmul.mubr.f32.vlgmr.msra.gmra.mrb[0].mxu0 %v222_v5  ;;  %v2321_v5 = vrot.slane %v2276_v37, 6  ;;  %v13541_v11 = vpack.c.bf16 %v14689_v48, %v14679_v32  ;;  %v1589_v13 = vsel %vm109_vm3, %v1588_v50, %v1587_v2  ;;  %v2320_v16 = vsel %vm100_vm0, %v2319_v60, %v2274_v55  ;;  %v1550_v49 = vld [vmem:[#allocation2 + $0xd2] sm:$0x1]  ;;  %v2283_v2 = vld [vmem:[#allocation2 + $0x93] sm:$0x1]  ;;  %v14878_v32 = vld [vmem:[#allocation5 + $0x58] sm:$0xff] }
  0x5d   :  { %13532 = vmatpush3.bf16.msra.mxu0 %v14712_v12  ;;  %v959_v22 = vsub.f32 %v14794_v4, %v958_v9  ;;  %12484 = vmatprep.mubr.f32.mxu0 %v14719_v27  ;;  %v1543_v12 = vld [vmem:[#allocation2 + $0x62] sm:$0x1]  ;;  %v1596_v28 = vrot.slane %v1546_v62, 7  ;;  %v1598_v37 = vrot.slane %v1547_v63, 6  ;;  %v1600_v38 = vrot.slane %v1548_v8, 5 }
  0x5e   :  { %13534 = vmatprep.subr.bf16.mxu0 %v13533_v6  ;;  %v2322_v24 = vsel %vm103_vm1, %v2321_v5, %v2320_v16  ;;  %v1592_v34 = vrot.slane %v1543_v12, 2  ;;  %v1602_v55 = vrot.slane %v1549_v18, 4  ;;  %v13589_v12 = vpack.c.bf16 %v14697_v54, %v14695_v53  ;;  %v1551_v5 = vld [vmem:[#allocation2 + $0xe2] sm:$0x1]  ;;  %v2281_v8 = vld [vmem:[#allocation2 + $0x73] sm:$0x1] }
  0x5f   :  { %v960_v40 = vand.u32 4294901760, %v959_v22  ;;  %v2279_v22 = vld [vmem:[#allocation2 + $0x53] sm:$0x1]  ;;  %v2324_v35 = vsel %vm106_vm2, %v2323_v7, %v2322_v24  ;;  %v1597_v50 = vsel %vm100_vm0, %v1596_v28, %v1545_v17  ;;  %v1594_v62 = vrot.slane %v1544_v29, 1  ;;  %v2282_v17 = vld [vmem:[#allocation2 + $0x83] sm:$0x1] }
  0x60   :  { %v2327_v58 = vrot.slane %v2279_v22, 3  ;;  %v1599_v60 = vsel %vm103_vm1, %v1598_v37, %v1597_v50  ;;  %v1604_v7 = vrot.slane %v1550_v49, 3  ;;  %v1552_v22 = vld [vmem:[#allocation2 + $0xf2] sm:$0x1]  ;;  %v2333_v24 = vrot.slane %v2283_v2, 7 }
  0x61   :  { %12540 = vmatmul.mubr.f32.vlgmr.msra.gmra.mrb[0].mxu1 %v960_v40  ;;  %13536 = vmatpush3.bf16.msra.mxu0 %v13533_v6  ;;  %v13585_v6 = vpack.c.bf16 %v14677_v31, %v14675_v30  ;;  %v1591_v40 = vsel %vm112_vm4, %v1590_v3, %v1589_v13  ;;  %v1601_v63 = vsel %vm106_vm2, %v1600_v38, %v1599_v60  ;;  %v1606_v28 = vrot.slane %v1551_v5, 2  ;;  %v2285_v29 = vld [vmem:[#allocation2 + $0xb3] sm:$0x1]  ;;  %v2288_v50 = vld [vmem:[#allocation2 + $0xe3] sm:$0x1] }
  0x62   :  { %13580 = vmatpush3.bf16.msra.mxu1 %v14743_v1  ;;  %13538 = vmatprep.subr.bf16.mxu0 %v13537_v33  ;;  %v2325_v1 = vrot.slane %v2278_v56, 4  ;;  %v2280_v56 = vld [vmem:[#allocation2 + $0x63] sm:$0x1]  ;;  %v1593_v3 = vsel %vm115_vm5, %v1592_v34, %v1591_v40  ;;  %v1603_v16 = vsel %vm109_vm3, %v1602_v55, %v1601_v63  ;;  %v2287_v37 = vld [vmem:[#allocation2 + $0xd3] sm:$0x1]  ;;  %v2334_v38 = vsel %vm100_vm0, %v2333_v24, %v2282_v17  ;;  %v2292_v17 = vld [vmem:[#allocation5 + $0x68] sm:$0xff] }
  0x63   :  { %13582 = vmatprep.subr.bf16.mxu1 %v13581_v42  ;;  %12550 = vmatprep.mubr.f32.mxu1 %v14736_v52  ;;  %v2329_v13 = vrot.slane %v2280_v56, 2  ;;  %v13553_v40 = vpack.c.bf16 %v238_v44, %v231_v41  ;;  %v14846_v56 = vld [vmem:[#allocation5 + $0x40] sm:$0xff]  ;;  %v2337_v60 = vrot.slane %v2285_v29, 5  ;;  %v2341_v41 = vrot.slane %v2287_v37, 3  ;;  %v14907_v29 = vld [vmem:[#allocation5 + $0x78] sm:$0xff] }
  0x64   :  { %12485 = vmatmul.mubr.f32.vlgmr.msra.gmra.mrb[0].mxu0 %v14761_v36  ;;  %v1615_v63 = vand.u32 4294901760, %v14846_v56  ;;  %v2355_v24 = vand.u32 4294901760, %v2292_v17  ;;  %vm783_vm8 = vcmask 253952  }
  0x65   :  { %13540 = vmatpush3.bf16.msra.mxu0 %v13537_v33  ;;  %12495 = vmatprep.mubr.f32.mxu0 %v14732_v43  ;;  %v2326_v33 = vsel %vm109_vm3, %v2325_v1, %v2324_v35  ;;  %v1595_v1 = vsel %vm118_vm6, %v1594_v62, %v1593_v3  ;;  %v2331_v35 = vrot.slane %v2281_v8, 1  ;;  %v2289_v62 = vld [vmem:[#allocation2 + $0xf3] sm:$0x1] }
  0x66   :  { %13584 = vmatpush3.bf16.msra.mxu1 %v13581_v42  ;;  %13542 = vmatprep.subr.bf16.mxu0 %v13541_v11  ;;  %v2284_v42 = vld [vmem:[#allocation2 + $0xa3] sm:$0x1]  ;;  %v2328_v18 = vsel %vm112_vm4, %v2327_v58, %v2326_v33  ;;  %v14848_v58 = vld [vmem:[#allocation5 + $0x48] sm:$0xff]  ;;  %v1610_v43 = vsel %vm134_vm7, %v1595_v1, 0  ;;  %v2343_v33 = vrot.slane %v2288_v50, 2 }
  0x67   :  { %13586 = vmatprep.subr.bf16.mxu1 %v13585_v6  ;;  %v2335_v34 = vrot.slane %v2284_v42, 6  ;;  %v2330_v49 = vsel %vm115_vm5, %v2329_v13, %v2328_v18  ;;  %v1618_v2 = vand.u32 4294901760, %v14848_v58  ;;  %v14859_v3 = vand.u32 4294901760, %v1610_v43 }
  0x68   :  { %v2332_v44 = vsel %vm118_vm6, %v2331_v35, %v2330_v49  ;;  %v13601_v13 = vpack.c.bf16 %v976_v23, %v969_v15  ;;  %v14890_v15 = vsub.f32 %v14846_v56, %v1615_v63  ;;  %v13605_v18 = vpack.c.bf16 %v990_v51, %v983_v46 }
  0x69   :  { %12551 = vmatmul.mubr.f32.vlgmr.msra.gmra.mrb[0].mxu1 %v14782_v61  ;;  %13544 = vmatpush3.bf16.msra.mxu0 %v13541_v11  ;;  %v2286_v11 = vld [vmem:[#allocation2 + $0xc3] sm:$0x1]  ;;  %v2336_v55 = vsel %vm103_vm1, %v2335_v34, %v2334_v38  ;;  %v2347_v48 = vsel %vm134_vm7, %v2332_v44, 0  ;;  %v14886_v30 = vsub.f32 %v1610_v43, %v14859_v3  ;;  %v14893_v23 = vsub.f32 %v14848_v58, %v1618_v2 }
  0x6a   :  { %13588 = vmatpush3.bf16.msra.mxu1 %v13585_v6  ;;  %13546 = vmatprep.subr.bf16.mxu0 %v14662_v14  ;;  %v1605_v6 = vsel %vm112_vm4, %v1604_v7, %v1603_v16  ;;  %v2339_v19 = vrot.slane %v2286_v11, 4  ;;  %v13557_v7 = vpack.c.bf16 %v252_v45, %v245_v39  ;;  %v14876_v16 = vld [vmem:[#allocation5 + $0x50] sm:$0xff]  ;;  %v2345_v39 = vrot.slane %v2289_v62, 1  ;;  %v2291_v45 = vld [vmem:[#allocation5 + $0x60] sm:$0xff] }
  0x6b   :  { %13590 = vmatprep.subr.bf16.mxu1 %v13589_v12  ;;  %12561 = vmatprep.mubr.f32.mxu1 %v14741_v0  ;;  %v1607_v25 = vsel %vm115_vm5, %v1606_v28, %v1605_v6  ;;  %v14905_v28 = vld [vmem:[#allocation5 + $0x70] sm:$0xff]  ;;  %v1685_v34 = vand.u32 4294901760, %v14886_v30  ;;  %v1706_v53 = vand.u32 4294901760, %v14890_v15  ;;  %v1713_v54 = vand.u32 4294901760, %v14893_v23 }
  0x6c   :  { %12496 = vmatmul.mubr.f32.vlgmr.msra.gmra.mrb[0].mxu0 %v14769_v47  ;;  %v1624_v47 = vand.u32 4294901760, %v14878_v32  ;;  %v2361_v6 = vand.u32 4294901760, %v14907_v29  ;;  %v14932_v38 = vsub.f32 %v2292_v17, %v2355_v24  ;;  %v14940_v49 = vpack.c.bf16 %v1618_v2, %v1615_v63 }
  0x6d   :  { %13548 = vmatpush3.bf16.msra.mxu0 %v14662_v14  ;;  %12506 = vmatprep.mubr.f32.mxu0 %v210_v59  ;;  %v1608_v59 = vrot.slane %v1552_v22, 1  ;;  %v2352_v22 = vand.u32 4294901760, %v2291_v45  ;;  %v1686_v50 = vsub.f32 %v14886_v30, %v1685_v34 }
  0x6e   :  { %13592 = vmatpush3.bf16.msra.mxu1 %v13589_v12  ;;  %13550 = vmatprep.subr.bf16.mxu0 %v14668_v21  ;;  %v2338_v12 = vsel %vm106_vm2, %v2337_v60, %v2336_v55  ;;  %v1707_v55 = vsub.f32 %v14890_v15, %v1706_v53  ;;  %v2450_v60 = vand.u32 4294901760, %v14932_v38 }
  0x6f   :  { %13594 = vmatprep.subr.bf16.mxu1 %v14666_v20  ;;  %v2340_v5 = vsel %vm109_vm3, %v2339_v19, %v2338_v12  ;;  %v1609_v42 = vsel %vm118_vm6, %v1608_v59, %v1607_v25  ;;  %v14930_v37 = vsub.f32 %v2291_v45, %v2352_v22  ;;  %v14964_v25 = vsub.f32 %v14907_v29, %v2361_v6 }
  0x70   :  { %v2342_v8 = vsel %vm112_vm4, %v2341_v41, %v2340_v5  ;;  %v1612_v31 = vsel %vm134_vm7, %v1609_v42, 0  ;;  %v14966_v41 = vpack.c.bf16 %v2355_v24, %v2352_v22  ;;  %v1687_v12 = vand.u32 4294901760, %v1686_v50  ;;  %v3012_v42 = vld [vmem:[#allocation2 + $0x14] sm:$0x1] }
  0x71   :  { %12562 = vmatmul.mubr.f32.vlgmr.msra.gmra.mrb[0].mxu1 %v14794_v4  ;;  %13552 = vmatpush3.bf16.msra.mxu0 %v14668_v21  ;;  %v2344_v0 = vsel %vm115_vm5, %v2343_v33, %v2342_v8  ;;  %v14909_v11 = vand.u32 4294901760, %v1612_v31  ;;  %v14925_v4 = vsub.f32 %v14878_v32, %v1624_v47  ;;  %v2443_v59 = vand.u32 4294901760, %v14930_v37 }
  0x72   :  { %13596 = vmatpush3.bf16.msra.mxu1 %v14666_v20  ;;  %13554 = vmatprep.subr.bf16.mxu0 %v13553_v40  ;;  %v2346_v1 = vsel %vm118_vm6, %v2345_v39, %v2344_v0  ;;  %v1708_v33 = vand.u32 4294901760, %v1707_v55  ;;  %v3013_v39 = vld [vmem:[#allocation2 + $0x24] sm:$0x1]  ;;  %v3056_v45 = vrot.slane %v3012_v42, 7 }
  0x73   :  { %13598 = vmatprep.subr.bf16.mxu1 %v14673_v26  ;;  %12572 = vmatprep.mubr.f32.mxu1 %v948_v10  ;;  %v1621_v10 = vand.u32 4294901760, %v14876_v16  ;;  %v2349_v51 = vsel %vm134_vm7, %v2346_v1, 0  ;;  %v1727_v43 = vand.u32 4294901760, %v14925_v4  ;;  %v3058_v29 = vrot.slane %v3013_v39, 6  ;;  %v3015_v55 = vld [vmem:[#allocation2 + $0x44] sm:$0x1] }
  0x74   :  { %12507 = vmatmul.mubr.f32.vlgmr.msra.gmra.mrb[0].mxu0 %v220_v57  ;;  %v14898_v57 = vand.u32 4294901760, %v2347_v48  ;;  %v14948_v56 = vand.u32 4294901760, %v2349_v51  ;;  %v3021_v42 = vld [vmem:[#allocation2 + $0xa4] sm:$0x1] }
  0x75   :  { %13556 = vmatpush3.bf16.msra.mxu0 %v13553_v40  ;;  %12517 = vmatprep.mubr.f32.mxu0 %v14719_v27  ;;  %v14922_v35 = vsub.f32 %v14876_v16, %v1621_v10  ;;  %v14936_v40 = vsub.f32 %v1612_v31, %v14909_v11  ;;  %v14971_v62 = vpack.c.bf16 %v1624_v47, %v1621_v10  ;;  %v3011_v10 = vld [vmem:[#allocation2 + $0x4] sm:$0x1] }
  0x76   :  { %13600 = vmatpush3.bf16.msra.mxu1 %v14673_v26  ;;  %13558 = vmatprep.subr.bf16.mxu0 %v13557_v7  ;;  %v14918_v46 = vsub.f32 %v2347_v48, %v14898_v57  ;;  %v14974_v63 = vsub.f32 %v2349_v51, %v14948_v56 }
  0x77   :  { %13602 = vmatprep.subr.bf16.mxu1 %v13601_v13  ;;  %v1695_v44 = vand.u32 4294901760, %v14936_v40 }
  0x78   :  { %v2422_v58 = vand.u32 4294901760, %v14918_v46  ;;  %v2432_v48 = vand.u32 4294901760, %v14974_v63 }
  0x79   :  { %12573 = vmatmul.mubr.f32.vlgmr.msra.gmra.mrb[0].mxu1 %v958_v9  ;;  %13560 = vmatpush3.bf16.msra.mxu0 %v13557_v7  ;;  %v2358_v9 = vand.u32 4294901760, %v14905_v28  ;;  %v1728_v7 = vsub.f32 %v14925_v4, %v1727_v43  ;;  %v1696_v16 = vsub.f32 %v14936_v40, %v1695_v44 }
  0x7a   :  { %13604 = vmatpush3.bf16.msra.mxu1 %v13601_v13  ;;  %13562 = vmatprep.subr.bf16.mxu0 %v14662_v14  ;;  %v2423_v2 = vsub.f32 %v14918_v46, %v2422_v58  ;;  %v2464_v13 = vand.u32 4294901760, %v14964_v25  ;;  %v2433_v51 = vsub.f32 %v14974_v63, %v2432_v48 }
  0x7b   :  { %13606 = vmatprep.subr.bf16.mxu1 %v13605_v18  ;;  %12583 = vmatprep.mubr.f32.mxu1 %v14736_v52  ;;  %v14961_v19 = vsub.f32 %v14905_v28, %v2358_v9  ;;  %v15002_v32 = vpack.c.bf16 %v2361_v6, %v2358_v9  ;;  %v1729_v31 = vand.u32 4294901760, %v1728_v7  ;;  %v1697_v1 = vand.u32 4294901760, %v1696_v16  ;;  %v3014_v28 = vld [vmem:[#allocation2 + $0x34] sm:$0x1]  ;;  %v3751_v16 = vld [vmem:[#allocation2 + $0x35] sm:$0x1] }
  0x7c   :  { %12518 = vmatmul.mubr.f32.vlgmr.msra.gmra.mrb[0].mxu0 %v14761_v36  ;;  %v2424_v17 = vand.u32 4294901760, %v2423_v2  ;;  %v2465_v24 = vsub.f32 %v14964_v25, %v2464_v13  ;;  %v3057_v9 = vsel %vm100_vm0, %v3056_v45, %v3011_v10  ;;  %v3020_v6 = vld [vmem:[#allocation2 + $0x94] sm:$0x1]  ;;  %v3019_v45 = vld [vmem:[#allocation2 + $0x84] sm:$0x1] }
  0x7d   :  { %13564 = vmatpush3.bf16.msra.mxu0 %v14662_v14  ;;  %12528 = vmatprep.mubr.f32.mxu0 %v14719_v27  ;;  %v1714_v14 = vsub.f32 %v14893_v23, %v1713_v54  ;;  %v1720_v27 = vand.u32 4294901760, %v14922_v35  ;;  %v2457_v8 = vand.u32 4294901760, %v14961_v19  ;;  %v3059_v7 = vsel %vm103_vm1, %v3058_v29, %v3057_v9  ;;  %v3757_v10 = vld [vmem:[#allocation2 + $0x95] sm:$0x1]  ;;  %v3017_v29 = vld [vmem:[#allocation2 + $0x64] sm:$0x1] }
  0x7e   :  { %13608 = vmatpush3.bf16.msra.mxu1 %v13605_v18  ;;  %13566 = vmatprep.subr.bf16.mxu0 %v14668_v21  ;;  %v2466_v2 = vand.u32 4294901760, %v2465_v24  ;;  %v3072_v24 = vrot.slane %v3021_v42, 6 }
  0x7f   :  { %13610 = vmatprep.subr.bf16.mxu1 %v14666_v20  ;;  %v1715_v5 = vand.u32 4294901760, %v1714_v14  ;;  %v2458_v22 = vsub.f32 %v14961_v19, %v2457_v8  ;;  %v3750_v14 = vld [vmem:[#allocation2 + $0x25] sm:$0x1] }
  0x80   :  { %v3795_v39 = vrot.slane %v3750_v14, 6  ;;  %v13637_v14 = vpack.c.bf16 %v14925_v4, %v14922_v35  ;;  %v3765_v4 = vld [vmem:[#allocation5 + $0xa0] sm:$0xff] }
  0x81   :  { %12584 = vmatmul.mubr.f32.vlgmr.msra.gmra.mrb[0].mxu1 %v14782_v61  ;;  %13568 = vmatpush3.bf16.msra.mxu0 %v14668_v21  ;;  %v1721_v21 = vsub.f32 %v14922_v35, %v1720_v27  ;;  %v13625_v0 = vpack.c.bf16 %v1715_v5, %v1708_v33  ;;  %v2459_v33 = vand.u32 4294901760, %v2458_v22  ;;  %v3060_v5 = vrot.slane %v3014_v28, 5  ;;  %v3022_v22 = vld [vmem:[#allocation2 + $0xb4] sm:$0x1] }
  0x82   :  { %13612 = vmatpush3.bf16.msra.mxu1 %v14666_v20  ;;  %12594 = vmatprep.mubr.f32.mxu1 %v14736_v52  ;;  %v2444_v20 = vsub.f32 %v14930_v37, %v2443_v59  ;;  %v2451_v52 = vsub.f32 %v14932_v38, %v2450_v60 }
  0x83   :  { %13614 = vmatprep.subr.bf16.mxu1 %v14673_v26  ;;  %13618 = vmatprep.subr.bf16.mxu0 %v14940_v49 }
  0x84   :  { %12529 = vmatmul.mubr.f32.vlgmr.msra.gmra.mrb[0].mxu0 %v14761_v36  ;;  %v1722_v36 = vand.u32 4294901760, %v1721_v21  ;;  %v2445_v47 = vand.u32 4294901760, %v2444_v20  ;;  %v2452_v18 = vand.u32 4294901760, %v2451_v52  ;;  %v3748_v21 = vld [vmem:[#allocation2 + $0x5] sm:$0x1]  ;;  %v3070_v20 = vrot.slane %v3020_v6, 7 }
  0x85   :  { %13620 = vmatpush3.bf16.msra.mxu0 %v14940_v49  ;;  %12605 = vmatprep.mubr.f32.mxu0 %v1687_v12  ;;  %v2434_v52 = vand.u32 4294901760, %v2433_v51  ;;  %v3758_v6 = vld [vmem:[#allocation2 + $0xa5] sm:$0x1] }
  0x86   :  { %13616 = vmatpush3.bf16.msra.mxu1 %v14673_v26  ;;  %13622 = vmatprep.subr.bf16.mxu0 %v14971_v62  ;;  %v3749_v26 = vld [vmem:[#allocation2 + $0x15] sm:$0x1]  ;;  %v13629_v50 = vpack.c.bf16 %v1729_v31, %v1722_v36  ;;  %v3062_v36 = vrot.slane %v3015_v55, 4  ;;  %v3071_v28 = vsel %vm100_vm0, %v3070_v20, %v3019_v45  ;;  %v3807_v55 = vrot.slane %v3757_v10, 7  ;;  %v3754_v10 = vld [vmem:[#allocation2 + $0x65] sm:$0x1] }
  0x87   :  { %13666 = vmatprep.subr.bf16.mxu1 %v14966_v41  ;;  %v3793_v12 = vrot.slane %v3749_v26, 7  ;;  %v3752_v26 = vld [vmem:[#allocation2 + $0x45] sm:$0x1]  ;;  %v3073_v42 = vsel %vm103_vm1, %v3072_v24, %v3071_v28  ;;  %v3066_v20 = vrot.slane %v3017_v29, 2  ;;  %v13685_v24 = vpack.c.bf16 %v14964_v25, %v14961_v19 }
  0x89   :  { %12595 = vmatmul.mubr.f32.vlgmr.msra.gmra.mrb[0].mxu1 %v14782_v61  ;;  %13624 = vmatpush3.bf16.msra.mxu0 %v14971_v62  ;;  %v13673_v61 = vpack.c.bf16 %v2452_v18, %v2445_v47  ;;  %v3794_v31 = vsel %vm100_vm0, %v3793_v12, %v3748_v21  ;;  %v13677_v47 = vpack.c.bf16 %v2466_v2, %v2459_v33  ;;  %v3023_v33 = vld [vmem:[#allocation2 + $0xc4] sm:$0x1]  ;;  %v3074_v2 = vrot.slane %v3022_v22, 5  ;;  %v3753_v21 = vld [vmem:[#allocation2 + $0x55] sm:$0x1] }
  0x8a   :  { %13668 = vmatpush3.bf16.msra.mxu1 %v14966_v41  ;;  %12671 = vmatprep.mubr.f32.mxu1 %v2424_v17  ;;  %v3016_v17 = vld [vmem:[#allocation2 + $0x54] sm:$0x1]  ;;  %v13633_v18 = vpack.c.bf16 %v14893_v23, %v14890_v15  ;;  %v3796_v9 = vsel %vm103_vm1, %v3795_v39, %v3794_v31  ;;  %v3809_v39 = vrot.slane %v3758_v6, 6  ;;  %v3755_v6 = vld [vmem:[#allocation2 + $0x75] sm:$0x1]  ;;  %v13653_v23 = vpack.c.bf16 %v1727_v43, %v1720_v27 }
  0x8b   :  { %13670 = vmatprep.subr.bf16.mxu1 %v15002_v32  ;;  %13626 = vmatprep.subr.bf16.mxu0 %v13625_v0  ;;  %v3064_v51 = vrot.slane %v3016_v17, 3  ;;  %v3024_v17 = vld [vmem:[#allocation2 + $0xd4] sm:$0x1]  ;;  %v3075_v22 = vsel %vm106_vm2, %v3074_v2, %v3073_v42  ;;  %v3761_v2 = vld [vmem:[#allocation2 + $0xd5] sm:$0x1] }
  0x8c   :  { %12606 = vmatmul.mubr.f32.vlgmr.msra.gmra.mrb[2].mxu0 %v1697_v1  ;;  %v3797_v1 = vrot.slane %v3751_v16, 5  ;;  %v3759_v16 = vld [vmem:[#allocation2 + $0xb5] sm:$0x1] }
  0x8d   :  { %13628 = vmatpush3.bf16.msra.mxu0 %v13625_v0  ;;  %12616 = vmatprep.mubr.f32.mxu0 %v14859_v3  ;;  %v3061_v0 = vsel %vm106_vm2, %v3060_v5, %v3059_v7  ;;  %v3756_v5 = vld [vmem:[#allocation2 + $0x85] sm:$0x1]  ;;  %v3799_v7 = vrot.slane %v3752_v26, 4  ;;  %v3811_v28 = vrot.slane %v3759_v16, 5  ;;  %v3815_v16 = vrot.slane %v3761_v2, 3 }
  0x8e   :  { %13672 = vmatpush3.bf16.msra.mxu1 %v15002_v32  ;;  %13630 = vmatprep.subr.bf16.mxu0 %v13629_v50  ;;  %v3063_v12 = vsel %vm109_vm3, %v3062_v36, %v3061_v0  ;;  %v3076_v36 = vrot.slane %v3023_v33, 4  ;;  %v3808_v31 = vsel %vm100_vm0, %v3807_v55, %v3756_v5  ;;  %v3801_v0 = vrot.slane %v3753_v21, 3 }
  0x8f   :  { %13674 = vmatprep.subr.bf16.mxu1 %v13673_v61  ;;  %v3065_v45 = vsel %vm112_vm4, %v3064_v51, %v3063_v12  ;;  %v3025_v51 = vld [vmem:[#allocation2 + $0xe4] sm:$0x1]  ;;  %v3803_v55 = vrot.slane %v3754_v10, 2 }
  0x90   :  { %v3067_v29 = vsel %vm115_vm5, %v3066_v20, %v3065_v45  ;;  %v3077_v12 = vsel %vm109_vm3, %v3076_v36, %v3075_v22  ;;  %v3080_v42 = vrot.slane %v3025_v51, 2  ;;  %v15065_v45 = vld [vmem:[#allocation5 + $0x88] sm:$0xff]  ;;  %v3826_v51 = vand.u32 4294901760, %v3765_v4 }
  0x91   :  { %12672 = vmatmul.mubr.f32.vlgmr.msra.gmra.mrb[2].mxu1 %v2434_v52  ;;  %13632 = vmatpush3.bf16.msra.mxu0 %v13629_v50  ;;  %v13681_v50 = vpack.c.bf16 %v14932_v38, %v14930_v37  ;;  %v3798_v52 = vsel %vm106_vm2, %v3797_v1, %v3796_v9  ;;  %v3760_v1 = vld [vmem:[#allocation2 + $0xc5] sm:$0x1]  ;;  %v3078_v9 = vrot.slane %v3024_v17, 3 }
  0x92   :  { %13676 = vmatpush3.bf16.msra.mxu1 %v13673_v61  ;;  %12682 = vmatprep.mubr.f32.mxu1 %v14898_v57  ;;  %v3018_v61 = vld [vmem:[#allocation2 + $0x74] sm:$0x1]  ;;  %v3813_v5 = vrot.slane %v3760_v1, 4 }
  0x93   :  { %13678 = vmatprep.subr.bf16.mxu1 %v13677_v47  ;;  %13634 = vmatprep.subr.bf16.mxu0 %v13633_v18  ;;  %v3068_v26 = vrot.slane %v3018_v61, 1  ;;  %v3805_v61 = vrot.slane %v3755_v6, 1  ;;  %v15096_v1 = vld [vmem:[#allocation5 + $0x90] sm:$0xff] }
  0x94   :  { %12617 = vmatmul.mubr.f32.vlgmr.msra.gmra.mrb[2].mxu0 %v14909_v11  ;;  %v15125_v6 = vld [vmem:[#allocation5 + $0xb0] sm:$0xff] }
  0x95   :  { %13636 = vmatpush3.bf16.msra.mxu0 %v13633_v18  ;;  %12627 = vmatprep.mubr.f32.mxu0 %v14886_v30  ;;  %v3800_v18 = vsel %vm109_vm3, %v3799_v7, %v3798_v52  ;;  %v3069_v21 = vsel %vm118_vm6, %v3068_v26, %v3067_v29  ;;  %v3026_v7 = vld [vmem:[#allocation2 + $0xf4] sm:$0x1]  ;;  %v3762_v52 = vld [vmem:[#allocation2 + $0xe5] sm:$0x1]  ;;  %v13649_v30 = vpack.c.bf16 %v1713_v54, %v1706_v53  ;;  %v3092_v26 = vand.u32 4294901760, %v15065_v45 }
  0x96   :  { %13680 = vmatpush3.bf16.msra.mxu1 %v13677_v47  ;;  %13638 = vmatprep.subr.bf16.mxu0 %v13637_v14  ;;  %v3810_v47 = vsel %vm103_vm1, %v3809_v39, %v3808_v31  ;;  %v3802_v33 = vsel %vm112_vm4, %v3801_v0, %v3800_v18  ;;  %v15063_v39 = vld [vmem:[#allocation5 + $0x80] sm:$0xff]  ;;  %v3084_v17 = vsel %vm134_vm7, %v3069_v21, 0  ;;  %v3082_v36 = vrot.slane %v3026_v7, 1  ;;  %v3763_v0 = vld [vmem:[#allocation2 + $0xf5] sm:$0x1] }
  0x97   :  { %13682 = vmatprep.subr.bf16.mxu1 %v13681_v50  ;;  %v3804_v20 = vsel %vm115_vm5, %v3803_v55, %v3802_v33  ;;  %v3817_v22 = vrot.slane %v3762_v52, 2  ;;  %v15080_v18 = vand.u32 4294901760, %v3084_v17  ;;  %v13697_v54 = vpack.c.bf16 %v2450_v60, %v2443_v59  ;;  %v15127_v55 = vld [vmem:[#allocation5 + $0xb8] sm:$0xff] }
  0x98   :  { %v3806_v10 = vsel %vm118_vm6, %v3805_v61, %v3804_v20  ;;  %v3819_v35 = vrot.slane %v3763_v0, 1  ;;  %v15113_v59 = vsub.f32 %v15065_v45, %v3092_v26  ;;  %v13701_v29 = vpack.c.bf16 %v2464_v13, %v2457_v8 }
  0x99   :  { %12683 = vmatmul.mubr.f32.vlgmr.msra.gmra.mrb[2].mxu1 %v14948_v56  ;;  %13640 = vmatpush3.bf16.msra.mxu0 %v13637_v14  ;;  %v3812_v14 = vsel %vm106_vm2, %v3811_v28, %v3810_v47  ;;  %v15098_v28 = vld [vmem:[#allocation5 + $0x98] sm:$0xff]  ;;  %v15106_v37 = vsub.f32 %v3084_v17, %v15080_v18  ;;  %v15150_v21 = vsub.f32 %v3765_v4, %v3826_v51 }
  0x9a   :  { %13684 = vmatpush3.bf16.msra.mxu1 %v13681_v50  ;;  %12693 = vmatprep.mubr.f32.mxu1 %v14918_v46  ;;  %v3079_v50 = vsel %vm112_vm4, %v3078_v9, %v3077_v12  ;;  %v3814_v31 = vsel %vm109_vm3, %v3813_v5, %v3812_v14  ;;  %v3821_v46 = vsel %vm134_vm7, %v3806_v10, 0  ;;  %v3098_v60 = vand.u32 4294901760, %v15098_v28 }
  0x9b   :  { %13686 = vmatprep.subr.bf16.mxu1 %v13685_v24  ;;  %13642 = vmatprep.subr.bf16.mxu0 %v14940_v49  ;;  %v3816_v15 = vsel %vm112_vm4, %v3815_v16, %v3814_v31  ;;  %v3159_v33 = vand.u32 4294901760, %v15106_v37  ;;  %v3187_v25 = vand.u32 4294901760, %v15113_v59  ;;  %v3835_v5 = vand.u32 4294901760, %v15127_v55 }
  0x9c   :  { %12628 = vmatmul.mubr.f32.vlgmr.msra.gmra.mrb[2].mxu0 %v14936_v40  ;;  %v3818_v27 = vsel %vm115_vm5, %v3817_v22, %v3816_v15  ;;  %v3095_v40 = vand.u32 4294901760, %v15096_v1 }
  0x9d   :  { %13644 = vmatpush3.bf16.msra.mxu0 %v14940_v49  ;;  %12638 = vmatprep.mubr.f32.mxu0 %v1685_v34  ;;  %v3081_v34 = vsel %vm115_vm5, %v3080_v42, %v3079_v50  ;;  %v3820_v47 = vsel %vm118_vm6, %v3819_v35, %v3818_v27  ;;  %v3160_v61 = vsub.f32 %v15106_v37, %v3159_v33  ;;  %v4487_v35 = vld [vmem:[#allocation2 + $0x26] sm:$0x1] }
  0x9e   :  { %13688 = vmatpush3.bf16.msra.mxu1 %v13685_v24  ;;  %13646 = vmatprep.subr.bf16.mxu0 %v14971_v62  ;;  %v3089_v24 = vand.u32 4294901760, %v15063_v39  ;;  %v3083_v53 = vsel %vm118_vm6, %v3082_v36, %v3081_v34  ;;  %v3823_v13 = vsel %vm134_vm7, %v3820_v47, 0  ;;  %v15142_v2 = vsub.f32 %v15096_v1, %v3095_v40 }
  0x9f   :  { %13690 = vmatprep.subr.bf16.mxu1 %v14966_v41  ;;  %v3086_v38 = vsel %vm134_vm7, %v3083_v53, 0  ;;  %v15168_v20 = vand.u32 4294901760, %v3823_v13  ;;  %v15184_v36 = vsub.f32 %v15127_v55, %v3835_v5  ;;  %v15191_v34 = vpack.c.bf16 %v3098_v60, %v3095_v40  ;;  %v4485_v40 = vld [vmem:[#allocation2 + $0x6] sm:$0x1] }
  0xa0   :  { %v15110_v43 = vsub.f32 %v15063_v39, %v3089_v24  ;;  %v15129_v12 = vand.u32 4294901760, %v3086_v38  ;;  %v15160_v14 = vpack.c.bf16 %v3092_v26, %v3089_v24  ;;  %v3917_v39 = vand.u32 4294901760, %v15150_v21 }
  0xa1   :  { %12694 = vmatmul.mubr.f32.vlgmr.msra.gmra.mrb[2].mxu1 %v14974_v63  ;;  %13648 = vmatpush3.bf16.msra.mxu0 %v14971_v62  ;;  %v15145_v63 = vsub.f32 %v15098_v28, %v3098_v60  ;;  %v3161_v10 = vand.u32 4294901760, %v3160_v61  ;;  %v15194_v22 = vsub.f32 %v3823_v13, %v15168_v20  ;;  %v4532_v55 = vrot.slane %v4487_v35, 6 }
  0xa2   :  { %13692 = vmatpush3.bf16.msra.mxu1 %v14966_v41  ;;  %12704 = vmatprep.mubr.f32.mxu1 %v2422_v58  ;;  %v3766_v58 = vld [vmem:[#allocation5 + $0xa8] sm:$0xff]  ;;  %v3180_v19 = vand.u32 4294901760, %v15110_v43  ;;  %v15156_v42 = vsub.f32 %v3086_v38, %v15129_v12 }
  0xa3   :  { %13694 = vmatprep.subr.bf16.mxu1 %v15002_v32  ;;  %13650 = vmatprep.subr.bf16.mxu0 %v13649_v30  ;;  %v3829_v9 = vand.u32 4294901760, %v3766_v58  ;;  %v3201_v16 = vand.u32 4294901760, %v15145_v63 }
  0xa4   :  { %12639 = vmatmul.mubr.f32.vlgmr.msra.gmra.mrb[2].mxu0 %v1695_v44  ;;  %v15118_v44 = vand.u32 4294901760, %v3821_v46  ;;  %v3181_v50 = vsub.f32 %v15110_v43, %v3180_v19 }
  0xa5   :  { %13652 = vmatpush3.bf16.msra.mxu0 %v13649_v30  ;;  %12649 = vmatprep.mubr.f32.mxu0 %v14859_v3  ;;  %v15152_v7 = vsub.f32 %v3766_v58, %v3829_v9  ;;  %v15186_v31 = vpack.c.bf16 %v3829_v9, %v3826_v51  ;;  %v3169_v30 = vand.u32 4294901760, %v15156_v42  ;;  %v3202_v15 = vsub.f32 %v15145_v63, %v3201_v16 }
  0xa6   :  { %13696 = vmatpush3.bf16.msra.mxu1 %v15002_v32  ;;  %13654 = vmatprep.subr.bf16.mxu0 %v13653_v23  ;;  %v15138_v8 = vsub.f32 %v3821_v46, %v15118_v44  ;;  %v3182_v0 = vand.u32 4294901760, %v3181_v50  ;;  %v3906_v46 = vand.u32 4294901760, %v15194_v22  ;;  %v4489_v50 = vld [vmem:[#allocation2 + $0x46] sm:$0x1] }
  0xa7   :  { %13698 = vmatprep.subr.bf16.mxu1 %v13697_v54  ;;  %v3924_v45 = vand.u32 4294901760, %v15152_v7  ;;  %v3170_v1 = vsub.f32 %v15156_v42, %v3169_v30  ;;  %v3203_v38 = vand.u32 4294901760, %v3202_v15 }
  0xa8   :  { %v3896_v52 = vand.u32 4294901760, %v15138_v8  ;;  %v3907_v13 = vsub.f32 %v15194_v22, %v3906_v46 }
  0xa9   :  { %12705 = vmatmul.mubr.f32.vlgmr.msra.gmra.mrb[2].mxu1 %v2432_v48  ;;  %13656 = vmatpush3.bf16.msra.mxu0 %v13653_v23  ;;  %v3832_v48 = vand.u32 4294901760, %v15125_v6  ;;  %v4486_v23 = vld [vmem:[#allocation2 + $0x16] sm:$0x1]  ;;  %v3171_v47 = vand.u32 4294901760, %v3170_v1  ;;  %v5225_v1 = vld [vmem:[#allocation2 + $0x37] sm:$0x1] }
  0xaa   :  { %13700 = vmatpush3.bf16.msra.mxu1 %v13697_v54  ;;  %12715 = vmatprep.mubr.f32.mxu1 %v14898_v57  ;;  %v3897_v24 = vsub.f32 %v15138_v8, %v3896_v52  ;;  %v3938_v54 = vand.u32 4294901760, %v15184_v36  ;;  %v4530_v4 = vrot.slane %v4486_v23, 7  ;;  %v4495_v23 = vld [vmem:[#allocation2 + $0xa6] sm:$0x1] }
  0xab   :  { %13702 = vmatprep.subr.bf16.mxu1 %v13701_v29  ;;  %13658 = vmatprep.subr.bf16.mxu0 %v14940_v49  ;;  %v15181_v17 = vsub.f32 %v15125_v6, %v3832_v48  ;;  %v15222_v28 = vpack.c.bf16 %v3835_v5, %v3832_v48  ;;  %v4488_v6 = vld [vmem:[#allocation2 + $0x36] sm:$0x1] }
  0xac   :  { %12650 = vmatmul.mubr.f32.vlgmr.msra.gmra.mrb[2].mxu0 %v14909_v11  ;;  %v3898_v58 = vand.u32 4294901760, %v3897_v24  ;;  %v3939_v9 = vsub.f32 %v15184_v36, %v3938_v54  ;;  %v4531_v48 = vsel %vm100_vm0, %v4530_v4, %v4485_v40  ;;  %v4494_v5 = vld [vmem:[#allocation2 + $0x96] sm:$0x1]  ;;  %v4493_v4 = vld [vmem:[#allocation2 + $0x86] sm:$0x1] }
  0xad   :  { %13660 = vmatpush3.bf16.msra.mxu0 %v14940_v49  ;;  %12660 = vmatprep.mubr.f32.mxu0 %v14859_v3  ;;  %v3188_v3 = vsub.f32 %v15113_v59, %v3187_v25  ;;  %v3194_v49 = vand.u32 4294901760, %v15142_v2  ;;  %v3931_v53 = vand.u32 4294901760, %v15181_v17  ;;  %v4533_v15 = vsel %vm103_vm1, %v4532_v55, %v4531_v48  ;;  %v5231_v40 = vld [vmem:[#allocation2 + $0x97] sm:$0x1]  ;;  %v4491_v55 = vld [vmem:[#allocation2 + $0x66] sm:$0x1] }
  0xae   :  { %13704 = vmatpush3.bf16.msra.mxu1 %v13701_v29  ;;  %13662 = vmatprep.subr.bf16.mxu0 %v14971_v62  ;;  %v3940_v24 = vand.u32 4294901760, %v3939_v9  ;;  %v4546_v9 = vrot.slane %v4495_v23, 6 }
  0xaf   :  { %13706 = vmatprep.subr.bf16.mxu1 %v14966_v41  ;;  %v3189_v26 = vand.u32 4294901760, %v3188_v3  ;;  %v3932_v51 = vsub.f32 %v15181_v17, %v3931_v53  ;;  %v5224_v3 = vld [vmem:[#allocation2 + $0x27] sm:$0x1] }
  0xb0   :  { %v5269_v35 = vrot.slane %v5224_v3, 6  ;;  %v13733_v3 = vpack.c.bf16 %v15145_v63, %v15142_v2  ;;  %v5239_v63 = vld [vmem:[#allocation5 + $0xe0] sm:$0xff] }
  0xb1   :  { %12716 = vmatmul.mubr.f32.vlgmr.msra.gmra.mrb[2].mxu1 %v14948_v56  ;;  %13664 = vmatpush3.bf16.msra.mxu0 %v14971_v62  ;;  %v3195_v62 = vsub.f32 %v15142_v2, %v3194_v49  ;;  %v13721_v27 = vpack.c.bf16 %v3189_v26, %v3182_v0  ;;  %v3933_v0 = vand.u32 4294901760, %v3932_v51  ;;  %v4534_v26 = vrot.slane %v4488_v6, 5  ;;  %v4496_v51 = vld [vmem:[#allocation2 + $0xb6] sm:$0x1] }
  0xb2   :  { %13708 = vmatpush3.bf16.msra.mxu1 %v14966_v41  ;;  %12726 = vmatprep.mubr.f32.mxu1 %v14898_v57  ;;  %v3918_v57 = vsub.f32 %v15150_v21, %v3917_v39  ;;  %v3925_v41 = vsub.f32 %v15152_v7, %v3924_v45 }
  0xb3   :  { %13710 = vmatprep.subr.bf16.mxu1 %v15002_v32  ;;  %13714 = vmatprep.subr.bf16.mxu0 %v15160_v14 }
  0xb4   :  { %12661 = vmatmul.mubr.f32.vlgmr.msra.gmra.mrb[2].mxu0 %v14909_v11  ;;  %v3196_v11 = vand.u32 4294901760, %v3195_v62  ;;  %v3919_v60 = vand.u32 4294901760, %v3918_v57  ;;  %v3926_v29 = vand.u32 4294901760, %v3925_v41  ;;  %v5222_v62 = vld [vmem:[#allocation2 + $0x7] sm:$0x1]  ;;  %v4544_v57 = vrot.slane %v4494_v5, 7 }
  0xb5   :  { %13716 = vmatpush3.bf16.msra.mxu0 %v15160_v14  ;;  %12737 = vmatprep.mubr.f32.mxu0 %v3161_v10  ;;  %v3908_v41 = vand.u32 4294901760, %v3907_v13  ;;  %v5232_v5 = vld [vmem:[#allocation2 + $0xa7] sm:$0x1] }
  0xb6   :  { %13712 = vmatpush3.bf16.msra.mxu1 %v15002_v32  ;;  %13718 = vmatprep.subr.bf16.mxu0 %v15191_v34  ;;  %v5223_v32 = vld [vmem:[#allocation2 + $0x17] sm:$0x1]  ;;  %v13725_v61 = vpack.c.bf16 %v3203_v38, %v3196_v11  ;;  %v4536_v11 = vrot.slane %v4489_v50, 4  ;;  %v4545_v6 = vsel %vm100_vm0, %v4544_v57, %v4493_v4  ;;  %v5281_v50 = vrot.slane %v5231_v40, 7  ;;  %v5228_v40 = vld [vmem:[#allocation2 + $0x67] sm:$0x1] }
  0xb7   :  { %13762 = vmatprep.subr.bf16.mxu1 %v15186_v31  ;;  %v5267_v10 = vrot.slane %v5223_v32, 7  ;;  %v5226_v32 = vld [vmem:[#allocation2 + $0x47] sm:$0x1]  ;;  %v4547_v23 = vsel %vm103_vm1, %v4546_v9, %v4545_v6  ;;  %v4540_v57 = vrot.slane %v4491_v55, 2  ;;  %v13781_v9 = vpack.c.bf16 %v15184_v36, %v15181_v17 }
  0xb9   :  { %12727 = vmatmul.mubr.f32.vlgmr.msra.gmra.mrb[2].mxu1 %v14948_v56  ;;  %13720 = vmatpush3.bf16.msra.mxu0 %v15191_v34  ;;  %v13769_v56 = vpack.c.bf16 %v3926_v29, %v3919_v60  ;;  %v5268_v38 = vsel %vm100_vm0, %v5267_v10, %v5222_v62  ;;  %v13773_v60 = vpack.c.bf16 %v3940_v24, %v3933_v0  ;;  %v4497_v0 = vld [vmem:[#allocation2 + $0xc6] sm:$0x1]  ;;  %v4548_v24 = vrot.slane %v4496_v51, 5  ;;  %v5227_v62 = vld [vmem:[#allocation2 + $0x57] sm:$0x1] }
  0xba   :  { %13764 = vmatpush3.bf16.msra.mxu1 %v15186_v31  ;;  %12803 = vmatprep.mubr.f32.mxu1 %v3898_v58  ;;  %v4490_v58 = vld [vmem:[#allocation2 + $0x56] sm:$0x1]  ;;  %v13729_v29 = vpack.c.bf16 %v15113_v59, %v15110_v43  ;;  %v5270_v48 = vsel %vm103_vm1, %v5269_v35, %v5268_v38  ;;  %v5283_v35 = vrot.slane %v5232_v5, 6  ;;  %v5229_v5 = vld [vmem:[#allocation2 + $0x77] sm:$0x1]  ;;  %v13749_v59 = vpack.c.bf16 %v3201_v16, %v3194_v49 }
  0xbb   :  { %13766 = vmatprep.subr.bf16.mxu1 %v15222_v28  ;;  %13722 = vmatprep.subr.bf16.mxu0 %v13721_v27  ;;  %v4538_v13 = vrot.slane %v4490_v58, 3  ;;  %v4498_v58 = vld [vmem:[#allocation2 + $0xd6] sm:$0x1]  ;;  %v4549_v51 = vsel %vm106_vm2, %v4548_v24, %v4547_v23  ;;  %v5235_v24 = vld [vmem:[#allocation2 + $0xd7] sm:$0x1] }
  0xbc   :  { %12738 = vmatmul.mubr.f32.vlgmr.msra.gmra.mrb[4].mxu0 %v3171_v47  ;;  %v5271_v47 = vrot.slane %v5225_v1, 5  ;;  %v5233_v1 = vld [vmem:[#allocation2 + $0xb7] sm:$0x1] }
  0xbd   :  { %13724 = vmatpush3.bf16.msra.mxu0 %v13721_v27  ;;  %12748 = vmatprep.mubr.f32.mxu0 %v15080_v18  ;;  %v4535_v27 = vsel %vm106_vm2, %v4534_v26, %v4533_v15  ;;  %v5230_v26 = vld [vmem:[#allocation2 + $0x87] sm:$0x1]  ;;  %v5273_v15 = vrot.slane %v5226_v32, 4  ;;  %v5285_v6 = vrot.slane %v5233_v1, 5  ;;  %v5289_v1 = vrot.slane %v5235_v24, 3 }
  0xbe   :  { %13768 = vmatpush3.bf16.msra.mxu1 %v15222_v28  ;;  %13726 = vmatprep.subr.bf16.mxu0 %v13725_v61  ;;  %v4537_v10 = vsel %vm109_vm3, %v4536_v11, %v4535_v27  ;;  %v4550_v11 = vrot.slane %v4497_v0, 4  ;;  %v5282_v38 = vsel %vm100_vm0, %v5281_v50, %v5230_v26  ;;  %v5275_v27 = vrot.slane %v5227_v62, 3 }
  0xbf   :  { %13770 = vmatprep.subr.bf16.mxu1 %v13769_v56  ;;  %v4539_v4 = vsel %vm112_vm4, %v4538_v13, %v4537_v10  ;;  %v4499_v13 = vld [vmem:[#allocation2 + $0xe6] sm:$0x1]  ;;  %v5277_v50 = vrot.slane %v5228_v40, 2 }
  0xc0   :  { %v4541_v55 = vsel %vm115_vm5, %v4540_v57, %v4539_v4  ;;  %v4551_v10 = vsel %vm109_vm3, %v4550_v11, %v4549_v51  ;;  %v4554_v23 = vrot.slane %v4499_v13, 2  ;;  %v15285_v4 = vld [vmem:[#allocation5 + $0xc8] sm:$0xff]  ;;  %v5300_v13 = vand.u32 4294901760, %v5239_v63 }
  0xc1   :  { %12804 = vmatmul.mubr.f32.vlgmr.msra.gmra.mrb[4].mxu1 %v3908_v41  ;;  %13728 = vmatpush3.bf16.msra.mxu0 %v13725_v61  ;;  %v13777_v61 = vpack.c.bf16 %v15152_v7, %v15150_v21  ;;  %v5272_v41 = vsel %vm106_vm2, %v5271_v47, %v5270_v48  ;;  %v5234_v47 = vld [vmem:[#allocation2 + $0xc7] sm:$0x1]  ;;  %v4552_v48 = vrot.slane %v4498_v58, 3 }
  0xc2   :  { %13772 = vmatpush3.bf16.msra.mxu1 %v13769_v56  ;;  %12814 = vmatprep.mubr.f32.mxu1 %v15118_v44  ;;  %v4492_v56 = vld [vmem:[#allocation2 + $0x76] sm:$0x1]  ;;  %v5287_v26 = vrot.slane %v5234_v47, 4 }
  0xc3   :  { %13774 = vmatprep.subr.bf16.mxu1 %v13773_v60  ;;  %13730 = vmatprep.subr.bf16.mxu0 %v13729_v29  ;;  %v4542_v32 = vrot.slane %v4492_v56, 1  ;;  %v5279_v56 = vrot.slane %v5229_v5, 1  ;;  %v15316_v47 = vld [vmem:[#allocation5 + $0xd0] sm:$0xff] }
  0xc4   :  { %12749 = vmatmul.mubr.f32.vlgmr.msra.gmra.mrb[4].mxu0 %v15129_v12  ;;  %v15345_v5 = vld [vmem:[#allocation5 + $0xf0] sm:$0xff] }
  0xc5   :  { %13732 = vmatpush3.bf16.msra.mxu0 %v13729_v29  ;;  %12759 = vmatprep.mubr.f32.mxu0 %v15106_v37  ;;  %v5274_v29 = vsel %vm109_vm3, %v5273_v15, %v5272_v41  ;;  %v4543_v62 = vsel %vm118_vm6, %v4542_v32, %v4541_v55  ;;  %v4500_v15 = vld [vmem:[#allocation2 + $0xf6] sm:$0x1]  ;;  %v5236_v41 = vld [vmem:[#allocation2 + $0xe7] sm:$0x1]  ;;  %v13745_v37 = vpack.c.bf16 %v3187_v25, %v3180_v19  ;;  %v4566_v32 = vand.u32 4294901760, %v15285_v4 }
  0xc6   :  { %13776 = vmatpush3.bf16.msra.mxu1 %v13773_v60  ;;  %13734 = vmatprep.subr.bf16.mxu0 %v13733_v3  ;;  %v5284_v60 = vsel %vm103_vm1, %v5283_v35, %v5282_v38  ;;  %v5276_v0 = vsel %vm112_vm4, %v5275_v27, %v5274_v29  ;;  %v15283_v35 = vld [vmem:[#allocation5 + $0xc0] sm:$0xff]  ;;  %v4558_v58 = vsel %vm134_vm7, %v4543_v62, 0  ;;  %v4556_v11 = vrot.slane %v4500_v15, 1  ;;  %v5237_v27 = vld [vmem:[#allocation2 + $0xf7] sm:$0x1] }
  0xc7   :  { %13778 = vmatprep.subr.bf16.mxu1 %v13777_v61  ;;  %v5278_v57 = vsel %vm115_vm5, %v5277_v50, %v5276_v0  ;;  %v5291_v51 = vrot.slane %v5236_v41, 2  ;;  %v15300_v29 = vand.u32 4294901760, %v4558_v58  ;;  %v13793_v25 = vpack.c.bf16 %v3924_v45, %v3917_v39  ;;  %v15347_v50 = vld [vmem:[#allocation5 + $0xf8] sm:$0xff] }
  0xc8   :  { %v5280_v40 = vsel %vm118_vm6, %v5279_v56, %v5278_v57  ;;  %v5293_v2 = vrot.slane %v5237_v27, 1  ;;  %v15333_v39 = vsub.f32 %v15285_v4, %v4566_v32  ;;  %v13797_v55 = vpack.c.bf16 %v3938_v54, %v3931_v53 }
  0xc9   :  { %12815 = vmatmul.mubr.f32.vlgmr.msra.gmra.mrb[4].mxu1 %v15168_v20  ;;  %13736 = vmatpush3.bf16.msra.mxu0 %v13733_v3  ;;  %v5286_v3 = vsel %vm106_vm2, %v5285_v6, %v5284_v60  ;;  %v15318_v6 = vld [vmem:[#allocation5 + $0xd8] sm:$0xff]  ;;  %v15326_v21 = vsub.f32 %v4558_v58, %v15300_v29  ;;  %v15370_v62 = vsub.f32 %v5239_v63, %v5300_v13 }
  0xca   :  { %13780 = vmatpush3.bf16.msra.mxu1 %v13777_v61  ;;  %12825 = vmatprep.mubr.f32.mxu1 %v15138_v8  ;;  %v4553_v61 = vsel %vm112_vm4, %v4552_v48, %v4551_v10  ;;  %v5288_v38 = vsel %vm109_vm3, %v5287_v26, %v5286_v3  ;;  %v5295_v8 = vsel %vm134_vm7, %v5280_v40, 0  ;;  %v4572_v45 = vand.u32 4294901760, %v15318_v6 }
  0xcb   :  { %13782 = vmatprep.subr.bf16.mxu1 %v13781_v9  ;;  %13738 = vmatprep.subr.bf16.mxu0 %v15160_v14  ;;  %v5290_v43 = vsel %vm112_vm4, %v5289_v1, %v5288_v38  ;;  %v4633_v0 = vand.u32 4294901760, %v15326_v21  ;;  %v4661_v36 = vand.u32 4294901760, %v15333_v39  ;;  %v5309_v26 = vand.u32 4294901760, %v15347_v50 }
  0xcc   :  { %12760 = vmatmul.mubr.f32.vlgmr.msra.gmra.mrb[4].mxu0 %v15156_v42  ;;  %v5292_v49 = vsel %vm115_vm5, %v5291_v51, %v5290_v43  ;;  %v4569_v42 = vand.u32 4294901760, %v15316_v47 }
  0xcd   :  { %13740 = vmatpush3.bf16.msra.mxu0 %v15160_v14  ;;  %12770 = vmatprep.mubr.f32.mxu0 %v3159_v33  ;;  %v4555_v33 = vsel %vm115_vm5, %v4554_v23, %v4553_v61  ;;  %v5294_v60 = vsel %vm118_vm6, %v5293_v2, %v5292_v49  ;;  %v4634_v56 = vsub.f32 %v15326_v21, %v4633_v0  ;;  %v5961_v2 = vld [vmem:[#allocation2 + $0x28] sm:$0x1] }
  0xce   :  { %13784 = vmatpush3.bf16.msra.mxu1 %v13781_v9  ;;  %13742 = vmatprep.subr.bf16.mxu0 %v15191_v34  ;;  %v4563_v9 = vand.u32 4294901760, %v15283_v35  ;;  %v4557_v19 = vsel %vm118_vm6, %v4556_v11, %v4555_v33  ;;  %v5297_v54 = vsel %vm134_vm7, %v5294_v60, 0  ;;  %v15362_v24 = vsub.f32 %v15316_v47, %v4569_v42 }
  0xcf   :  { %13786 = vmatprep.subr.bf16.mxu1 %v15186_v31  ;;  %v4560_v7 = vsel %vm134_vm7, %v4557_v19, 0  ;;  %v15388_v57 = vand.u32 4294901760, %v5297_v54  ;;  %v15404_v11 = vsub.f32 %v15347_v50, %v5309_v26  ;;  %v15411_v33 = vpack.c.bf16 %v4572_v45, %v4569_v42 }
  0xd0   :  { %v15330_v16 = vsub.f32 %v15283_v35, %v4563_v9  ;;  %v15349_v10 = vand.u32 4294901760, %v4560_v7  ;;  %v15380_v3 = vpack.c.bf16 %v4566_v32, %v4563_v9  ;;  %v5391_v35 = vand.u32 4294901760, %v15370_v62 }
  0xd1   :  { %12826 = vmatmul.mubr.f32.vlgmr.msra.gmra.mrb[4].mxu1 %v15194_v22  ;;  %13744 = vmatpush3.bf16.msra.mxu0 %v15191_v34  ;;  %v15365_v22 = vsub.f32 %v15318_v6, %v4572_v45  ;;  %v4635_v40 = vand.u32 4294901760, %v4634_v56  ;;  %v15414_v51 = vsub.f32 %v5297_v54, %v15388_v57  ;;  %v5959_v45 = vld [vmem:[#allocation2 + $0x8] sm:$0x1]  ;;  %v6006_v50 = vrot.slane %v5961_v2, 6 }
  0xd2   :  { %13788 = vmatpush3.bf16.msra.mxu1 %v15186_v31  ;;  %12836 = vmatprep.mubr.f32.mxu1 %v3896_v52  ;;  %v5240_v52 = vld [vmem:[#allocation5 + $0xe8] sm:$0xff]  ;;  %v4654_v17 = vand.u32 4294901760, %v15330_v16  ;;  %v15376_v23 = vsub.f32 %v4560_v7, %v15349_v10 }
  0xd3   :  { %13790 = vmatprep.subr.bf16.mxu1 %v15222_v28  ;;  %13746 = vmatprep.subr.bf16.mxu0 %v13745_v37  ;;  %v5303_v48 = vand.u32 4294901760, %v5240_v52  ;;  %v4675_v1 = vand.u32 4294901760, %v15365_v22 }
  0xd4   :  { %12771 = vmatmul.mubr.f32.vlgmr.msra.gmra.mrb[4].mxu0 %v3169_v30  ;;  %v15338_v30 = vand.u32 4294901760, %v5295_v8  ;;  %v4655_v61 = vsub.f32 %v15330_v16, %v4654_v17 }
  0xd5   :  { %13748 = vmatpush3.bf16.msra.mxu0 %v13745_v37  ;;  %12781 = vmatprep.mubr.f32.mxu0 %v15080_v18  ;;  %v15372_v15 = vsub.f32 %v5240_v52, %v5303_v48  ;;  %v15406_v38 = vpack.c.bf16 %v5303_v48, %v5300_v13  ;;  %v4643_v37 = vand.u32 4294901760, %v15376_v23  ;;  %v4676_v43 = vsub.f32 %v15365_v22, %v4675_v1  ;;  %v6697_v52 = vld [vmem:[#allocation2 + $0x19] sm:$0x1] }
  0xd6   :  { %13792 = vmatpush3.bf16.msra.mxu1 %v15222_v28  ;;  %13750 = vmatprep.subr.bf16.mxu0 %v13749_v59  ;;  %v15358_v53 = vsub.f32 %v5295_v8, %v15338_v30  ;;  %v4656_v27 = vand.u32 4294901760, %v4655_v61  ;;  %v5380_v8 = vand.u32 4294901760, %v15414_v51  ;;  %v6741_v56 = vrot.slane %v6697_v52, 7  ;;  %v5968_v61 = vld [vmem:[#allocation2 + $0x98] sm:$0x1] }
  0xd7   :  { %13794 = vmatprep.subr.bf16.mxu1 %v13793_v25  ;;  %v5398_v4 = vand.u32 4294901760, %v15372_v15  ;;  %v4644_v47 = vsub.f32 %v15376_v23, %v4643_v37  ;;  %v4677_v42 = vand.u32 4294901760, %v4676_v43  ;;  %v5967_v52 = vld [vmem:[#allocation2 + $0x88] sm:$0x1] }
  0xd8   :  { %v5370_v41 = vand.u32 4294901760, %v15358_v53  ;;  %v5381_v54 = vsub.f32 %v15414_v51, %v5380_v8 }
  0xd9   :  { %12837 = vmatmul.mubr.f32.vlgmr.msra.gmra.mrb[4].mxu1 %v3906_v46  ;;  %13752 = vmatpush3.bf16.msra.mxu0 %v13749_v59  ;;  %v5306_v46 = vand.u32 4294901760, %v15345_v5  ;;  %v5960_v59 = vld [vmem:[#allocation2 + $0x18] sm:$0x1] }
  0xda   :  { %13796 = vmatpush3.bf16.msra.mxu1 %v13793_v25  ;;  %12847 = vmatprep.mubr.f32.mxu1 %v15118_v44  ;;  %v5371_v9 = vsub.f32 %v15358_v53, %v5370_v41  ;;  %v5412_v25 = vand.u32 4294901760, %v15404_v11  ;;  %v6004_v63 = vrot.slane %v5960_v59, 7  ;;  %v6699_v59 = vld [vmem:[#allocation2 + $0x39] sm:$0x1]  ;;  %v5382_v2 = vand.u32 4294901760, %v5381_v54 }
  0xdb   :  { %13798 = vmatprep.subr.bf16.mxu1 %v13797_v55  ;;  %13754 = vmatprep.subr.bf16.mxu0 %v15160_v14  ;;  %v15401_v58 = vsub.f32 %v15345_v5, %v5306_v46  ;;  %v15442_v6 = vpack.c.bf16 %v5309_v26, %v5306_v46  ;;  %v5962_v5 = vld [vmem:[#allocation2 + $0x38] sm:$0x1]  ;;  %v6698_v26 = vld [vmem:[#allocation2 + $0x29] sm:$0x1] }
  0xdc   :  { %12782 = vmatmul.mubr.f32.vlgmr.msra.gmra.mrb[4].mxu0 %v15129_v12  ;;  %v5372_v49 = vand.u32 4294901760, %v5371_v9  ;;  %v5413_v60 = vsub.f32 %v15404_v11, %v5412_v25  ;;  %v6005_v46 = vsel %vm100_vm0, %v6004_v63, %v5959_v45  ;;  %v6705_v45 = vld [vmem:[#allocation2 + $0x99] sm:$0x1] }
  0xdd   :  { %13756 = vmatpush3.bf16.msra.mxu0 %v15160_v14  ;;  %12792 = vmatprep.mubr.f32.mxu0 %v15080_v18  ;;  %v4662_v18 = vsub.f32 %v15333_v39, %v4661_v36  ;;  %v4668_v14 = vand.u32 4294901760, %v15362_v24  ;;  %v5405_v19 = vand.u32 4294901760, %v15401_v58  ;;  %v6007_v43 = vsel %vm103_vm1, %v6006_v50, %v6005_v46 }
  0xde   :  { %13800 = vmatpush3.bf16.msra.mxu1 %v13797_v55  ;;  %13758 = vmatprep.subr.bf16.mxu0 %v15191_v34  ;;  %v5414_v9 = vand.u32 4294901760, %v5413_v60  ;;  %v5970_v60 = vld [vmem:[#allocation2 + $0xb8] sm:$0x1] }
  0xdf   :  { %13802 = vmatprep.subr.bf16.mxu1 %v15186_v31  ;;  %v4663_v32 = vand.u32 4294901760, %v4662_v18  ;;  %v5406_v48 = vsub.f32 %v15401_v58, %v5405_v19 }
  0xe1   :  { %12848 = vmatmul.mubr.f32.vlgmr.msra.gmra.mrb[4].mxu1 %v15168_v20  ;;  %13760 = vmatpush3.bf16.msra.mxu0 %v15191_v34  ;;  %v4669_v34 = vsub.f32 %v15362_v24, %v4668_v14 }
  0xe2   :  { %13804 = vmatpush3.bf16.msra.mxu1 %v15186_v31  ;;  %12858 = vmatprep.mubr.f32.mxu1 %v15118_v44  ;;  %v5392_v44 = vsub.f32 %v15370_v62, %v5391_v35  ;;  %v5399_v31 = vsub.f32 %v15372_v15, %v5398_v4 }
  0xe3   :  { %13806 = vmatprep.subr.bf16.mxu1 %v15222_v28  ;;  %13810 = vmatprep.subr.bf16.mxu0 %v15380_v3  ;;  %v4670_v7 = vand.u32 4294901760, %v4669_v34  ;;  %v6008_v34 = vrot.slane %v5962_v5, 5  ;;  %v5965_v5 = vld [vmem:[#allocation2 + $0x68] sm:$0x1] }
  0xe4   :  { %12793 = vmatmul.mubr.f32.vlgmr.msra.gmra.mrb[4].mxu0 %v15129_v12  ;;  %v13817_v12 = vpack.c.bf16 %v4663_v32, %v4656_v27  ;;  %v5393_v55 = vand.u32 4294901760, %v5392_v44  ;;  %v5400_v13 = vand.u32 4294901760, %v5399_v31  ;;  %v5407_v27 = vand.u32 4294901760, %v5406_v48  ;;  %v5963_v32 = vld [vmem:[#allocation2 + $0x48] sm:$0x1] }
  0xe5   :  { %13812 = vmatpush3.bf16.msra.mxu0 %v15380_v3  ;;  %12869 = vmatprep.mubr.f32.mxu0 %v4635_v40  ;;  %v13821_v18 = vpack.c.bf16 %v4677_v42, %v4670_v7  ;;  %v6696_v40 = vld [vmem:[#allocation2 + $0x9] sm:$0x1]  ;;  %v6743_v44 = vrot.slane %v6698_v26, 6  ;;  %v5969_v31 = vld [vmem:[#allocation2 + $0xa8] sm:$0x1]  ;;  %v6010_v42 = vrot.slane %v5963_v32, 4 }
  0xe6   :  { %13808 = vmatpush3.bf16.msra.mxu1 %v15222_v28  ;;  %13814 = vmatprep.subr.bf16.mxu0 %v15411_v33  ;;  %v4645_v28 = vand.u32 4294901760, %v4644_v47  ;;  %v6018_v47 = vrot.slane %v5968_v61, 7  ;;  %v6742_v63 = vsel %vm100_vm0, %v6741_v56, %v6696_v40  ;;  %v5964_v7 = vld [vmem:[#allocation2 + $0x58] sm:$0x1]  ;;  %v6700_v48 = vld [vmem:[#allocation2 + $0x49] sm:$0x1]  ;;  %v13829_v40 = vpack.c.bf16 %v15365_v22, %v15362_v24 }
  0xe7   :  { %13858 = vmatprep.subr.bf16.mxu1 %v15406_v38  ;;  %v6744_v50 = vsel %vm103_vm1, %v6743_v44, %v6742_v63  ;;  %v6012_v46 = vrot.slane %v5964_v7, 3  ;;  %v6701_v26 = vld [vmem:[#allocation2 + $0x59] sm:$0x1]  ;;  %v6706_v56 = vld [vmem:[#allocation2 + $0xa9] sm:$0x1]  ;;  %v6755_v61 = vrot.slane %v6705_v45, 7 }
  0xe8   :  { %v6019_v54 = vsel %vm100_vm0, %v6018_v47, %v5967_v52  ;;  %v5971_v32 = vld [vmem:[#allocation2 + $0xc8] sm:$0x1]  ;;  %v5966_v44 = vld [vmem:[#allocation2 + $0x78] sm:$0x1]  ;;  %v6707_v47 = vld [vmem:[#allocation2 + $0xb9] sm:$0x1] }
  0xe9   :  { %12859 = vmatmul.mubr.f32.vlgmr.msra.gmra.mrb[4].mxu1 %v15168_v20  ;;  %13816 = vmatpush3.bf16.msra.mxu0 %v15411_v33  ;;  %v13865_v20 = vpack.c.bf16 %v5400_v13, %v5393_v55  ;;  %v13869_v55 = vpack.c.bf16 %v5414_v9, %v5407_v27  ;;  %v6009_v13 = vsel %vm106_vm2, %v6008_v34, %v6007_v43  ;;  %v6747_v9 = vrot.slane %v6700_v48, 4  ;;  %v6704_v43 = vld [vmem:[#allocation2 + $0x89] sm:$0x1]  ;;  %v5979_v24 = vld [vmem:[#allocation5 + $0x118] sm:$0xff] }
  0xea   :  { %13860 = vmatpush3.bf16.msra.mxu1 %v15406_v38  ;;  %12935 = vmatprep.mubr.f32.mxu1 %v5372_v49  ;;  %v13825_v49 = vpack.c.bf16 %v15333_v39, %v15330_v16  ;;  %v6011_v27 = vsel %vm109_vm3, %v6010_v42, %v6009_v13  ;;  %v6022_v34 = vrot.slane %v5970_v60, 5  ;;  %v6702_v52 = vld [vmem:[#allocation2 + $0x69] sm:$0x1]  ;;  %v6749_v7 = vrot.slane %v6701_v26, 3  ;;  %v5972_v42 = vld [vmem:[#allocation2 + $0xd8] sm:$0x1] }
  0xeb   :  { %13862 = vmatprep.subr.bf16.mxu1 %v15442_v6  ;;  %13818 = vmatprep.subr.bf16.mxu0 %v13817_v12  ;;  %v6013_v63 = vsel %vm112_vm4, %v6012_v46, %v6011_v27  ;;  %v6024_v45 = vrot.slane %v5971_v32, 4  ;;  %v6756_v13 = vsel %vm100_vm0, %v6755_v61, %v6704_v43  ;;  %v6016_v60 = vrot.slane %v5966_v44, 1  ;;  %v5973_v26 = vld [vmem:[#allocation2 + $0xe8] sm:$0x1] }
  0xec   :  { %12870 = vmatmul.mubr.f32.vlgmr.msra.gmra.mrb[6].mxu0 %v4645_v28  ;;  %v6020_v28 = vrot.slane %v5969_v31, 6  ;;  %v6014_v31 = vrot.slane %v5965_v5, 2  ;;  %v6759_v5 = vrot.slane %v6707_v47, 5  ;;  %v6751_v46 = vrot.slane %v6702_v52, 2  ;;  %v6710_v47 = vld [vmem:[#allocation2 + $0xe9] sm:$0x1] }
  0xed   :  { %13820 = vmatpush3.bf16.msra.mxu0 %v13817_v12  ;;  %12880 = vmatprep.mubr.f32.mxu0 %v15300_v29  ;;  %v6745_v12 = vrot.slane %v6699_v59, 5  ;;  %v13845_v39 = vpack.c.bf16 %v4675_v1, %v4668_v14  ;;  %v6714_v22 = vld [vmem:[#allocation5 + $0x128] sm:$0xff] }
  0xee   :  { %13864 = vmatpush3.bf16.msra.mxu1 %v15442_v6  ;;  %13822 = vmatprep.subr.bf16.mxu0 %v13821_v18 }
  0xef   :  { %13866 = vmatprep.subr.bf16.mxu1 %v13865_v20  ;;  %v6746_v59 = vsel %vm106_vm2, %v6745_v12, %v6744_v50  ;;  %v6015_v50 = vsel %vm115_vm5, %v6014_v31, %v6013_v63  ;;  %v15502_v31 = vld [vmem:[#allocation5 + $0x100] sm:$0xff]  ;;  %v15505_v63 = vld [vmem:[#allocation5 + $0x108] sm:$0xff] }
  0xf0   :  { %v6748_v48 = vsel %vm109_vm3, %v6747_v9, %v6746_v59  ;;  %v6709_v9 = vld [vmem:[#allocation2 + $0xd9] sm:$0x1]  ;;  %v5974_v59 = vld [vmem:[#allocation2 + $0xf8] sm:$0x1] }
  0xf1   :  { %12936 = vmatmul.mubr.f32.vlgmr.msra.gmra.mrb[6].mxu1 %v5382_v2  ;;  %13824 = vmatpush3.bf16.msra.mxu0 %v13821_v18  ;;  %v13873_v18 = vpack.c.bf16 %v15372_v15, %v15370_v62  ;;  %v6757_v2 = vrot.slane %v6706_v56, 6  ;;  %v6026_v56 = vrot.slane %v5972_v42, 3  ;;  %v6750_v61 = vsel %vm112_vm4, %v6749_v7, %v6748_v48  ;;  %v6711_v48 = vld [vmem:[#allocation2 + $0xf9] sm:$0x1] }
  0xf2   :  { %13868 = vmatpush3.bf16.msra.mxu1 %v13865_v20  ;;  %12946 = vmatprep.mubr.f32.mxu1 %v15338_v30  ;;  %v6021_v20 = vsel %vm103_vm1, %v6020_v28, %v6019_v54  ;;  %v6708_v28 = vld [vmem:[#allocation2 + $0xc9] sm:$0x1]  ;;  %v6703_v54 = vld [vmem:[#allocation2 + $0x79] sm:$0x1]  ;;  %v6030_v7 = vrot.slane %v5974_v59, 1 }
  0xf3   :  { %13870 = vmatprep.subr.bf16.mxu1 %v13869_v55  ;;  %13826 = vmatprep.subr.bf16.mxu0 %v13825_v49  ;;  %v6023_v12 = vsel %vm106_vm2, %v6022_v34, %v6021_v20  ;;  %v6761_v32 = vrot.slane %v6708_v28, 4  ;;  %v6017_v34 = vsel %vm118_vm6, %v6016_v60, %v6015_v50  ;;  %v6753_v43 = vrot.slane %v6703_v54, 1 }
  0xf4   :  { %12881 = vmatmul.mubr.f32.vlgmr.msra.gmra.mrb[6].mxu0 %v15349_v10  ;;  %v6025_v27 = vsel %vm109_vm3, %v6024_v45, %v6023_v12  ;;  %v6028_v20 = vrot.slane %v5973_v26, 2  ;;  %v6032_v52 = vsel %vm134_vm7, %v6017_v34, 0  ;;  %v6765_v12 = vrot.slane %v6710_v47, 2 }
  0xf5   :  { %13828 = vmatpush3.bf16.msra.mxu0 %v13825_v49  ;;  %12891 = vmatprep.mubr.f32.mxu0 %v15326_v21  ;;  %v13877_v49 = vpack.c.bf16 %v15404_v11, %v15401_v58  ;;  %v13841_v21 = vpack.c.bf16 %v4661_v36, %v4654_v17  ;;  %v15520_v60 = vand.u32 4294901760, %v6032_v52  ;;  %v13889_v28 = vpack.c.bf16 %v5398_v4, %v5391_v35 }
  0xf6   :  { %13872 = vmatpush3.bf16.msra.mxu1 %v13869_v55  ;;  %13830 = vmatprep.subr.bf16.mxu0 %v13829_v40  ;;  %v6758_v55 = vsel %vm103_vm1, %v6757_v2, %v6756_v13  ;;  %v6763_v2 = vrot.slane %v6709_v9, 3  ;;  %v6037_v13 = vand.u32 4294901760, %v15502_v31  ;;  %v6046_v50 = vand.u32 4294901760, %v5979_v24 }
  0xf7   :  { %13874 = vmatprep.subr.bf16.mxu1 %v13873_v18  ;;  %v6760_v44 = vsel %vm106_vm2, %v6759_v5, %v6758_v55  ;;  %v15537_v5 = vld [vmem:[#allocation5 + $0x120] sm:$0xff]  ;;  %v15551_v15 = vsub.f32 %v6032_v52, %v15520_v60  ;;  %v13893_v54 = vpack.c.bf16 %v5412_v25, %v5405_v19  ;;  %v15571_v55 = vld [vmem:[#allocation5 + $0x138] sm:$0xff] }
  0xf8   :  { %v6762_v42 = vsel %vm109_vm3, %v6761_v32, %v6760_v44  ;;  %v15546_v14 = vsub.f32 %v15502_v31, %v6037_v13  ;;  %v6774_v4 = vand.u32 4294901760, %v15537_v5  ;;  %v6783_v34 = vand.u32 4294901760, %v15571_v55  ;;  %v7434_v31 = vld [vmem:[#allocation2 + $0x1a] sm:$0x1] }
  0xf9   :  { %12947 = vmatmul.mubr.f32.vlgmr.msra.gmra.mrb[6].mxu1 %v15388_v57  ;;  %13832 = vmatpush3.bf16.msra.mxu0 %v13829_v40  ;;  %v6752_v40 = vsel %vm115_vm5, %v6751_v46, %v6750_v61  ;;  %v6764_v16 = vsel %vm112_vm4, %v6763_v2, %v6762_v42  ;;  %v6777_v46 = vand.u32 4294901760, %v6714_v22  ;;  %v6107_v58 = vand.u32 4294901760, %v15551_v15 }
  0xfa   :  { %13876 = vmatpush3.bf16.msra.mxu1 %v13873_v18  ;;  %12957 = vmatprep.mubr.f32.mxu1 %v15358_v53  ;;  %v6027_v18 = vsel %vm112_vm4, %v6026_v56, %v6025_v27  ;;  %v15539_v53 = vld [vmem:[#allocation5 + $0x110] sm:$0xff]  ;;  %v6766_v62 = vsel %vm115_vm5, %v6765_v12, %v6764_v16  ;;  %v6128_v27 = vand.u32 4294901760, %v15546_v14  ;;  %v15586_v9 = vsub.f32 %v15537_v5, %v6774_v4 }
  0xfb   :  { %13878 = vmatprep.subr.bf16.mxu1 %v13877_v49  ;;  %13834 = vmatprep.subr.bf16.mxu0 %v15380_v3  ;;  %v6029_v45 = vsel %vm115_vm5, %v6028_v20, %v6027_v18  ;;  %v15569_v56 = vld [vmem:[#allocation5 + $0x130] sm:$0xff]  ;;  %v6108_v44 = vsub.f32 %v15551_v15, %v6107_v58  ;;  %v7478_v5 = vrot.slane %v7434_v31, 7  ;;  %v7442_v31 = vld [vmem:[#allocation2 + $0x9a] sm:$0x1] }
  0xfc   :  { %12892 = vmatmul.mubr.f32.vlgmr.msra.gmra.mrb[6].mxu0 %v15376_v23  ;;  %v6031_v36 = vsel %vm118_vm6, %v6030_v7, %v6029_v45  ;;  %v6129_v20 = vsub.f32 %v15546_v14, %v6128_v27  ;;  %v6865_v2 = vand.u32 4294901760, %v15586_v9 }
  0xfd   :  { %13836 = vmatpush3.bf16.msra.mxu0 %v15380_v3  ;;  %12902 = vmatprep.mubr.f32.mxu0 %v4633_v0  ;;  %v6754_v0 = vsel %vm118_vm6, %v6753_v43, %v6752_v40  ;;  %v6034_v35 = vsel %vm134_vm7, %v6031_v36, 0  ;;  %v15596_v43 = vsub.f32 %v6714_v22, %v6777_v46 }
  0xfe   :  { %13880 = vmatpush3.bf16.msra.mxu1 %v13877_v49  ;;  %13838 = vmatprep.subr.bf16.mxu0 %v15411_v33  ;;  %v6040_v49 = vand.u32 4294901760, %v15505_v63  ;;  %v6769_v17 = vsel %vm134_vm7, %v6754_v0, 0  ;;  %v15573_v61 = vand.u32 4294901760, %v6034_v35  ;;  %v15634_v0 = vpack.c.bf16 %v6777_v46, %v6774_v4  ;;  %v8171_v4 = vld [vmem:[#allocation2 + $0x1b] sm:$0x1] }
  0xff   :  { %13882 = vmatprep.subr.bf16.mxu1 %v15406_v38  ;;  %v15553_v1 = vand.u32 4294901760, %v6769_v17  ;;  %v6872_v7 = vand.u32 4294901760, %v15596_v43  ;;  %v6130_v12 = vand.u32 4294901760, %v6129_v20  ;;  %v8215_v20 = vrot.slane %v8171_v4, 7 }
 0x100   :  { %v15559_v23 = vsub.f32 %v15505_v63, %v6040_v49  ;;  %v15600_v59 = vsub.f32 %v6034_v35, %v15573_v61  ;;  %v15625_v52 = vpack.c.bf16 %v6040_v49, %v6037_v13  ;;  %v6109_v63 = vand.u32 4294901760, %v6108_v44 }
 0x101   :  { %12958 = vmatmul.mubr.f32.vlgmr.msra.gmra.mrb[6].mxu1 %v15414_v51  ;;  %13840 = vmatpush3.bf16.msra.mxu0 %v15411_v33  ;;  %v15580_v11 = vsub.f32 %v6769_v17, %v15553_v1  ;;  %v15591_v51 = vsub.f32 %v5979_v24, %v6046_v50  ;;  %v7433_v24 = vld [vmem:[#allocation2 + $0xa] sm:$0x1] }
 0x102   :  { %13884 = vmatpush3.bf16.msra.mxu1 %v15406_v38  ;;  %12968 = vmatprep.mubr.f32.mxu1 %v5370_v41  ;;  %v6767_v41 = vrot.slane %v6711_v48, 1  ;;  %v6135_v19 = vand.u32 4294901760, %v15559_v23  ;;  %v6117_v48 = vand.u32 4294901760, %v15600_v59 }
 0x103   :  { %13886 = vmatprep.subr.bf16.mxu1 %v15442_v6  ;;  %13842 = vmatprep.subr.bf16.mxu0 %v13841_v21  ;;  %v6844_v40 = vand.u32 4294901760, %v15580_v11 }
 0x104   :  { %12903 = vmatmul.mubr.f32.vlgmr.msra.gmra.mrb[6].mxu0 %v4643_v37  ;;  %v6043_v37 = vand.u32 4294901760, %v15539_v53  ;;  %v6768_v26 = vsel %vm118_vm6, %v6767_v41, %v6766_v62  ;;  %v6136_v18 = vsub.f32 %v15559_v23, %v6135_v19 }
 0x105   :  { %13844 = vmatpush3.bf16.msra.mxu0 %v13841_v21  ;;  %12913 = vmatprep.mubr.f32.mxu0 %v15300_v29  ;;  %v6771_v25 = vsel %vm134_vm7, %v6768_v26, 0  ;;  %v15632_v21 = vsub.f32 %v15571_v55, %v6783_v34  ;;  %v6845_v13 = vsub.f32 %v15580_v11, %v6844_v40 }
 0x106   :  { %13888 = vmatpush3.bf16.msra.mxu1 %v15442_v6  ;;  %13846 = vmatprep.subr.bf16.mxu0 %v13845_v39  ;;  %v15589_v32 = vsub.f32 %v15539_v53, %v6043_v37  ;;  %v15614_v47 = vand.u32 4294901760, %v6771_v25  ;;  %v15636_v45 = vpack.c.bf16 %v6046_v50, %v6043_v37  ;;  %v6137_v49 = vand.u32 4294901760, %v6136_v18 }
 0x107   :  { %13890 = vmatprep.subr.bf16.mxu1 %v13889_v28  ;;  %v6886_v36 = vand.u32 4294901760, %v15632_v21  ;;  %v6118_v53 = vsub.f32 %v15600_v59, %v6117_v48  ;;  %v6846_v22 = vand.u32 4294901760, %v6845_v13 }
 0x108   :  { %v15645_v16 = vsub.f32 %v6771_v25, %v15614_v47  ;;  %v13913_v62 = vpack.c.bf16 %v6137_v49, %v6130_v12  ;;  %v8170_v12 = vld [vmem:[#allocation2 + $0xb] sm:$0x1] }
 0x109   :  { %12969 = vmatmul.mubr.f32.vlgmr.msra.gmra.mrb[6].mxu1 %v5380_v8  ;;  %13848 = vmatpush3.bf16.msra.mxu0 %v13845_v39  ;;  %v6780_v8 = vand.u32 4294901760, %v15569_v56  ;;  %v6866_v39 = vsub.f32 %v15586_v9, %v6865_v2  ;;  %v6887_v55 = vsub.f32 %v15632_v21, %v6886_v36  ;;  %v6119_v25 = vand.u32 4294901760, %v6118_v53  ;;  %v7443_v53 = vld [vmem:[#allocation2 + $0xaa] sm:$0x1] }
 0x10a   :  { %13892 = vmatpush3.bf16.msra.mxu1 %v13889_v28  ;;  %12979 = vmatprep.mubr.f32.mxu1 %v15338_v30  ;;  %v7435_v28 = vld [vmem:[#allocation2 + $0x2a] sm:$0x1]  ;;  %v6854_v35 = vand.u32 4294901760, %v15645_v16 }
 0x10b   :  { %13894 = vmatprep.subr.bf16.mxu1 %v13893_v54  ;;  %13850 = vmatprep.subr.bf16.mxu0 %v15380_v3  ;;  %v15629_v42 = vsub.f32 %v15569_v56, %v6780_v8  ;;  %v15670_v41 = vpack.c.bf16 %v6783_v34, %v6780_v8  ;;  %v7480_v46 = vrot.slane %v7435_v28, 6  ;;  %v7437_v8 = vld [vmem:[#allocation2 + $0x4a] sm:$0x1]  ;;  %v8172_v34 = vld [vmem:[#allocation2 + $0x2b] sm:$0x1] }
 0x10c   :  { %12914 = vmatmul.mubr.f32.vlgmr.msra.gmra.mrb[6].mxu0 %v15349_v10  ;;  %v6855_v44 = vsub.f32 %v15645_v16, %v6854_v35  ;;  %v7484_v28 = vrot.slane %v7437_v8, 4 }
 0x10d   :  { %13852 = vmatpush3.bf16.msra.mxu0 %v15380_v3  ;;  %12924 = vmatprep.mubr.f32.mxu0 %v15300_v29  ;;  %v6142_v3 = vand.u32 4294901760, %v15589_v32  ;;  %v6149_v29 = vand.u32 4294901760, %v15591_v51 }
 0x10e   :  { %13896 = vmatpush3.bf16.msra.mxu1 %v13893_v54  ;;  %13854 = vmatprep.subr.bf16.mxu0 %v15411_v33  ;;  %v7436_v54 = vld [vmem:[#allocation2 + $0x3a] sm:$0x1]  ;;  %v6856_v4 = vand.u32 4294901760, %v6855_v44 }
 0x10f   :  { %13898 = vmatprep.subr.bf16.mxu1 %v15406_v38  ;;  %v6150_v17 = vsub.f32 %v15591_v51, %v6149_v29  ;;  %v7482_v18 = vrot.slane %v7436_v54, 5  ;;  %v7440_v44 = vld [vmem:[#allocation2 + $0x7a] sm:$0x1] }
 0x111   :  { %12980 = vmatmul.mubr.f32.vlgmr.msra.gmra.mrb[6].mxu1 %v15388_v57  ;;  %13856 = vmatpush3.bf16.msra.mxu0 %v15411_v33  ;;  %v6143_v33 = vsub.f32 %v15589_v32, %v6142_v3  ;;  %v6151_v50 = vand.u32 4294901760, %v6150_v17  ;;  %v8217_v17 = vrot.slane %v8172_v34, 6  ;;  %v8175_v34 = vld [vmem:[#allocation2 + $0x5b] sm:$0x1] }
 0x112   :  { %13900 = vmatpush3.bf16.msra.mxu1 %v15406_v38  ;;  %12990 = vmatprep.mubr.f32.mxu1 %v15338_v30  ;;  %v6873_v30 = vsub.f32 %v15596_v43, %v6872_v7  ;;  %v6879_v38 = vand.u32 4294901760, %v15629_v42 }
 0x113   :  { %13902 = vmatprep.subr.bf16.mxu1 %v15442_v6  ;;  %13906 = vmatprep.subr.bf16.mxu0 %v15625_v52  ;;  %v6144_v37 = vand.u32 4294901760, %v6143_v33  ;;  %v8173_v33 = vld [vmem:[#allocation2 + $0x3b] sm:$0x1] }
 0x114   :  { %12925 = vmatmul.mubr.f32.vlgmr.msra.gmra.mrb[6].mxu0 %v15349_v10  ;;  %v6867_v10 = vand.u32 4294901760, %v6866_v39  ;;  %v6874_v26 = vand.u32 4294901760, %v6873_v30  ;;  %v6880_v56 = vsub.f32 %v15629_v42, %v6879_v38  ;;  %v6888_v39 = vand.u32 4294901760, %v6887_v55  ;;  %v7438_v30 = vld [vmem:[#allocation2 + $0x5a] sm:$0x1] }
 0x115   :  { %13908 = vmatpush3.bf16.msra.mxu0 %v15625_v52  ;;  %13001 = vmatprep.mubr.f32.mxu0 %v6109_v63  ;;  %v13917_v63 = vpack.c.bf16 %v6151_v50, %v6144_v37  ;;  %v7441_v37 = vld [vmem:[#allocation2 + $0x8a] sm:$0x1]  ;;  %v8174_v50 = vld [vmem:[#allocation2 + $0x4b] sm:$0x1]  ;;  %v8219_v54 = vrot.slane %v8173_v33, 5  ;;  %v7486_v55 = vrot.slane %v7438_v30, 3 }
 0x116   :  { %13904 = vmatpush3.bf16.msra.mxu1 %v15442_v6  ;;  %13910 = vmatprep.subr.bf16.mxu0 %v15636_v45  ;;  %v7479_v6 = vsel %vm100_vm0, %v7478_v5, %v7433_v24  ;;  %v13961_v49 = vpack.c.bf16 %v6874_v26, %v6867_v10  ;;  %v8216_v5 = vsel %vm100_vm0, %v8215_v20, %v8170_v12  ;;  %v7492_v24 = vrot.slane %v7442_v31, 7  ;;  %v8180_v12 = vld [vmem:[#allocation2 + $0xab] sm:$0x1]  ;;  %v7445_v33 = vld [vmem:[#allocation2 + $0xca] sm:$0x1] }
 0x117   :  { %13954 = vmatprep.subr.bf16.mxu1 %v15634_v0  ;;  %v7481_v13 = vsel %vm103_vm1, %v7480_v46, %v7479_v6  ;;  %v13921_v10 = vpack.c.bf16 %v15559_v23, %v15546_v14  ;;  %v8179_v46 = vld [vmem:[#allocation2 + $0x9b] sm:$0x1]  ;;  %v7444_v6 = vld [vmem:[#allocation2 + $0xba] sm:$0x1]  ;;  %v8178_v30 = vld [vmem:[#allocation2 + $0x8b] sm:$0x1]  ;;  %v13941_v23 = vpack.c.bf16 %v6149_v29, %v6142_v3 }
 0x118   :  { %v7493_v20 = vsel %vm100_vm0, %v7492_v24, %v7441_v37  ;;  %v8229_v31 = vrot.slane %v8179_v46, 7  ;;  %v8181_v24 = vld [vmem:[#allocation2 + $0xbb] sm:$0x1] }
 0x119   :  { %12991 = vmatmul.mubr.f32.vlgmr.msra.gmra.mrb[6].mxu1 %v15388_v57  ;;  %13912 = vmatpush3.bf16.msra.mxu0 %v15636_v45  ;;  %v6881_v57 = vand.u32 4294901760, %v6880_v56  ;;  %v7439_v56 = vld [vmem:[#allocation2 + $0x6a] sm:$0x1] }
 0x11a   :  { %13956 = vmatpush3.bf16.msra.mxu1 %v15634_v0  ;;  %13067 = vmatprep.mubr.f32.mxu1 %v6846_v22  ;;  %v7483_v22 = vsel %vm106_vm2, %v7482_v18, %v7481_v13  ;;  %v8221_v18 = vrot.slane %v8174_v50, 4  ;;  %v13925_v13 = vpack.c.bf16 %v15591_v51, %v15589_v32  ;;  %v7446_v50 = vld [vmem:[#allocation2 + $0xda] sm:$0x1]  ;;  %v8230_v46 = vsel %vm100_vm0, %v8229_v31, %v8178_v30 }
 0x11b   :  { %13958 = vmatprep.subr.bf16.mxu1 %v15670_v41  ;;  %13914 = vmatprep.subr.bf16.mxu0 %v13913_v62  ;;  %v13965_v26 = vpack.c.bf16 %v6888_v39, %v6881_v57  ;;  %v7485_v8 = vsel %vm109_vm3, %v7484_v28, %v7483_v22  ;;  %v7488_v57 = vrot.slane %v7439_v56, 2  ;;  %v7490_v22 = vrot.slane %v7440_v44, 1  ;;  %v7448_v30 = vld [vmem:[#allocation2 + $0xfa] sm:$0x1] }
 0x11c   :  { %13002 = vmatmul.mubr.f32.vlgmr.msra.gmra.mrb[8].mxu0 %v6119_v25  ;;  %v7494_v25 = vrot.slane %v7443_v53, 6  ;;  %v7487_v28 = vsel %vm112_vm4, %v7486_v55, %v7485_v8  ;;  %v8223_v53 = vrot.slane %v8175_v34, 3  ;;  %v8233_v8 = vrot.slane %v8181_v24, 5 }
 0x11d   :  { %13916 = vmatpush3.bf16.msra.mxu0 %v13913_v62  ;;  %13012 = vmatprep.mubr.f32.mxu0 %v15520_v60  ;;  %v8218_v62 = vsel %vm103_vm1, %v8217_v17, %v8216_v5  ;;  %v7496_v17 = vrot.slane %v7444_v6, 5  ;;  %v8176_v5 = vld [vmem:[#allocation2 + $0x6b] sm:$0x1]  ;;  %v7489_v56 = vsel %vm115_vm5, %v7488_v57, %v7487_v28  ;;  %v7500_v44 = vrot.slane %v7446_v50, 3  ;;  %v8183_v57 = vld [vmem:[#allocation2 + $0xdb] sm:$0x1] }
 0x11e   :  { %13960 = vmatpush3.bf16.msra.mxu1 %v15670_v41  ;;  %13918 = vmatprep.subr.bf16.mxu0 %v13917_v63  ;;  %v8220_v39 = vsel %vm106_vm2, %v8219_v54, %v8218_v62  ;;  %v7498_v54 = vrot.slane %v7445_v33, 4  ;;  %v13973_v62 = vpack.c.bf16 %v15632_v21, %v15629_v42  ;;  %v8225_v6 = vrot.slane %v8176_v5, 2  ;;  %v15723_v33 = vld [vmem:[#allocation5 + $0x140] sm:$0xff] }
 0x11f   :  { %13962 = vmatprep.subr.bf16.mxu1 %v13961_v49  ;;  %v8222_v37 = vsel %vm109_vm3, %v8221_v18, %v8220_v39  ;;  %v8237_v24 = vrot.slane %v8183_v57, 3 }
 0x120   :  { %v8224_v34 = vsel %vm112_vm4, %v8223_v53, %v8222_v37  ;;  %v8184_v53 = vld [vmem:[#allocation2 + $0xeb] sm:$0x1]  ;;  %v7504_v37 = vrot.slane %v7448_v30, 1 }
 0x121   :  { %13068 = vmatmul.mubr.f32.vlgmr.msra.gmra.mrb[8].mxu1 %v6856_v4  ;;  %13920 = vmatpush3.bf16.msra.mxu0 %v13917_v63  ;;  %v13969_v63 = vpack.c.bf16 %v15596_v43, %v15586_v9  ;;  %v8231_v4 = vrot.slane %v8180_v12, 6 }
 0x122   :  { %13964 = vmatpush3.bf16.msra.mxu1 %v13961_v49  ;;  %13078 = vmatprep.mubr.f32.mxu1 %v15553_v1  ;;  %v7495_v49 = vsel %vm103_vm1, %v7494_v25, %v7493_v20  ;;  %v8182_v25 = vld [vmem:[#allocation2 + $0xcb] sm:$0x1]  ;;  %v7447_v20 = vld [vmem:[#allocation2 + $0xea] sm:$0x1] }
 0x123   :  { %13966 = vmatprep.subr.bf16.mxu1 %v13965_v26  ;;  %13922 = vmatprep.subr.bf16.mxu0 %v13921_v10  ;;  %v7497_v55 = vsel %vm106_vm2, %v7496_v17, %v7495_v49  ;;  %v8232_v18 = vsel %vm103_vm1, %v8231_v4, %v8230_v46  ;;  %v8235_v39 = vrot.slane %v8182_v25, 4  ;;  %v8226_v17 = vsel %vm115_vm5, %v8225_v6, %v8224_v34  ;;  %v15728_v49 = vld [vmem:[#allocation5 + $0x148] sm:$0xff]  ;;  %v7453_v25 = vld [vmem:[#allocation5 + $0x158] sm:$0xff] }
 0x124   :  { %13013 = vmatmul.mubr.f32.vlgmr.msra.gmra.mrb[8].mxu0 %v15573_v61  ;;  %v7499_v12 = vsel %vm109_vm3, %v7498_v54, %v7497_v55  ;;  %v7502_v28 = vrot.slane %v7447_v20, 2  ;;  %v7511_v4 = vand.u32 4294901760, %v15723_v33  ;;  %v8239_v55 = vrot.slane %v8184_v53, 2  ;;  %v8189_v20 = vld [vmem:[#allocation5 + $0x170] sm:$0xff] }
 0x125   :  { %13924 = vmatpush3.bf16.msra.mxu0 %v13921_v10  ;;  %13023 = vmatprep.mubr.f32.mxu0 %v15551_v15  ;;  %v8177_v10 = vld [vmem:[#allocation2 + $0x7b] sm:$0x1]  ;;  %v7501_v5 = vsel %vm112_vm4, %v7500_v44, %v7499_v12  ;;  %v13937_v15 = vpack.c.bf16 %v6135_v19, %v6128_v27  ;;  %v8188_v27 = vld [vmem:[#allocation5 + $0x168] sm:$0xff]  ;;  %v7520_v34 = vand.u32 4294901760, %v7453_v25  ;;  %v8254_v21 = vand.u32 4294901760, %v8189_v20 }
 0x126   :  { %13968 = vmatpush3.bf16.msra.mxu1 %v13965_v26  ;;  %13926 = vmatprep.subr.bf16.mxu0 %v13925_v13  ;;  %v7491_v26 = vsel %vm118_vm6, %v7490_v22, %v7489_v56  ;;  %v8227_v31 = vrot.slane %v8177_v10, 1  ;;  %v7503_v46 = vsel %vm115_vm5, %v7502_v28, %v7501_v5  ;;  %v8185_v56 = vld [vmem:[#allocation2 + $0xfb] sm:$0x1]  ;;  %v15761_v6 = vsub.f32 %v15723_v33, %v7511_v4 }
 0x127   :  { %13970 = vmatprep.subr.bf16.mxu1 %v13969_v63  ;;  %v7505_v19 = vsel %vm118_vm6, %v7504_v37, %v7503_v46  ;;  %v8241_v3 = vrot.slane %v8185_v56, 1  ;;  %v8251_v43 = vand.u32 4294901760, %v8188_v27  ;;  %v8190_v44 = vld [vmem:[#allocation5 + $0x178] sm:$0xff]  ;;  %v9646_v46 = vld [vmem:[#allocation2 + $0x2d] sm:$0x1] }
 0x128   :  { %v8228_v22 = vsel %vm118_vm6, %v8227_v31, %v8226_v17 }
 0x129   :  { %13079 = vmatmul.mubr.f32.vlgmr.msra.gmra.mrb[8].mxu1 %v15614_v47  ;;  %13928 = vmatpush3.bf16.msra.mxu0 %v13925_v13  ;;  %v8234_v13 = vsel %vm106_vm2, %v8233_v8, %v8232_v18  ;;  %v8243_v10 = vsel %vm134_vm7, %v8228_v22, 0  ;;  %v8909_v22 = vld [vmem:[#allocation2 + $0x2c] sm:$0x1] }
 0x12a   :  { %13972 = vmatpush3.bf16.msra.mxu1 %v13969_v63  ;;  %13089 = vmatprep.mubr.f32.mxu1 %v15580_v11  ;;  %v7506_v63 = vsel %vm134_vm7, %v7491_v26, 0  ;;  %v8236_v50 = vsel %vm109_vm3, %v8235_v39, %v8234_v13  ;;  %v13985_v11 = vpack.c.bf16 %v6872_v7, %v6865_v2  ;;  %v15776_v8 = vand.u32 4294901760, %v8243_v10 }
 0x12b   :  { %13974 = vmatprep.subr.bf16.mxu1 %v13973_v62  ;;  %13930 = vmatprep.subr.bf16.mxu0 %v15625_v52  ;;  %v15745_v54 = vand.u32 4294901760, %v7506_v63  ;;  %v8238_v14 = vsel %vm112_vm4, %v8237_v24, %v8236_v50  ;;  %v7508_v2 = vsel %vm134_vm7, %v7505_v19, 0  ;;  %v9644_v19 = vld [vmem:[#allocation2 + $0xd] sm:$0x1] }
 0x12c   :  { %13024 = vmatmul.mubr.f32.vlgmr.msra.gmra.mrb[8].mxu0 %v15600_v59  ;;  %v8240_v9 = vsel %vm115_vm5, %v8239_v55, %v8238_v14  ;;  %v7602_v59 = vand.u32 4294901760, %v15761_v6  ;;  %v15791_v31 = vsub.f32 %v8243_v10, %v15776_v8  ;;  %v15793_v57 = vand.u32 4294901760, %v7508_v2  ;;  %v8907_v10 = vld [vmem:[#allocation2 + $0xc] sm:$0x1] }
 0x12d   :  { %13932 = vmatpush3.bf16.msra.mxu0 %v15625_v52  ;;  %13034 = vmatprep.mubr.f32.mxu0 %v6107_v58  ;;  %v7514_v58 = vand.u32 4294901760, %v15728_v49  ;;  %v15769_v32 = vsub.f32 %v7506_v63, %v15745_v54  ;;  %v8242_v12 = vsel %vm118_vm6, %v8241_v3, %v8240_v9  ;;  %v9645_v63 = vld [vmem:[#allocation2 + $0x1d] sm:$0x1]  ;;  %v8910_v3 = vld [vmem:[#allocation2 + $0x3c] sm:$0x1] }
 0x12e   :  { %13976 = vmatpush3.bf16.msra.mxu1 %v13973_v62  ;;  %13934 = vmatprep.subr.bf16.mxu0 %v15636_v45  ;;  %v8187_v62 = vld [vmem:[#allocation5 + $0x160] sm:$0xff]  ;;  %v7603_v33 = vsub.f32 %v15761_v6, %v7602_v59  ;;  %v8245_v17 = vsel %vm134_vm7, %v8242_v12, 0  ;;  %v8318_v53 = vand.u32 4294901760, %v15791_v31  ;;  %v15828_v24 = vsub.f32 %v7508_v2, %v15793_v57 }
 0x12f   :  { %13978 = vmatprep.subr.bf16.mxu1 %v15634_v0  ;;  %v15772_v51 = vsub.f32 %v15728_v49, %v7514_v58  ;;  %v8248_v29 = vand.u32 4294901760, %v8187_v62  ;;  %v7581_v18 = vand.u32 4294901760, %v15769_v32  ;;  %v15799_v42 = vpack.c.bf16 %v7514_v58, %v7511_v4 }
 0x130   :  { %v15835_v50 = vand.u32 4294901760, %v8245_v17  ;;  %v7604_v56 = vand.u32 4294901760, %v7603_v33 }
 0x131   :  { %13090 = vmatmul.mubr.f32.vlgmr.msra.gmra.mrb[8].mxu1 %v15645_v16  ;;  %13936 = vmatpush3.bf16.msra.mxu0 %v15636_v45  ;;  %v7609_v26 = vand.u32 4294901760, %v15772_v51  ;;  %v15795_v39 = vsub.f32 %v8187_v62, %v8248_v29  ;;  %v15810_v16 = vsub.f32 %v7453_v25, %v7520_v34  ;;  %v15813_v28 = vpack.c.bf16 %v8251_v43, %v8248_v29 }
 0x132   :  { %13980 = vmatpush3.bf16.msra.mxu1 %v15634_v0  ;;  %13100 = vmatprep.mubr.f32.mxu1 %v6844_v40  ;;  %v7452_v40 = vld [vmem:[#allocation5 + $0x150] sm:$0xff]  ;;  %v15818_v13 = vsub.f32 %v15769_v32, %v7581_v18  ;;  %v8954_v29 = vrot.slane %v8909_v22, 6  ;;  %v15861_v9 = vsub.f32 %v8245_v17, %v15835_v50  ;;  %v8915_v22 = vld [vmem:[#allocation2 + $0x8c] sm:$0x1] }
 0x133   :  { %13982 = vmatprep.subr.bf16.mxu1 %v15670_v41  ;;  %13938 = vmatprep.subr.bf16.mxu0 %v13937_v15  ;;  %v7517_v7 = vand.u32 4294901760, %v7452_v40  ;;  %v7610_v49 = vsub.f32 %v15772_v51, %v7609_v26  ;;  %v8339_v4 = vand.u32 4294901760, %v15795_v39  ;;  %v7623_v62 = vand.u32 4294901760, %v15810_v16 }
 0x134   :  { %13035 = vmatmul.mubr.f32.vlgmr.msra.gmra.mrb[8].mxu0 %v6117_v48  ;;  %v13989_v48 = vpack.c.bf16 %v6886_v36, %v6879_v38  ;;  %v8257_v38 = vand.u32 4294901760, %v8190_v44  ;;  %v15801_v36 = vsub.f32 %v8188_v27, %v8251_v43 }
 0x135   :  { %13940 = vmatpush3.bf16.msra.mxu0 %v13937_v15  ;;  %13045 = vmatprep.mubr.f32.mxu0 %v15520_v60  ;;  %v15808_v30 = vsub.f32 %v7452_v40, %v7517_v7  ;;  %v15824_v5 = vpack.c.bf16 %v7520_v34, %v7517_v7  ;;  %v7611_v14 = vand.u32 4294901760, %v7610_v49  ;;  %v17067_v40 = vand.u32 4294901760, %v15828_v24  ;;  %v9647_v7 = vld [vmem:[#allocation2 + $0x3d] sm:$0x1]  ;;  %v9648_v49 = vld [vmem:[#allocation2 + $0x4d] sm:$0x1] }
 0x136   :  { %13984 = vmatpush3.bf16.msra.mxu1 %v15670_v41  ;;  %13942 = vmatprep.subr.bf16.mxu0 %v13941_v23  ;;  %v15833_v37 = vpack.c.bf16 %v8257_v38, %v8254_v21  ;;  %v8346_v15 = vand.u32 4294901760, %v15801_v36  ;;  %v15845_v27 = vsub.f32 %v8190_v44, %v8257_v38  ;;  %v15856_v25 = vsub.f32 %v15795_v39, %v8339_v4 }
 0x137   :  { %13986 = vmatprep.subr.bf16.mxu1 %v13985_v11  ;;  %v7616_v55 = vand.u32 4294901760, %v15808_v30  ;;  %v9691_v34 = vrot.slane %v9646_v46, 6  ;;  %v15878_v12 = vpack.c.bf16 %v7611_v14, %v7604_v56  ;;  %v8956_v38 = vrot.slane %v8910_v3, 5  ;;  %v8917_v56 = vld [vmem:[#allocation2 + $0xac] sm:$0x1] }
 0x138   :  { %v8347_v43 = vsub.f32 %v15801_v36, %v8346_v15  ;;  %v7592_v17 = vsub.f32 %v15828_v24, %v17067_v40  ;;  %v9653_v3 = vld [vmem:[#allocation2 + $0x9d] sm:$0x1]  ;;  %v14591_v40 = vmov 1966171168  }
 0x139   :  { %13101 = vmatmul.mubr.f32.vlgmr.msra.gmra.mrb[8].mxu1 %v6854_v35  ;;  %13944 = vmatpush3.bf16.msra.mxu0 %v13941_v23  ;;  %v8908_v35 = vld [vmem:[#allocation2 + $0x1c] sm:$0x1]  ;;  %v15843_v23 = vsub.f32 %v8189_v20, %v8254_v21  ;;  %v7617_v20 = vsub.f32 %v15808_v30, %v7616_v55  ;;  %v8911_v21 = vld [vmem:[#allocation2 + $0x4c] sm:$0x1] }
 0x13a   :  { %13988 = vmatpush3.bf16.msra.mxu1 %v13985_v11  ;;  %13111 = vmatprep.mubr.f32.mxu1 %v15553_v1  ;;  %v8952_v58 = vrot.slane %v8908_v35, 7  ;;  %v15850_v11 = vsub.f32 %v15791_v31, %v8318_v53  ;;  %v15887_v35 = vld [vmem:[#allocation2 + $0x5c] sm:$0x1] }
 0x13b   :  { %13990 = vmatprep.subr.bf16.mxu1 %v13989_v48  ;;  %13946 = vmatprep.subr.bf16.mxu0 %v15625_v52  ;;  %v7618_v14 = vand.u32 4294901760, %v7617_v20  ;;  %v8968_v20 = vrot.slane %v8917_v56, 6  ;;  %v9652_v56 = vld [vmem:[#allocation2 + $0x8d] sm:$0x1] }
 0x13c   :  { %13046 = vmatmul.mubr.f32.vlgmr.msra.gmra.mrb[8].mxu0 %v15573_v61  ;;  %v8953_v2 = vsel %vm100_vm0, %v8952_v58, %v8907_v10  ;;  %v8320_v33 = vand.u32 4294901760, %v15850_v11  ;;  %v17066_v58 = vand.u32 4294901760, %v15861_v9  ;;  %v8958_v11 = vrot.slane %v8911_v21, 4 }
 0x13d   :  { %13948 = vmatpush3.bf16.msra.mxu0 %v15625_v52  ;;  %13056 = vmatprep.mubr.f32.mxu0 %v15520_v60  ;;  %v9689_v52 = vrot.slane %v9645_v63, 7  ;;  %v7583_v60 = vand.u32 4294901760, %v15818_v13  ;;  %v8955_v13 = vsel %vm103_vm1, %v8954_v29, %v8953_v2  ;;  %v9693_v63 = vrot.slane %v9647_v7, 5 }
 0x13e   :  { %13992 = vmatpush3.bf16.msra.mxu1 %v13989_v48  ;;  %13950 = vmatprep.subr.bf16.mxu0 %v15636_v45  ;;  %v8916_v48 = vld [vmem:[#allocation2 + $0x9c] sm:$0x1]  ;;  %v8957_v29 = vsel %vm106_vm2, %v8956_v38, %v8955_v13  ;;  %v9695_v2 = vrot.slane %v9648_v49, 4  ;;  %v7593_v7 = vand.u32 4294901760, %v7592_v17  ;;  %v9654_v38 = vld [vmem:[#allocation2 + $0xad] sm:$0x1] }
 0x13f   :  { %13994 = vmatprep.subr.bf16.mxu1 %v15634_v0  ;;  %v9690_v44 = vsel %vm100_vm0, %v9689_v52, %v9644_v19  ;;  %v8966_v10 = vrot.slane %v8916_v48, 7  ;;  %v8348_v52 = vand.u32 4294901760, %v8347_v43  ;;  %v8960_v48 = vrot.slane %v15887_v35, 3 }
 0x140   :  { %v9692_v46 = vsel %vm103_vm1, %v9691_v34, %v9690_v44  ;;  %v8918_v34 = vld [vmem:[#allocation2 + $0xbc] sm:$0x1]  ;;  %v8913_v44 = vld [vmem:[#allocation2 + $0x6c] sm:$0x1]  ;;  %v9703_v13 = vrot.slane %v9653_v3, 7 }
 0x141   :  { %13112 = vmatmul.mubr.f32.vlgmr.msra.gmra.mrb[8].mxu1 %v15614_v47  ;;  %13952 = vmatpush3.bf16.msra.mxu0 %v15636_v45  ;;  %v7624_v45 = vsub.f32 %v15810_v16, %v7623_v62  ;;  %v9694_v43 = vsel %vm106_vm2, %v9693_v63, %v9692_v46  ;;  %v8967_v21 = vsel %vm100_vm0, %v8966_v10, %v8915_v22  ;;  %v9650_v63 = vld [vmem:[#allocation2 + $0x6d] sm:$0x1]  ;;  %v8919_v10 = vld [vmem:[#allocation2 + $0xcc] sm:$0x1]  ;;  %v8970_v3 = vrot.slane %v8918_v34, 5 }
 0x142   :  { %13996 = vmatpush3.bf16.msra.mxu1 %v15634_v0  ;;  %13122 = vmatprep.mubr.f32.mxu1 %v15553_v1  ;;  %v8353_v0 = vand.u32 4294901760, %v15843_v23  ;;  %v8360_v1 = vand.u32 4294901760, %v15845_v27  ;;  %v9696_v22 = vsel %vm109_vm3, %v9695_v2, %v9694_v43  ;;  %v9704_v2 = vsel %vm100_vm0, %v9703_v13, %v9652_v56  ;;  %v8920_v34 = vld [vmem:[#allocation2 + $0xdc] sm:$0x1]  ;;  %v8921_v56 = vld [vmem:[#allocation2 + $0xec] sm:$0x1] }
 0x143   :  { %13998 = vmatprep.subr.bf16.mxu1 %v15670_v41  ;;  %14002 = vmatprep.subr.bf16.mxu0 %v15799_v42  ;;  %v7625_v19 = vand.u32 4294901760, %v7624_v45  ;;  %v8329_v45 = vsub.f32 %v15861_v9, %v17066_v58 }
 0x144   :  { %13057 = vmatmul.mubr.f32.vlgmr.msra.gmra.mrb[8].mxu0 %v15573_v61  ;;  %v8341_v61 = vand.u32 4294901760, %v15856_v25  ;;  %v8361_v25 = vsub.f32 %v15845_v27, %v8360_v1 }
 0x145   :  { %14004 = vmatpush3.bf16.msra.mxu0 %v15799_v42  ;;  %13133 = vmatprep.mubr.f32.mxu0 %v7583_v60  ;;  %v8354_v60 = vsub.f32 %v15843_v23, %v8353_v0  ;;  %v14013_v49 = vpack.c.bf16 %v7625_v19, %v7618_v14  ;;  %v8969_v14 = vsel %vm103_vm1, %v8968_v20, %v8967_v21  ;;  %v9655_v19 = vld [vmem:[#allocation2 + $0xbd] sm:$0x1]  ;;  %v8972_v20 = vrot.slane %v8919_v10, 4 }
 0x146   :  { %14000 = vmatpush3.bf16.msra.mxu1 %v15670_v41  ;;  %14006 = vmatprep.subr.bf16.mxu0 %v15824_v5  ;;  %v9649_v41 = vld [vmem:[#allocation2 + $0x5d] sm:$0x1]  ;;  %v14057_v17 = vpack.c.bf16 %v8348_v52, %v8341_v61  ;;  %v8362_v35 = vand.u32 4294901760, %v8361_v25  ;;  %v8914_v61 = vld [vmem:[#allocation2 + $0x7c] sm:$0x1]  ;;  %v8962_v52 = vrot.slane %v8913_v44, 2  ;;  %v8971_v44 = vsel %vm106_vm2, %v8970_v3, %v8969_v14 }
 0x147   :  { %14050 = vmatprep.subr.bf16.mxu1 %v15813_v28  ;;  %v9697_v46 = vrot.slane %v9649_v41, 3  ;;  %v8355_v58 = vand.u32 4294901760, %v8354_v60  ;;  %v9651_v25 = vld [vmem:[#allocation2 + $0x7d] sm:$0x1]  ;;  %v9699_v41 = vrot.slane %v9650_v63, 2  ;;  %v9707_v21 = vrot.slane %v9655_v19, 5 }
 0x148   :  { %v9701_v13 = vrot.slane %v9651_v25, 1  ;;  %v8973_v10 = vsel %vm109_vm3, %v8972_v20, %v8971_v44  ;;  %v9657_v3 = vld [vmem:[#allocation2 + $0xdd] sm:$0x1]  ;;  %v15946_v14 = vpack.c.bf16 %v15845_v27, %v15843_v23  ;;  %v15954_v25 = vpack.c.bf16 %v7609_v26, %v7602_v59 }
 0x149   :  { %13123 = vmatmul.mubr.f32.vlgmr.msra.gmra.mrb[8].mxu1 %v15614_v47  ;;  %14008 = vmatpush3.bf16.msra.mxu0 %v15824_v5  ;;  %v8959_v47 = vsel %vm109_vm3, %v8958_v11, %v8957_v29  ;;  %v9705_v11 = vrot.slane %v9654_v38, 6  ;;  %v8330_v29 = vand.u32 4294901760, %v8329_v45  ;;  %v9698_v43 = vsel %vm112_vm4, %v9697_v46, %v9696_v22 }
 0x14a   :  { %14052 = vmatpush3.bf16.msra.mxu1 %v15813_v28  ;;  %13199 = vmatprep.mubr.f32.mxu1 %v8320_v33  ;;  %v15917_v33 = vunpack.c.l.s4 %v14591_v40  ;;  %v8961_v60 = vsel %vm112_vm4, %v8960_v48, %v8959_v47  ;;  %v14017_v40 = vpack.c.bf16 %v15772_v51, %v15761_v6  ;;  %v8964_v45 = vrot.slane %v8914_v61, 1  ;;  %v9656_v48 = vld [vmem:[#allocation2 + $0xcd] sm:$0x1]  ;;  %v15968_v51 = vld [vmem:[#allocation5 + $0x1a0] sm:$0xff] }
 0x14b   :  { %14054 = vmatprep.subr.bf16.mxu1 %v15833_v37  ;;  %14010 = vmatprep.subr.bf16.mxu0 %v15878_v12  ;;  %v8963_v38 = vsel %vm115_vm5, %v8962_v52, %v8961_v60  ;;  %v9706_v47 = vsel %vm103_vm1, %v9705_v11, %v9704_v2  ;;  %v9700_v46 = vsel %vm115_vm5, %v9699_v41, %v9698_v43  ;;  %v8974_v22 = vrot.slane %v8920_v34, 3  ;;  %v8922_v11 = vld [vmem:[#allocation2 + $0xfc] sm:$0x1]  ;;  %v11873_v60 = vld [vmem:[#allocation7] ss:$0 sm:$0xff]  ;;  %v15962_v2 = vld [vmem:[#allocation5 + $0x188] sm:$0xff] }
 0x14c   :  { %13134 = vmatmul.mubr.f32.vlgmr.msra.gmra.mrb[10].mxu0 %v7593_v7  ;;  %v673_v7 = vlaneseq  ;;  %v672_v63 = vunpack.c.0.s8 %v15917_v33  ;;  %v9709_v61 = vrot.slane %v9656_v48, 4  ;;  %v15939_v33 = vld [vmem:[#allocation5 + $0x180] sm:$0xff]  ;;  %v8965_v52 = vsel %vm118_vm6, %v8964_v45, %v8963_v38  ;;  %v15991_v48 = vld [vmem:[#allocation2 + $0xfd] sm:$0x1] }
 0x14d   :  { %14012 = vmatpush3.bf16.msra.mxu0 %v15878_v12  ;;  %13144 = vmatprep.mubr.f32.mxu0 %v15745_v54  ;;  %v14061_v12 = vpack.c.bf16 %v8362_v35, %v8355_v58  ;;  %v14021_v35 = vpack.c.bf16 %v15810_v16, %v15808_v30  ;;  %v9702_v19 = vsel %vm118_vm6, %v9701_v13, %v9700_v46  ;;  %v9711_v43 = vrot.slane %v9657_v3, 3 }
 0x14e   :  { %14056 = vmatpush3.bf16.msra.mxu1 %v15833_v37  ;;  %14014 = vmatprep.subr.bf16.mxu0 %v14013_v49  ;;  %v674_v58 = vshrl.u32 %v673_v7, 7  ;;  %v15960_v41 = vpack.c.bf16 %v8346_v15, %v8339_v4  ;;  %v8975_v7 = vsel %vm112_vm4, %v8974_v22, %v8973_v10  ;;  %v8985_v6 = vand.u32 4294901760, %v15939_v33 }
 0x14f   :  { %14058 = vmatprep.subr.bf16.mxu1 %v14057_v17  ;;  %v15971_v59 = vsel %vm134_vm7, %v8965_v52, 0  ;;  %v15984_v4 = vpack.c.bf16 %v8360_v1, %v8353_v0  ;;  %v15987_v15 = vsel %vm134_vm7, %v9702_v19, 0  ;;  %v8978_v20 = vrot.slane %v8922_v11, 1 }
 0x150   :  { %v15965_v34 = vsub.s32 %v672_v63, %v674_v58  ;;  %v8988_v44 = vand.u32 4294901760, %v15962_v2  ;;  %v15996_v23 = vand.u32 4294901760, %v15971_v59  ;;  %v16004_v38 = vand.u32 4294901760, %v15987_v15 }
 0x151   :  { %13200 = vmatmul.mubr.f32.vlgmr.msra.gmra.mrb[10].mxu1 %v8330_v29  ;;  %14016 = vmatpush3.bf16.msra.mxu0 %v14013_v49  ;;  %v14065_v49 = vpack.c.bf16 %v15801_v36, %v15795_v39  ;;  %v8976_v29 = vrot.slane %v8921_v56, 2  ;;  %v15978_v36 = vpack.c.bf16 %v7623_v62, %v7616_v55  ;;  %v9722_v62 = vand.u32 4294901760, %v15968_v51 }
 0x152   :  { %14060 = vmatpush3.bf16.msra.mxu1 %v14057_v17  ;;  %13210 = vmatprep.mubr.f32.mxu1 %v15776_v8  ;;  %v9708_v17 = vsel %vm106_vm2, %v9707_v21, %v9706_v47  ;;  %v16000_v21 = vld [vmem:[#allocation7 + $0x1] ss:$0 sm:$0xff]  ;;  %v16009_v13 = vsub.f32 %v15939_v33, %v8985_v6  ;;  %v9715_v56 = vrot.slane %v15991_v48, 1  ;;  %v16107_v48 = vsub.f32 %v15987_v15, %v16004_v38 }
 0x153   :  { %14062 = vmatprep.subr.bf16.mxu1 %v14061_v12  ;;  %14018 = vmatprep.subr.bf16.mxu0 %v14017_v40  ;;  %v9710_v26 = vsel %vm109_vm3, %v9709_v61, %v9708_v17  ;;  %v8977_v30 = vsel %vm115_vm5, %v8976_v29, %v8975_v7  ;;  %v17071_v15 = vand.u32 4294901760, %v15861_v9 }
 0x154   :  { %13145 = vmatmul.mubr.f32.vlgmr.msra.gmra.mrb[10].mxu0 %v15793_v57  ;;  %v9712_v27 = vsel %vm112_vm4, %v9711_v43, %v9710_v26  ;;  %v16015_v46 = vsel %vm118_vm6, %v8978_v20, %v8977_v30 }
 0x155   :  { %14020 = vmatpush3.bf16.msra.mxu0 %v14017_v40  ;;  %13155 = vmatprep.mubr.f32.mxu0 %v15769_v32  ;;  %v9658_v40 = vld [vmem:[#allocation2 + $0xed] sm:$0x1] }
 0x156   :  { %14064 = vmatpush3.bf16.msra.mxu1 %v14061_v12  ;;  %14022 = vmatprep.subr.bf16.mxu0 %v14021_v35  ;;  %v9713_v16 = vrot.slane %v9658_v40, 2 }
 0x157   :  { %14066 = vmatprep.subr.bf16.mxu1 %v14065_v49  ;;  %v12530_v39 = vpop.f32.mrb[0].mxu0 }
 0x158   :  { %v14289_v12 = vadd.f32 %v12530_v39, %v11873_v60  ;;  %v657_v45 = vpop.f32.mrb[1].mxu0  ;;  %v16022_v3 = vsel %vm115_vm5, %v9713_v16, %v9712_v27 }
 0x159   :  { %13211 = vmatmul.mubr.f32.vlgmr.msra.gmra.mrb[10].mxu1 %v15835_v50  ;;  %v14290_v55 = vadd.f32 %v11873_v60, %v657_v45  ;;  %14024 = vmatpush3.bf16.msra.mxu0 %v14021_v35 }
 0x15a   :  { %14068 = vmatpush3.bf16.msra.mxu1 %v14065_v49  ;;  %v718_v0 = vcombine.high %v14289_v12, %v14289_v12  ;;  %v725_v1 = vrot.slane %v14289_v12, %v15965_v34  ;;  %13221 = vmatprep.mubr.f32.mxu1 %v15791_v31  ;;  %v9716_v31 = vsel %vm118_vm6, %v9715_v56, %v16022_v3 }
 0x15b   :  { %14070 = vmatprep.subr.bf16.mxu1 %v15946_v14  ;;  %v669_v47 = vcombine.high %v14290_v55, %v14290_v55  ;;  %v676_v63 = vrot.slane %v14290_v55, %v15965_v34  ;;  %14026 = vmatprep.subr.bf16.mxu0 %v15799_v42 }
 0x15c   :  { %v732_v22 = vrot.slane %v718_v0, %v15965_v34  ;;  %v733_v58 = vcombine.high %v725_v1, %v725_v1  ;;  %v741_v35 = vrot.slane %v725_v1, %v15965_v34  ;;  %v12596_v10 = vpop.f32.mrb[0].mxu1  ;;  %13156 = vmatmul.mubr.f32.vlgmr.msra.gmra.mrb[10].mxu0 %v15828_v24  ;;  %v16047_v0 = vld [vmem:[#allocation5 + $0x1a8] sm:$0xff] }
 0x15d   :  { %v14291_v61 = vadd.f32 %v12596_v10, %v16000_v21  ;;  %v683_v49 = vrot.slane %v669_v47, %v15965_v34  ;;  %v684_v52 = vcombine.high %v676_v63, %v676_v63  ;;  %v692_v17 = vrot.slane %v676_v63, %v15965_v34  ;;  %v1395_v19 = vpop.f32.mrb[1].mxu1  ;;  %14028 = vmatpush3.bf16.msra.mxu0 %v15799_v42 }
 0x15e   :  { %v734_v11 = vcombine.high %v732_v22, %v732_v22  ;;  %v748_v29 = vrot.slane %v732_v22, %v15965_v34  ;;  %v755_v60 = vrot.slane %v733_v58, %v15965_v34  ;;  %v763_v7 = vcombine.high %v741_v35, %v741_v35  ;;  %792 = vst.msk [vmem:[#allocation8 + $0x80] sm:$0x1] %vm783_vm8, %v741_v35  ;;  %v16054_v58 = vld [vmem:[#allocation5 + $0x190] sm:$0xff] }
 0x15f   :  { %14072 = vmatpush3.bf16.msra.mxu1 %v15946_v14  ;;  %v1456_v40 = vcombine.high %v14291_v61, %v14291_v61  ;;  %v1463_v43 = vrot.slane %v14291_v61, %v15965_v34  ;;  %v685_v26 = vcombine.high %v683_v49, %v683_v49  ;;  %v699_v39 = vrot.slane %v683_v49, %v15965_v34 }
 0x160   :  { %784 = vst.msk [vmem:[#allocation8] sm:$0x1] %vm783_vm8, %v692_v17  ;;  %14074 = vmatprep.subr.bf16.mxu1 %v15813_v28  ;;  %v762_v20 = vrot.slane %v734_v11, %v15965_v34  ;;  %v764_v12 = vcombine.high %v748_v29, %v748_v29  ;;  %v765_v45 = vcombine.high %v755_v60, %v755_v60  ;;  %793 = vst.msk [vmem:[#allocation8 + $0x90] sm:$0x1] %vm783_vm8, %v755_v60 }
 0x161   :  { %794 = vst.msk [vmem:[#allocation8 + $0xa0] sm:$0x1] %vm783_vm8, %v763_v7  ;;  %796 = vst.msk [vmem:[#allocation8 + $0xc0] sm:$0x1] %vm783_vm8, %v748_v29  ;;  %v706_v14 = vrot.slane %v684_v52, %v15965_v34  ;;  %14030 = vmatprep.subr.bf16.mxu0 %v15824_v5  ;;  %v1470_v30 = vrot.slane %v1456_v40, %v15965_v34  ;;  %v1471_v16 = vcombine.high %v1463_v43, %v1463_v43  ;;  %v16070_v29 = vld [vmem:[#allocation5 + $0x198] sm:$0xff] }
 0x162   :  { %v1479_v55 = vrot.slane %v1463_v43, %v15965_v34  ;;  %v713_v27 = vrot.slane %v685_v26, %v15965_v34  ;;  %788 = vst.msk [vmem:[#allocation8 + $0x40] sm:$0x1] %vm783_vm8, %v699_v39  ;;  %13222 = vmatmul.mubr.f32.vlgmr.msra.gmra.mrb[10].mxu1 %v15861_v9  ;;  %v766_v1 = vcombine.high %v762_v20, %v762_v20  ;;  %795 = vst.msk [vmem:[#allocation8 + $0xb0] sm:$0x1] %vm783_vm8, %v765_v45 }
 0x163   :  { %797 = vst.msk [vmem:[#allocation8 + $0xd0] sm:$0x1] %vm783_vm8, %v762_v20  ;;  %798 = vst.msk [vmem:[#allocation8 + $0xe0] sm:$0x1] %vm783_vm8, %v764_v12  ;;  %v714_v47 = vcombine.high %v692_v17, %v692_v17  ;;  %v715_v63 = vcombine.high %v699_v39, %v699_v39  ;;  %v716_v22 = vcombine.high %v706_v14, %v706_v14  ;;  %14076 = vmatpush3.bf16.msra.mxu1 %v15813_v28  ;;  %v16115_v12 = vld [vmem:[#allocation5 + $0x1b8] sm:$0xff] }
 0x164   :  { %785 = vst.msk [vmem:[#allocation8 + $0x10] sm:$0x1] %vm783_vm8, %v706_v14  ;;  %v1472_v35 = vcombine.high %v1470_v30, %v1470_v30  ;;  %v1486_v10 = vrot.slane %v1470_v30, %v15965_v34  ;;  %v1493_v61 = vrot.slane %v1471_v16, %v15965_v34  ;;  %v1501_v49 = vcombine.high %v1479_v55, %v1479_v55 }
 0x165   :  { %1529 = vst.msk [vmem:[#allocation8 + $0x81] sm:$0x1] %vm783_vm8, %v1479_v55  ;;  %789 = vst.msk [vmem:[#allocation8 + $0x50] sm:$0x1] %vm783_vm8, %v713_v27  ;;  %14078 = vmatprep.subr.bf16.mxu1 %v15833_v37  ;;  %v717_v52 = vcombine.high %v713_v27, %v713_v27  ;;  %v14292_v17 = vadd.f32 %v16000_v21, %v1395_v19  ;;  %14032 = vmatpush3.bf16.msra.mxu0 %v15824_v5  ;;  %v9725_v11 = vand.u32 4294901760, %v16047_v0 }
 0x166   :  { %799 = vst.msk [vmem:[#allocation8 + $0xf0] sm:$0x1] %vm783_vm8, %v766_v1  ;;  %786 = vst.msk [vmem:[#allocation8 + $0x20] sm:$0x1] %vm783_vm8, %v714_v47  ;;  %13166 = vmatprep.mubr.f32.mxu0 %v7581_v18  ;;  %v16075_v60 = vsub.f32 %v15962_v2, %v8988_v44  ;;  %v1500_v7 = vrot.slane %v1472_v35, %v15965_v34  ;;  %v1502_v40 = vcombine.high %v1486_v10, %v1486_v10 }
 0x167   :  { %787 = vst.msk [vmem:[#allocation8 + $0x30] sm:$0x1] %vm783_vm8, %v716_v22  ;;  %790 = vst.msk [vmem:[#allocation8 + $0x60] sm:$0x1] %vm783_vm8, %v715_v63  ;;  %v1503_v43 = vcombine.high %v1493_v61, %v1493_v61  ;;  %13232 = vmatprep.mubr.f32.mxu1 %v8318_v53  ;;  %14034 = vmatprep.subr.bf16.mxu0 %v15954_v25  ;;  %v8991_v32 = vand.u32 4294901760, %v16054_v58  ;;  %v1407_v18 = vcombine.high %v14292_v17, %v14292_v17 }
 0x168   :  { %1530 = vst.msk [vmem:[#allocation8 + $0x91] sm:$0x1] %vm783_vm8, %v1493_v61  ;;  %1531 = vst.msk [vmem:[#allocation8 + $0xa1] sm:$0x1] %vm783_vm8, %v1501_v49  ;;  %v1414_v21 = vrot.slane %v14292_v17, %v15965_v34  ;;  %14080 = vmatpush3.bf16.msra.mxu1 %v15833_v37  ;;  %v8982_v19 = vsel %vm134_vm7, %v16015_v46, 0  ;;  %v1504_v53 = vcombine.high %v1500_v7, %v1500_v7  ;;  %v17070_v26 = vand.u32 4294901760, %v15828_v24 }
 0x169   :  { %1533 = vst.msk [vmem:[#allocation8 + $0xc1] sm:$0x1] %vm783_vm8, %v1486_v10  ;;  %791 = vst.msk [vmem:[#allocation8 + $0x70] sm:$0x1] %vm783_vm8, %v717_v52  ;;  %14082 = vmatprep.subr.bf16.mxu1 %v15960_v41  ;;  %v8994_v39 = vand.u32 4294901760, %v16070_v29  ;;  %v16103_v46 = vsub.f32 %v15971_v59, %v15996_v23  ;;  %v1421_v56 = vrot.slane %v1407_v18, %v15965_v34  ;;  %v16113_v24 = vld [vmem:[#allocation5 + $0x1b0] sm:$0xff] }
 0x16a   :  { %1532 = vst.msk [vmem:[#allocation8 + $0xb1] sm:$0x1] %vm783_vm8, %v1503_v43  ;;  %1534 = vst.msk [vmem:[#allocation8 + $0xd1] sm:$0x1] %vm783_vm8, %v1500_v7  ;;  %13167 = vmatmul.mubr.f32.vlgmr.msra.gmra.mrb[10].mxu0 %v17070_v26  ;;  %v1422_v3 = vcombine.high %v1414_v21, %v1414_v21  ;;  %v1430_v20 = vrot.slane %v1414_v21, %v15965_v34  ;;  %v9076_v59 = vand.u32 4294901760, %v16009_v13  ;;  %v16122_v45 = vand.u32 4294901760, %v8982_v19 }
 0x16b   :  { %1535 = vst.msk [vmem:[#allocation8 + $0xe1] sm:$0x1] %vm783_vm8, %v1502_v40  ;;  %14036 = vmatpush3.bf16.msra.mxu0 %v15954_v25  ;;  %13177 = vmatprep.mubr.f32.mxu0 %v15745_v54  ;;  %1536 = vst.msk [vmem:[#allocation8 + $0xf1] sm:$0x1] %vm783_vm8, %v1504_v53  ;;  %v9719_v14 = vsel %vm134_vm7, %v9716_v31, 0  ;;  %v16128_v25 = vsub.f32 %v15968_v51, %v9722_v62  ;;  %v16133_v30 = vsub.f32 %v16047_v0, %v9725_v11 }
 0x16c   :  { %13233 = vmatmul.mubr.f32.vlgmr.msra.gmra.mrb[10].mxu1 %v17071_v15  ;;  %14038 = vmatprep.subr.bf16.mxu0 %v15978_v36  ;;  %v1423_v16 = vcombine.high %v1421_v56, %v1421_v56  ;;  %v1437_v9 = vrot.slane %v1421_v56, %v15965_v34  ;;  %v1444_v55 = vrot.slane %v1422_v3, %v15965_v34  ;;  %v9728_v1 = vand.u32 4294901760, %v16113_v24  ;;  %v10382_v56 = vld [vmem:[#allocation2 + $0x1e] sm:$0x1]  ;;  %v10383_v3 = vld [vmem:[#allocation2 + $0x2e] sm:$0x1] }
 0x16d   :  { %v1452_v27 = vcombine.high %v1430_v20, %v1430_v20  ;;  %1521 = vst.msk [vmem:[#allocation8 + $0x1] sm:$0x1] %vm783_vm8, %v1430_v20  ;;  %14084 = vmatpush3.bf16.msra.mxu1 %v15960_v41  ;;  %13243 = vmatprep.mubr.f32.mxu1 %v15776_v8  ;;  %v9731_v47 = vand.u32 4294901760, %v16115_v12  ;;  %v9055_v63 = vand.u32 4294901760, %v16103_v46  ;;  %v9083_v22 = vand.u32 4294901760, %v16075_v60 }
 0x16e   :  { %14086 = vmatprep.subr.bf16.mxu1 %v15984_v4  ;;  %v1451_v35 = vrot.slane %v1423_v16, %v15965_v34  ;;  %v1453_v10 = vcombine.high %v1437_v9, %v1437_v9  ;;  %v1454_v61 = vcombine.high %v1444_v55, %v1444_v55  ;;  %1522 = vst.msk [vmem:[#allocation8 + $0x11] sm:$0x1] %vm783_vm8, %v1444_v55  ;;  %1525 = vst.msk [vmem:[#allocation8 + $0x41] sm:$0x1] %vm783_vm8, %v1437_v9  ;;  %v10381_v9 = vld [vmem:[#allocation2 + $0xe] sm:$0x1] }
 0x16f   :  { %1523 = vst.msk [vmem:[#allocation8 + $0x21] sm:$0x1] %vm783_vm8, %v1452_v27  ;;  %14040 = vmatpush3.bf16.msra.mxu0 %v15978_v36  ;;  %v16153_v41 = vsub.f32 %v16054_v58, %v8991_v32  ;;  %v9792_v49 = vand.u32 4294901760, %v16107_v48  ;;  %v16160_v52 = vsub.f32 %v16009_v13, %v9076_v59  ;;  %v16162_v17 = vand.u32 4294901760, %v9719_v14  ;;  %v11120_v55 = vld [vmem:[#allocation2 + $0x2f] sm:$0x1] }
 0x170   :  { %14042 = vmatprep.subr.bf16.mxu0 %v15799_v42  ;;  %v16167_v36 = vsub.f32 %v16070_v29, %v8994_v39  ;;  %v1455_v7 = vcombine.high %v1451_v35, %v1451_v35  ;;  %1524 = vst.msk [vmem:[#allocation8 + $0x31] sm:$0x1] %vm783_vm8, %v1454_v61  ;;  %1526 = vst.msk [vmem:[#allocation8 + $0x51] sm:$0x1] %vm783_vm8, %v1451_v35  ;;  %v16174_v40 = vsub.f32 %v8982_v19, %v16122_v45  ;;  %v10390_v35 = vld [vmem:[#allocation2 + $0x9e] sm:$0x1] }
 0x171   :  { %1527 = vst.msk [vmem:[#allocation8 + $0x61] sm:$0x1] %vm783_vm8, %v1453_v10  ;;  %14088 = vmatpush3.bf16.msra.mxu1 %v15984_v4  ;;  %v9813_v43 = vand.u32 4294901760, %v16128_v25  ;;  %v9820_v18 = vand.u32 4294901760, %v16133_v30  ;;  %v16183_v21 = vsub.f32 %v16075_v60, %v9083_v22  ;;  %v16188_v4 = vsub.f32 %v16113_v24, %v9728_v1 }
 0x172   :  { %13178 = vmatmul.mubr.f32.vlgmr.msra.gmra.mrb[10].mxu0 %v15793_v57  ;;  %14090 = vmatprep.subr.bf16.mxu1 %v15813_v28  ;;  %v16193_v19 = vsub.f32 %v16115_v12, %v9731_v47  ;;  %1528 = vst.msk [vmem:[#allocation8 + $0x71] sm:$0x1] %vm783_vm8, %v1455_v7  ;;  %v16202_v31 = vpack.c.bf16 %v8988_v44, %v8985_v6  ;;  %v9090_v26 = vand.u32 4294901760, %v16153_v41  ;;  %v9097_v2 = vand.u32 4294901760, %v16167_v36  ;;  %v11119_v6 = vld [vmem:[#allocation2 + $0x1f] sm:$0x1] }
 0x173   :  { %14044 = vmatpush3.bf16.msra.mxu0 %v15799_v42  ;;  %13188 = vmatprep.mubr.f32.mxu0 %v15745_v54  ;;  %v9056_v53 = vsub.f32 %v16103_v46, %v9055_v63  ;;  %v16214_v54 = vpack.c.bf16 %v9725_v11, %v9722_v62  ;;  %v9793_v42 = vsub.f32 %v16107_v48, %v9792_v49  ;;  %v17069_v51 = vand.u32 4294901760, %v16174_v40  ;;  %v10384_v12 = vld [vmem:[#allocation2 + $0x3e] sm:$0x1]  ;;  %v11121_v7 = vld [vmem:[#allocation2 + $0x3f] sm:$0x1] }
 0x174   :  { %13244 = vmatmul.mubr.f32.vlgmr.msra.gmra.mrb[10].mxu1 %v15835_v50  ;;  %14046 = vmatprep.subr.bf16.mxu0 %v15824_v5  ;;  %v16220_v33 = vsub.f32 %v9719_v14, %v16162_v17  ;;  %v9078_v44 = vand.u32 4294901760, %v16160_v52  ;;  %v9814_v62 = vsub.f32 %v16128_v25, %v9813_v43  ;;  %v9821_v0 = vsub.f32 %v16133_v30, %v9820_v18 }
 0x175   :  { %14092 = vmatpush3.bf16.msra.mxu1 %v15813_v28  ;;  %13254 = vmatprep.mubr.f32.mxu1 %v15776_v8  ;;  %v9085_v11 = vand.u32 4294901760, %v16183_v21  ;;  %v9827_v28 = vand.u32 4294901760, %v16188_v4  ;;  %v9834_v8 = vand.u32 4294901760, %v16193_v19  ;;  %v10426_v20 = vrot.slane %v10382_v56, 7  ;;  %v10385_v56 = vld [vmem:[#allocation2 + $0x4e] sm:$0x1] }
 0x176   :  { %14094 = vmatprep.subr.bf16.mxu1 %v15833_v37  ;;  %v16242_v15 = vpack.c.bf16 %v8994_v39, %v8991_v32  ;;  %v9057_v14 = vand.u32 4294901760, %v9056_v53  ;;  %v9091_v16 = vsub.f32 %v16153_v41, %v9090_v26  ;;  %v11163_v27 = vrot.slane %v11119_v6, 7  ;;  %v11118_v39 = vld [vmem:[#allocation2 + $0xf] sm:$0x1] }
 0x177   :  { %14048 = vmatpush3.bf16.msra.mxu0 %v15824_v5  ;;  %v16252_v5 = vpack.c.bf16 %v9731_v47, %v9728_v1  ;;  %v9794_v58 = vand.u32 4294901760, %v9793_v42  ;;  %v17068_v29 = vand.u32 4294901760, %v16220_v33  ;;  %v9098_v32 = vsub.f32 %v16167_v36, %v9097_v2  ;;  %v10391_v42 = vld [vmem:[#allocation2 + $0xae] sm:$0x1] }
 0x178   :  { %14098 = vmatprep.subr.bf16.mxu0 %v16202_v31  ;;  %v9066_v10 = vsub.f32 %v16174_v40, %v17069_v51  ;;  %v9815_v24 = vand.u32 4294901760, %v9814_v62  ;;  %v9822_v61 = vand.u32 4294901760, %v9821_v0  ;;  %v10428_v1 = vrot.slane %v10383_v3, 6 }
 0x179   :  { %14096 = vmatpush3.bf16.msra.mxu1 %v15833_v37  ;;  %v9828_v47 = vsub.f32 %v16188_v4, %v9827_v28  ;;  %v9835_v37 = vsub.f32 %v16193_v19, %v9834_v8  ;;  %v10427_v52 = vsel %vm100_vm0, %v10426_v20, %v10381_v9  ;;  %v11165_v21 = vrot.slane %v11120_v55, 6  ;;  %v10389_v9 = vld [vmem:[#allocation2 + $0x8e] sm:$0x1]  ;;  %v11127_v55 = vld [vmem:[#allocation2 + $0x9f] sm:$0x1] }
 0x17a   :  { %13189 = vmatmul.mubr.f32.vlgmr.msra.gmra.mrb[10].mxu0 %v15793_v57  ;;  %14146 = vmatprep.subr.bf16.mxu1 %v16214_v54  ;;  %v9092_v53 = vand.u32 4294901760, %v9091_v16  ;;  %v11164_v57 = vsel %vm100_vm0, %v11163_v27, %v11118_v39  ;;  %v10440_v6 = vrot.slane %v10390_v35, 7  ;;  %v14105_v62 = vpack.c.bf16 %v9085_v11, %v9078_v44  ;;  %v11122_v39 = vld [vmem:[#allocation2 + $0x4f] sm:$0x1] }
 0x17b   :  { %14100 = vmatpush3.bf16.msra.mxu0 %v16202_v31  ;;  %13265 = vmatprep.mubr.f32.mxu0 %v9057_v14  ;;  %v9803_v0 = vsub.f32 %v16220_v33, %v17068_v29  ;;  %v9099_v3 = vand.u32 4294901760, %v9098_v32  ;;  %v10430_v20 = vrot.slane %v10384_v12, 5  ;;  %v9067_v14 = vand.u32 4294901760, %v9066_v10  ;;  %v10392_v29 = vld [vmem:[#allocation2 + $0xbe] sm:$0x1] }
 0x17c   :  { %13255 = vmatmul.mubr.f32.vlgmr.msra.gmra.mrb[10].mxu1 %v15835_v50  ;;  %14102 = vmatprep.subr.bf16.mxu0 %v16242_v15  ;;  %v14153_v16 = vpack.c.bf16 %v9822_v61, %v9815_v24  ;;  %v10429_v27 = vsel %vm103_vm1, %v10428_v1, %v10427_v52  ;;  %v11167_v50 = vrot.slane %v11121_v7, 5  ;;  %v9829_v44 = vand.u32 4294901760, %v9828_v47  ;;  %v10386_v12 = vld [vmem:[#allocation2 + $0x5e] sm:$0x1]  ;;  %v11128_v10 = vld [vmem:[#allocation2 + $0xaf] sm:$0x1] }
 0x17d   :  { %14148 = vmatpush3.bf16.msra.mxu1 %v16214_v54  ;;  %13331 = vmatprep.mubr.f32.mxu1 %v9794_v58  ;;  %v9836_v11 = vand.u32 4294901760, %v9835_v37  ;;  %v11166_v35 = vsel %vm103_vm1, %v11165_v21, %v11164_v57  ;;  %v10442_v32 = vrot.slane %v10391_v42, 6  ;;  %v10432_v51 = vrot.slane %v10385_v56, 4  ;;  %v11123_v7 = vld [vmem:[#allocation2 + $0x5f] sm:$0x1] }
 0x17e   :  { %14150 = vmatprep.subr.bf16.mxu1 %v16252_v5  ;;  %v10441_v58 = vsel %vm100_vm0, %v10440_v6, %v10389_v9  ;;  %v11177_v24 = vrot.slane %v11127_v55, 7  ;;  %v9804_v61 = vand.u32 4294901760, %v9803_v0  ;;  %v14109_v1 = vpack.c.bf16 %v9099_v3, %v9092_v53  ;;  %v11126_v37 = vld [vmem:[#allocation2 + $0x8f] sm:$0x1]  ;;  %v10393_v57 = vld [vmem:[#allocation2 + $0xce] sm:$0x1] }
 0x17f   :  { %14104 = vmatpush3.bf16.msra.mxu0 %v16242_v15  ;;  %v10431_v52 = vsel %vm106_vm2, %v10430_v20, %v10429_v27  ;;  %v11169_v47 = vrot.slane %v11122_v39, 4  ;;  %v11168_v21 = vsel %vm106_vm2, %v11167_v50, %v11166_v35  ;;  %v10444_v42 = vrot.slane %v10392_v29, 5  ;;  %v10387_v6 = vld [vmem:[#allocation2 + $0x6e] sm:$0x1]  ;;  %v11129_v0 = vld [vmem:[#allocation2 + $0xbf] sm:$0x1] }
 0x180   :  { %14106 = vmatprep.subr.bf16.mxu0 %v14105_v62  ;;  %v14157_v56 = vpack.c.bf16 %v9836_v11, %v9829_v44  ;;  %v10434_v9 = vrot.slane %v10386_v12, 3  ;;  %v10443_v55 = vsel %vm103_vm1, %v10442_v32, %v10441_v58  ;;  %v11179_v53 = vrot.slane %v11128_v10, 6  ;;  %v11124_v20 = vld [vmem:[#allocation2 + $0x6f] sm:$0x1]  ;;  %v10388_v11 = vld [vmem:[#allocation2 + $0x7e] sm:$0x1] }
 0x181   :  { %14152 = vmatpush3.bf16.msra.mxu1 %v16252_v5  ;;  %v10433_v3 = vsel %vm109_vm3, %v10432_v51, %v10431_v52  ;;  %v11171_v27 = vrot.slane %v11123_v7, 3  ;;  %v11178_v39 = vsel %vm100_vm0, %v11177_v24, %v11126_v37  ;;  %v14113_v29 = vpack.c.bf16 %v16075_v60, %v16009_v13  ;;  %v11130_v12 = vld [vmem:[#allocation2 + $0xcf] sm:$0x1]  ;;  %v11875_v10 = vld [vmem:[#allocation7 + $0x2] ss:$0 sm:$0xff] }
 0x182   :  { %13266 = vmatmul.mubr.f32.vlgmr.msra.gmra.mrb[12].mxu0 %v9067_v14  ;;  %14154 = vmatprep.subr.bf16.mxu1 %v14153_v16  ;;  %v16295_v14 = vpack.c.bf16 %v16133_v30, %v16128_v25  ;;  %v11170_v50 = vsel %vm109_vm3, %v11169_v47, %v11168_v21  ;;  %v10446_v44 = vrot.slane %v10393_v57, 4  ;;  %v16301_v51 = vpack.c.bf16 %v16167_v36, %v16153_v41  ;;  %v16322_v21 = vld [vmem:[#allocation5 + $0x1c0] sm:$0xff]  ;;  %v16324_v57 = vld [vmem:[#allocation5 + $0x1c8] sm:$0xff]  ;;  %v11131_v30 = vld [vmem:[#allocation2 + $0xdf] sm:$0x1] }
 0x183   :  { %14108 = vmatpush3.bf16.msra.mxu0 %v14105_v62  ;;  %13276 = vmatprep.mubr.f32.mxu0 %v15996_v23  ;;  %v10394_v62 = vld [vmem:[#allocation2 + $0xde] sm:$0x1]  ;;  %v10436_v35 = vrot.slane %v10387_v6, 2  ;;  %v10445_v32 = vsel %vm106_vm2, %v10444_v42, %v10443_v55  ;;  %v11181_v58 = vrot.slane %v11129_v0, 5  ;;  %v16306_v24 = vpack.c.bf16 %v16193_v19, %v16188_v4  ;;  %v10395_v6 = vld [vmem:[#allocation2 + $0xee] sm:$0x1] }
 0x184   :  { %13332 = vmatmul.mubr.f32.vlgmr.msra.gmra.mrb[12].mxu1 %v9804_v61  ;;  %14110 = vmatprep.subr.bf16.mxu0 %v14109_v1  ;;  %v11125_v61 = vld [vmem:[#allocation2 + $0x7f] sm:$0x1]  ;;  %v11173_v52 = vrot.slane %v11124_v20, 2  ;;  %v11180_v7 = vsel %vm103_vm1, %v11179_v53, %v11178_v39  ;;  %v16314_v47 = vpack.c.bf16 %v9083_v22, %v9076_v59  ;;  %v16320_v37 = vpack.c.bf16 %v9820_v18, %v9813_v43  ;;  %v16333_v60 = vld [vmem:[#allocation5 + $0x1e0] sm:$0xff]  ;;  %v16342_v18 = vld [vmem:[#allocation5 + $0x1e8] sm:$0xff] }
 0x185   :  { %14156 = vmatpush3.bf16.msra.mxu1 %v14153_v16  ;;  %13342 = vmatprep.mubr.f32.mxu1 %v16004_v38  ;;  %v10435_v16 = vsel %vm112_vm4, %v10434_v9, %v10433_v3  ;;  %v11172_v42 = vsel %vm112_vm4, %v11171_v27, %v11170_v50  ;;  %v16331_v13 = vpack.c.bf16 %v9097_v2, %v9090_v26  ;;  %v10438_v59 = vrot.slane %v10388_v11, 1  ;;  %v16356_v3 = vld [vmem:[#allocation2 + $0xef] sm:$0x1]  ;;  %v16367_v11 = vld [vmem:[#allocation7 + $0x3] ss:$0 sm:$0xff] }
 0x186   :  { %14158 = vmatprep.subr.bf16.mxu1 %v14157_v56  ;;  %v10447_v25 = vsel %vm109_vm3, %v10446_v44, %v10445_v32  ;;  %v11183_v22 = vrot.slane %v11130_v12, 4  ;;  %v16340_v43 = vpack.c.bf16 %v9834_v8, %v9827_v28  ;;  %v10437_v41 = vsel %vm115_vm5, %v10436_v35, %v10435_v16  ;;  %v16351_v28 = vld [vmem:[#allocation2 + $0xfe] sm:$0x1] }
 0x187   :  { %14112 = vmatpush3.bf16.msra.mxu0 %v14109_v1  ;;  %v10448_v1 = vrot.slane %v10394_v62, 3  ;;  %v11175_v36 = vrot.slane %v11125_v61, 1  ;;  %v11182_v26 = vsel %vm106_vm2, %v11181_v58, %v11180_v7  ;;  %v12662_v2 = vpop.f32.mrb[2].mxu0  ;;  %v10462_v4 = vand.u32 4294901760, %v16324_v57 }
 0x188   :  { %14114 = vmatprep.subr.bf16.mxu0 %v14113_v29  ;;  %v11174_v19 = vsel %vm115_vm5, %v11173_v52, %v11172_v42  ;;  %v10450_v8 = vrot.slane %v10395_v6, 2  ;;  %v14293_v9 = vadd.f32 %v12662_v2, %v11875_v10  ;;  %v2132_v55 = vpop.f32.mrb[3].mxu0  ;;  %v11196_v0 = vand.u32 4294901760, %v16333_v60 }
 0x189   :  { %14160 = vmatpush3.bf16.msra.mxu1 %v14157_v56  ;;  %v10459_v56 = vand.u32 4294901760, %v16322_v21  ;;  %v10449_v53 = vsel %vm112_vm4, %v10448_v1, %v10447_v25  ;;  %v11185_v20 = vrot.slane %v11131_v30, 3  ;;  %v14294_v27 = vadd.f32 %v11875_v10, %v2132_v55 }
 0x18a   :  { %13277 = vmatmul.mubr.f32.vlgmr.msra.gmra.mrb[12].mxu0 %v16122_v45  ;;  %14162 = vmatprep.subr.bf16.mxu1 %v16295_v14  ;;  %v11199_v39 = vand.u32 4294901760, %v16342_v18  ;;  %v11184_v50 = vsel %vm109_vm3, %v11183_v22, %v11182_v26  ;;  %v2193_v62 = vcombine.high %v14293_v9, %v14293_v9  ;;  %v2200_v44 = vrot.slane %v14293_v9, %v15965_v34 }
 0x18b   :  { %14116 = vmatpush3.bf16.msra.mxu0 %v14113_v29  ;;  %13287 = vmatprep.mubr.f32.mxu0 %v16103_v46  ;;  %v16362_v29 = vsel %vm118_vm6, %v10438_v59, %v10437_v41  ;;  %v16371_v35 = vsel %vm118_vm6, %v11175_v36, %v11174_v19  ;;  %v10452_v32 = vrot.slane %v16351_v28, 1  ;;  %v2144_v12 = vcombine.high %v14294_v27, %v14294_v27 }
 0x18c   :  { %13343 = vmatmul.mubr.f32.vlgmr.msra.gmra.mrb[12].mxu1 %v16162_v17  ;;  %14118 = vmatprep.subr.bf16.mxu0 %v16301_v51  ;;  %v2151_v58 = vrot.slane %v14294_v27, %v15965_v34  ;;  %v16377_v10 = vsel %vm115_vm5, %v10450_v8, %v10449_v53  ;;  %v2207_v16 = vrot.slane %v2193_v62, %v15965_v34  ;;  %v12728_v7 = vpop.f32.mrb[2].mxu1 }
 0x18d   :  { %14164 = vmatpush3.bf16.msra.mxu1 %v16295_v14  ;;  %13353 = vmatprep.mubr.f32.mxu1 %v16107_v48  ;;  %v11187_v14 = vrot.slane %v16356_v3, 2  ;;  %v2208_v61 = vcombine.high %v2200_v44, %v2200_v44  ;;  %v2216_v52 = vrot.slane %v2200_v44, %v15965_v34  ;;  %v11186_v42 = vsel %vm112_vm4, %v11185_v20, %v11184_v50  ;;  %v2869_v30 = vpop.f32.mrb[3].mxu1  ;;  %v11133_v44 = vld [vmem:[#allocation2 + $0xff] sm:$0x1] }
 0x18e   :  { %14166 = vmatprep.subr.bf16.mxu1 %v16306_v24  ;;  %v14295_v6 = vadd.f32 %v12728_v7, %v16367_v11  ;;  %v2158_v1 = vrot.slane %v2144_v12, %v15965_v34  ;;  %v2159_v59 = vcombine.high %v2151_v58, %v2151_v58  ;;  %v2167_v25 = vrot.slane %v2151_v58, %v15965_v34 }
 0x18f   :  { %14120 = vmatpush3.bf16.msra.mxu0 %v16301_v51  ;;  %v2209_v22 = vcombine.high %v2207_v16, %v2207_v16  ;;  %v2223_v41 = vrot.slane %v2207_v16, %v15965_v34  ;;  %v2230_v36 = vrot.slane %v2208_v61, %v15965_v34  ;;  %v2238_v26 = vcombine.high %v2216_v52, %v2216_v52 }
 0x190   :  { %14122 = vmatprep.subr.bf16.mxu0 %v16202_v31  ;;  %2266 = vst.msk [vmem:[#allocation8 + $0x82] sm:$0x1] %vm783_vm8, %v2216_v52  ;;  %v2930_v51 = vcombine.high %v14295_v6, %v14295_v6  ;;  %v2937_v2 = vrot.slane %v14295_v6, %v15965_v34  ;;  %v2160_v19 = vcombine.high %v2158_v1, %v2158_v1  ;;  %2258 = vst.msk [vmem:[#allocation8 + $0x2] sm:$0x1] %vm783_vm8, %v2167_v25  ;;  %v16412_v52 = vld [vmem:[#allocation5 + $0x1d0] sm:$0xff] }
 0x191   :  { %14168 = vmatpush3.bf16.msra.mxu1 %v16306_v24  ;;  %v2174_v8 = vrot.slane %v2158_v1, %v15965_v34  ;;  %v2237_v9 = vrot.slane %v2209_v22, %v15965_v34  ;;  %v2239_v55 = vcombine.high %v2223_v41, %v2223_v41  ;;  %v2240_v53 = vcombine.high %v2230_v36, %v2230_v36 }
 0x192   :  { %13288 = vmatmul.mubr.f32.vlgmr.msra.gmra.mrb[12].mxu0 %v16174_v40  ;;  %2267 = vst.msk [vmem:[#allocation8 + $0x92] sm:$0x1] %vm783_vm8, %v2230_v36  ;;  %2268 = vst.msk [vmem:[#allocation8 + $0xa2] sm:$0x1] %vm783_vm8, %v2238_v26  ;;  %v2181_v24 = vrot.slane %v2159_v59, %v15965_v34  ;;  %14170 = vmatprep.subr.bf16.mxu1 %v16214_v54  ;;  %v2944_v20 = vrot.slane %v2930_v51, %v15965_v34  ;;  %v16428_v36 = vld [vmem:[#allocation5 + $0x1f0] sm:$0xff]  ;;  %v11189_v51 = vrot.slane %v11133_v44, 1 }
 0x193   :  { %2270 = vst.msk [vmem:[#allocation8 + $0xc2] sm:$0x1] %vm783_vm8, %v2223_v41  ;;  %v2945_v27 = vcombine.high %v2937_v2, %v2937_v2  ;;  %v2953_v50 = vrot.slane %v2937_v2, %v15965_v34  ;;  %v2188_v62 = vrot.slane %v2160_v19, %v15965_v34  ;;  %2262 = vst.msk [vmem:[#allocation8 + $0x42] sm:$0x1] %vm783_vm8, %v2174_v8  ;;  %14124 = vmatpush3.bf16.msra.mxu0 %v16202_v31  ;;  %v16426_v41 = vld [vmem:[#allocation5 + $0x1d8] sm:$0xff] }
 0x194   :  { %13354 = vmatmul.mubr.f32.vlgmr.msra.gmra.mrb[12].mxu1 %v16220_v33  ;;  %v2241_v12 = vcombine.high %v2237_v9, %v2237_v9  ;;  %2269 = vst.msk [vmem:[#allocation8 + $0xb2] sm:$0x1] %vm783_vm8, %v2240_v53  ;;  %2271 = vst.msk [vmem:[#allocation8 + $0xd2] sm:$0x1] %vm783_vm8, %v2237_v9  ;;  %v2189_v58 = vcombine.high %v2167_v25, %v2167_v25  ;;  %v2190_v16 = vcombine.high %v2174_v8, %v2174_v8 }
 0x195   :  { %2272 = vst.msk [vmem:[#allocation8 + $0xe2] sm:$0x1] %vm783_vm8, %v2239_v55  ;;  %v2191_v61 = vcombine.high %v2181_v24, %v2181_v24  ;;  %2259 = vst.msk [vmem:[#allocation8 + $0x12] sm:$0x1] %vm783_vm8, %v2181_v24  ;;  %v2946_v7 = vcombine.high %v2944_v20, %v2944_v20  ;;  %v2960_v6 = vrot.slane %v2944_v20, %v15965_v34  ;;  %14172 = vmatpush3.bf16.msra.mxu1 %v16214_v54  ;;  %v16467_v24 = vld [vmem:[#allocation5 + $0x1f8] sm:$0xff] }
 0x196   :  { %v2967_v1 = vrot.slane %v2945_v27, %v15965_v34  ;;  %v2975_v59 = vcombine.high %v2953_v50, %v2953_v50  ;;  %3003 = vst.msk [vmem:[#allocation8 + $0x83] sm:$0x1] %vm783_vm8, %v2953_v50  ;;  %2263 = vst.msk [vmem:[#allocation8 + $0x52] sm:$0x1] %vm783_vm8, %v2188_v62  ;;  %v2192_v25 = vcombine.high %v2188_v62, %v2188_v62  ;;  %14126 = vmatprep.subr.bf16.mxu0 %v16242_v15 }
 0x197   :  { %2273 = vst.msk [vmem:[#allocation8 + $0xf2] sm:$0x1] %vm783_vm8, %v2241_v12  ;;  %2260 = vst.msk [vmem:[#allocation8 + $0x22] sm:$0x1] %vm783_vm8, %v2189_v58  ;;  %v14296_v22 = vadd.f32 %v16367_v11, %v2869_v30  ;;  %14174 = vmatprep.subr.bf16.mxu1 %v16252_v5  ;;  %v11188_v26 = vsel %vm115_vm5, %v11187_v14, %v11186_v42  ;;  %v2974_v2 = vrot.slane %v2946_v7, %v15965_v34 }
 0x198   :  { %2261 = vst.msk [vmem:[#allocation8 + $0x32] sm:$0x1] %vm783_vm8, %v2191_v61  ;;  %2264 = vst.msk [vmem:[#allocation8 + $0x62] sm:$0x1] %vm783_vm8, %v2190_v16  ;;  %v2976_v19 = vcombine.high %v2960_v6, %v2960_v6  ;;  %v2977_v8 = vcombine.high %v2967_v1, %v2967_v1  ;;  %13298 = vmatprep.mubr.f32.mxu0 %v9055_v63  ;;  %13364 = vmatprep.mubr.f32.mxu1 %v9792_v49  ;;  %v10465_v3 = vand.u32 4294901760, %v16412_v52 }
 0x199   :  { %3004 = vst.msk [vmem:[#allocation8 + $0x93] sm:$0x1] %vm783_vm8, %v2967_v1  ;;  %3005 = vst.msk [vmem:[#allocation8 + $0xa3] sm:$0x1] %vm783_vm8, %v2975_v59  ;;  %v2881_v11 = vcombine.high %v14296_v22, %v14296_v22  ;;  %v2888_v14 = vrot.slane %v14296_v22, %v15965_v34  ;;  %14128 = vmatpush3.bf16.msra.mxu0 %v16242_v15  ;;  %v10454_v42 = vsel %vm134_vm7, %v16362_v29, 0  ;;  %v11191_v30 = vsel %vm134_vm7, %v16371_v35, 0 }
 0x19a   :  { %3007 = vst.msk [vmem:[#allocation8 + $0xc3] sm:$0x1] %vm783_vm8, %v2960_v6  ;;  %2265 = vst.msk [vmem:[#allocation8 + $0x72] sm:$0x1] %vm783_vm8, %v2192_v25  ;;  %v2978_v46 = vcombine.high %v2974_v2, %v2974_v2  ;;  %14176 = vmatpush3.bf16.msra.mxu1 %v16252_v5  ;;  %14130 = vmatprep.subr.bf16.mxu0 %v16314_v47  ;;  %v10468_v48 = vand.u32 4294901760, %v16426_v41  ;;  %v11202_v63 = vand.u32 4294901760, %v16428_v36 }
 0x19b   :  { %3006 = vst.msk [vmem:[#allocation8 + $0xb3] sm:$0x1] %vm783_vm8, %v2977_v8  ;;  %3008 = vst.msk [vmem:[#allocation8 + $0xd3] sm:$0x1] %vm783_vm8, %v2974_v2  ;;  %v10453_v49 = vsel %vm118_vm6, %v10452_v32, %v16377_v10  ;;  %v2895_v29 = vrot.slane %v2881_v11, %v15965_v34  ;;  %v2896_v35 = vcombine.high %v2888_v14, %v2888_v14  ;;  %14178 = vmatprep.subr.bf16.mxu1 %v16320_v37 }
 0x19c   :  { %3009 = vst.msk [vmem:[#allocation8 + $0xe3] sm:$0x1] %vm783_vm8, %v2976_v19  ;;  %v2904_v9 = vrot.slane %v2888_v14, %v15965_v34  ;;  %v11190_v55 = vsel %vm118_vm6, %v11189_v51, %v11188_v26  ;;  %3010 = vst.msk [vmem:[#allocation8 + $0xf3] sm:$0x1] %vm783_vm8, %v2978_v46  ;;  %v17072_v53 = vand.u32 4294901760, %v16174_v40  ;;  %v16469_v20 = vand.u32 4294901760, %v10454_v42 }
 0x19d   :  { %v16471_v28 = vand.u32 4294901760, %v11191_v30  ;;  %v16476_v32 = vsub.f32 %v16322_v21, %v10459_v56  ;;  %v16481_v10 = vsub.f32 %v16324_v57, %v10462_v4  ;;  %v2897_v27 = vcombine.high %v2895_v29, %v2895_v29 }
 0x19e   :  { %13299 = vmatmul.mubr.f32.vlgmr.msra.gmra.mrb[12].mxu0 %v17072_v53  ;;  %v2911_v40 = vrot.slane %v2895_v29, %v15965_v34  ;;  %v2918_v50 = vrot.slane %v2896_v35, %v15965_v34  ;;  %v2926_v62 = vcombine.high %v2904_v9, %v2904_v9  ;;  %2995 = vst.msk [vmem:[#allocation8 + $0x3] sm:$0x1] %vm783_vm8, %v2904_v9  ;;  %v17073_v44 = vand.u32 4294901760, %v16220_v33 }
 0x19f   :  { %14132 = vmatpush3.bf16.msra.mxu0 %v16314_v47  ;;  %v10456_v12 = vsel %vm134_vm7, %v10453_v49, 0  ;;  %v11193_v58 = vsel %vm134_vm7, %v11190_v55, 0  ;;  %v16495_v16 = vsub.f32 %v16333_v60, %v11196_v0  ;;  %v16500_v61 = vsub.f32 %v16342_v18, %v11199_v39  ;;  %13309 = vmatprep.mubr.f32.mxu0 %v15996_v23 }
 0x1a0   :  { %13365 = vmatmul.mubr.f32.vlgmr.msra.gmra.mrb[12].mxu1 %v17073_v44  ;;  %v2925_v33 = vrot.slane %v2897_v27, %v15965_v34  ;;  %v2927_v7 = vcombine.high %v2911_v40, %v2911_v40  ;;  %v2928_v47 = vcombine.high %v2918_v50, %v2918_v50  ;;  %2996 = vst.msk [vmem:[#allocation8 + $0x13] sm:$0x1] %vm783_vm8, %v2918_v50  ;;  %2997 = vst.msk [vmem:[#allocation8 + $0x23] sm:$0x1] %vm783_vm8, %v2926_v62 }
 0x1a1   :  { %14180 = vmatpush3.bf16.msra.mxu1 %v16320_v37  ;;  %2999 = vst.msk [vmem:[#allocation8 + $0x43] sm:$0x1] %vm783_vm8, %v2911_v40  ;;  %14134 = vmatprep.subr.bf16.mxu0 %v16331_v13  ;;  %v11205_v37 = vand.u32 4294901760, %v16467_v24  ;;  %v16512_v6 = vsub.f32 %v10454_v42, %v16469_v20  ;;  %v16515_v1 = vsub.f32 %v11191_v30, %v16471_v28  ;;  %v16520_v25 = vand.u32 4294901760, %v10456_v12 }
 0x1a2   :  { %14182 = vmatprep.subr.bf16.mxu1 %v16340_v43  ;;  %13375 = vmatprep.mubr.f32.mxu1 %v16004_v38  ;;  %v2929_v59 = vcombine.high %v2925_v33, %v2925_v33  ;;  %2998 = vst.msk [vmem:[#allocation8 + $0x33] sm:$0x1] %vm783_vm8, %v2928_v47  ;;  %3000 = vst.msk [vmem:[#allocation8 + $0x53] sm:$0x1] %vm783_vm8, %v2925_v33  ;;  %v16522_v22 = vand.u32 4294901760, %v11193_v58  ;;  %v10550_v26 = vand.u32 4294901760, %v16476_v32 }
 0x1a3   :  { %3001 = vst.msk [vmem:[#allocation8 + $0x63] sm:$0x1] %vm783_vm8, %v2927_v7  ;;  %14136 = vmatpush3.bf16.msra.mxu0 %v16331_v13  ;;  %v10557_v51 = vand.u32 4294901760, %v16481_v10  ;;  %v16531_v2 = vsub.f32 %v16412_v52, %v10465_v3  ;;  %v16536_v19 = vsub.f32 %v16426_v41, %v10468_v48  ;;  %v11287_v13 = vand.u32 4294901760, %v16495_v16 }
 0x1a4   :  { %3002 = vst.msk [vmem:[#allocation8 + $0x73] sm:$0x1] %vm783_vm8, %v2929_v59  ;;  %14138 = vmatprep.subr.bf16.mxu0 %v16202_v31  ;;  %v16546_v8 = vsub.f32 %v16428_v36, %v11202_v63  ;;  %v16549_v11 = vsub.f32 %v16467_v24, %v11205_v37  ;;  %v16555_v14 = vpack.c.bf16 %v10462_v4, %v10459_v56  ;;  %v10529_v42 = vand.u32 4294901760, %v16512_v6  ;;  %v11877_v59 = vld [vmem:[#allocation7 + $0x4] ss:$0 sm:$0xff] }
 0x1a5   :  { %14184 = vmatpush3.bf16.msra.mxu1 %v16340_v43  ;;  %v11294_v43 = vand.u32 4294901760, %v16500_v61  ;;  %v11266_v30 = vand.u32 4294901760, %v16515_v1  ;;  %v16565_v46 = vpack.c.bf16 %v11199_v39, %v11196_v0  ;;  %v16568_v21 = vsub.f32 %v10456_v12, %v16520_v25 }
 0x1a6   :  { %14186 = vmatprep.subr.bf16.mxu1 %v16214_v54  ;;  %13310 = vmatmul.mubr.f32.vlgmr.msra.gmra.mrb[12].mxu0 %v16122_v45  ;;  %v16571_v57 = vsub.f32 %v11193_v58, %v16522_v22  ;;  %v10551_v56 = vsub.f32 %v16476_v32, %v10550_v26  ;;  %v10558_v60 = vsub.f32 %v16481_v10, %v10557_v51  ;;  %v10564_v18 = vand.u32 4294901760, %v16531_v2 }
 0x1a7   :  { %14140 = vmatpush3.bf16.msra.mxu0 %v16202_v31  ;;  %v10571_v4 = vand.u32 4294901760, %v16536_v19  ;;  %v11288_v31 = vsub.f32 %v16495_v16, %v11287_v13  ;;  %v11301_v0 = vand.u32 4294901760, %v16546_v8  ;;  %v11308_v39 = vand.u32 4294901760, %v16549_v11  ;;  %13320 = vmatprep.mubr.f32.mxu0 %v15996_v23 }
 0x1a8   :  { %13376 = vmatmul.mubr.f32.vlgmr.msra.gmra.mrb[12].mxu1 %v16162_v17  ;;  %14142 = vmatprep.subr.bf16.mxu0 %v16242_v15  ;;  %v10530_v49 = vsub.f32 %v16512_v6, %v10529_v42  ;;  %v11267_v29 = vsub.f32 %v16515_v1, %v11266_v30  ;;  %v16605_v35 = vpack.c.bf16 %v10468_v48, %v10465_v3  ;;  %v10539_v23 = vand.u32 4294901760, %v16568_v21 }
 0x1a9   :  { %14188 = vmatpush3.bf16.msra.mxu1 %v16214_v54  ;;  %v11295_v54 = vsub.f32 %v16500_v61, %v11294_v43  ;;  %13386 = vmatprep.mubr.f32.mxu1 %v16004_v38  ;;  %v16609_v9 = vpack.c.bf16 %v11205_v37, %v11202_v63  ;;  %v11276_v38 = vand.u32 4294901760, %v16571_v57  ;;  %v10552_v55 = vand.u32 4294901760, %v10551_v56 }
 0x1aa   :  { %14190 = vmatprep.subr.bf16.mxu1 %v16252_v5  ;;  %v10559_v53 = vand.u32 4294901760, %v10558_v60  ;;  %v10565_v52 = vsub.f32 %v16531_v2, %v10564_v18  ;;  %v10572_v41 = vsub.f32 %v16536_v19, %v10571_v4  ;;  %v11289_v36 = vand.u32 4294901760, %v11288_v31 }
 0x1ab   :  { %14144 = vmatpush3.bf16.msra.mxu0 %v16242_v15  ;;  %v11296_v3 = vand.u32 4294901760, %v11295_v54  ;;  %v11302_v15 = vsub.f32 %v16546_v8, %v11301_v0  ;;  %v10531_v48 = vand.u32 4294901760, %v10530_v49  ;;  %v11268_v63 = vand.u32 4294901760, %v11267_v29 }
 0x1ac   :  { %14194 = vmatprep.subr.bf16.mxu0 %v16555_v14  ;;  %v10540_v24 = vsub.f32 %v16568_v21, %v10539_v23  ;;  %v11277_v27 = vsub.f32 %v16571_v57, %v11276_v38  ;;  %v14201_v40 = vpack.c.bf16 %v10559_v53, %v10552_v55  ;;  %v10566_v50 = vand.u32 4294901760, %v10565_v52  ;;  %v16656_v52 = vld [vmem:[#allocation7 + $0x5] ss:$0 sm:$0xff] }
 0x1ad   :  { %14192 = vmatpush3.bf16.msra.mxu1 %v16252_v5  ;;  %v11309_v5 = vsub.f32 %v16549_v11, %v11308_v39  ;;  %v11303_v62 = vand.u32 4294901760, %v11302_v15  ;;  %v14209_v47 = vpack.c.bf16 %v16481_v10, %v16476_v32  ;;  %v14257_v37 = vpack.c.bf16 %v16500_v61, %v16495_v16 }
 0x1ae   :  { %14242 = vmatprep.subr.bf16.mxu1 %v16565_v46  ;;  %13321 = vmatmul.mubr.f32.vlgmr.msra.gmra.mrb[12].mxu0 %v16122_v45  ;;  %v14249_v45 = vpack.c.bf16 %v11296_v3, %v11289_v36  ;;  %v10541_v12 = vand.u32 4294901760, %v10540_v24  ;;  %v11278_v58 = vand.u32 4294901760, %v11277_v27  ;;  %v14213_v54 = vpack.c.bf16 %v16536_v19, %v16531_v2 }
 0x1af   :  { %14196 = vmatpush3.bf16.msra.mxu0 %v16555_v14  ;;  %v11310_v44 = vand.u32 4294901760, %v11309_v5  ;;  %13397 = vmatprep.mubr.f32.mxu0 %v10531_v48  ;;  %v14261_v49 = vpack.c.bf16 %v16549_v11, %v16546_v8  ;;  %v14229_v16 = vpack.c.bf16 %v10571_v4, %v10564_v18  ;;  %v14277_v61 = vpack.c.bf16 %v11308_v39, %v11301_v0  ;;  %v11879_v11 = vld [vmem:[#allocation7 + $0x6] ss:$0 sm:$0xff]  ;;  %v11880_v0 = vld [vmem:[#allocation7 + $0x7] ss:$0 sm:$0xff] }
 0x1b0   :  { %13387 = vmatmul.mubr.f32.vlgmr.msra.gmra.mrb[12].mxu1 %v16162_v17  ;;  %14198 = vmatprep.subr.bf16.mxu0 %v16605_v35  ;;  %v10573_v17 = vand.u32 4294901760, %v10572_v41 }
 0x1b1   :  { %14244 = vmatpush3.bf16.msra.mxu1 %v16565_v46  ;;  %13463 = vmatprep.mubr.f32.mxu1 %v11268_v63  ;;  %v14253_v7 = vpack.c.bf16 %v11310_v44, %v11303_v62 }
 0x1b2   :  { %14246 = vmatprep.subr.bf16.mxu1 %v16609_v9  ;;  %v14205_v33 = vpack.c.bf16 %v10573_v17, %v10566_v50 }
 0x1b3   :  { %14200 = vmatpush3.bf16.msra.mxu0 %v16605_v35 }
 0x1b4   :  { %14202 = vmatprep.subr.bf16.mxu0 %v14201_v40 }
 0x1b5   :  { %14248 = vmatpush3.bf16.msra.mxu1 %v16609_v9 }
 0x1b6   :  { %14250 = vmatprep.subr.bf16.mxu1 %v14249_v45  ;;  %13398 = vmatmul.mubr.f32.vlgmr.msra.gmra.mrb[14].mxu0 %v10541_v12 }
 0x1b7   :  { %14204 = vmatpush3.bf16.msra.mxu0 %v14201_v40  ;;  %13408 = vmatprep.mubr.f32.mxu0 %v16469_v20  ;;  %v12794_v56 = vpop.f32.mrb[4].mxu0 }
 0x1b8   :  { %13464 = vmatmul.mubr.f32.vlgmr.msra.gmra.mrb[14].mxu1 %v11278_v58  ;;  %14206 = vmatprep.subr.bf16.mxu0 %v14205_v33  ;;  %v14297_v60 = vadd.f32 %v12794_v56, %v11877_v59  ;;  %v3606_v31 = vpop.f32.mrb[5].mxu0 }
 0x1b9   :  { %14252 = vmatpush3.bf16.msra.mxu1 %v14249_v45  ;;  %13474 = vmatprep.mubr.f32.mxu1 %v16471_v28  ;;  %v14298_v29 = vadd.f32 %v11877_v59, %v3606_v31 }
 0x1ba   :  { %14254 = vmatprep.subr.bf16.mxu1 %v14253_v7  ;;  %v3667_v55 = vcombine.high %v14297_v60, %v14297_v60  ;;  %v3674_v53 = vrot.slane %v14297_v60, %v15965_v34 }
 0x1bb   :  { %14208 = vmatpush3.bf16.msra.mxu0 %v14205_v33  ;;  %v3618_v41 = vcombine.high %v14298_v29, %v14298_v29  ;;  %v3625_v36 = vrot.slane %v14298_v29, %v15965_v34 }
 0x1bc   :  { %14210 = vmatprep.subr.bf16.mxu0 %v14209_v47  ;;  %v3681_v3 = vrot.slane %v3667_v55, %v15965_v34  ;;  %v3682_v15 = vcombine.high %v3674_v53, %v3674_v53  ;;  %v3690_v5 = vrot.slane %v3674_v53, %v15965_v34  ;;  %v12860_v48 = vpop.f32.mrb[4].mxu1 }
 0x1bd   :  { %14256 = vmatpush3.bf16.msra.mxu1 %v14253_v7  ;;  %v14299_v63 = vadd.f32 %v12860_v48, %v16656_v52  ;;  %v3632_v24 = vrot.slane %v3618_v41, %v15965_v34  ;;  %v3633_v27 = vcombine.high %v3625_v36, %v3625_v36  ;;  %v3641_v40 = vrot.slane %v3625_v36, %v15965_v34  ;;  %v4343_v50 = vpop.f32.mrb[5].mxu1 }
 0x1be   :  { %14258 = vmatprep.subr.bf16.mxu1 %v14257_v37  ;;  %13409 = vmatmul.mubr.f32.vlgmr.msra.gmra.mrb[14].mxu0 %v16520_v25  ;;  %v3683_v45 = vcombine.high %v3681_v3, %v3681_v3  ;;  %v3697_v17 = vrot.slane %v3681_v3, %v15965_v34  ;;  %v3704_v62 = vrot.slane %v3682_v15, %v15965_v34 }
 0x1bf   :  { %14212 = vmatpush3.bf16.msra.mxu0 %v14209_v47  ;;  %13419 = vmatprep.mubr.f32.mxu0 %v16512_v6  ;;  %v3712_v44 = vcombine.high %v3690_v5, %v3690_v5  ;;  %3740 = vst.msk [vmem:[#allocation8 + $0x84] sm:$0x1] %vm783_vm8, %v3690_v5  ;;  %v4404_v12 = vcombine.high %v14299_v63, %v14299_v63  ;;  %3732 = vst.msk [vmem:[#allocation8 + $0x4] sm:$0x1] %vm783_vm8, %v3641_v40 }
 0x1c0   :  { %13475 = vmatmul.mubr.f32.vlgmr.msra.gmra.mrb[14].mxu1 %v16522_v22  ;;  %14214 = vmatprep.subr.bf16.mxu0 %v14213_v54  ;;  %v4411_v58 = vrot.slane %v14299_v63, %v15965_v34  ;;  %v3634_v33 = vcombine.high %v3632_v24, %v3632_v24  ;;  %v3648_v7 = vrot.slane %v3632_v24, %v15965_v34 }
 0x1c1   :  { %14260 = vmatpush3.bf16.msra.mxu1 %v14257_v37  ;;  %13485 = vmatprep.mubr.f32.mxu1 %v16515_v1  ;;  %v3711_v47 = vrot.slane %v3683_v45, %v15965_v34  ;;  %v3713_v37 = vcombine.high %v3697_v17, %v3697_v17  ;;  %v3714_v59 = vcombine.high %v3704_v62, %v3704_v62 }
 0x1c2   :  { %14262 = vmatprep.subr.bf16.mxu1 %v14261_v49  ;;  %3741 = vst.msk [vmem:[#allocation8 + $0x94] sm:$0x1] %vm783_vm8, %v3704_v62  ;;  %3742 = vst.msk [vmem:[#allocation8 + $0xa4] sm:$0x1] %vm783_vm8, %v3712_v44  ;;  %v3655_v56 = vrot.slane %v3633_v27, %v15965_v34  ;;  %v4418_v60 = vrot.slane %v4404_v12, %v15965_v34  ;;  %v4419_v31 = vcombine.high %v4411_v58, %v4411_v58 }
 0x1c3   :  { %14216 = vmatpush3.bf16.msra.mxu0 %v14213_v54  ;;  %3744 = vst.msk [vmem:[#allocation8 + $0xc4] sm:$0x1] %vm783_vm8, %v3697_v17  ;;  %v4427_v29 = vrot.slane %v4411_v58, %v15965_v34  ;;  %v3662_v54 = vrot.slane %v3634_v33, %v15965_v34  ;;  %3736 = vst.msk [vmem:[#allocation8 + $0x44] sm:$0x1] %vm783_vm8, %v3648_v7  ;;  %v3715_v55 = vcombine.high %v3711_v47, %v3711_v47 }
 0x1c4   :  { %14218 = vmatprep.subr.bf16.mxu0 %v16555_v14  ;;  %3743 = vst.msk [vmem:[#allocation8 + $0xb4] sm:$0x1] %vm783_vm8, %v3714_v59  ;;  %3745 = vst.msk [vmem:[#allocation8 + $0xd4] sm:$0x1] %vm783_vm8, %v3711_v47  ;;  %v3663_v53 = vcombine.high %v3641_v40, %v3641_v40  ;;  %v3665_v41 = vcombine.high %v3655_v56, %v3655_v56  ;;  %v4420_v36 = vcombine.high %v4418_v60, %v4418_v60 }
 0x1c5   :  { %14264 = vmatpush3.bf16.msra.mxu1 %v14261_v49  ;;  %3746 = vst.msk [vmem:[#allocation8 + $0xe4] sm:$0x1] %vm783_vm8, %v3713_v37  ;;  %v3664_v49 = vcombine.high %v3648_v7, %v3648_v7  ;;  %3733 = vst.msk [vmem:[#allocation8 + $0x14] sm:$0x1] %vm783_vm8, %v3655_v56  ;;  %v4434_v3 = vrot.slane %v4418_v60, %v15965_v34  ;;  %v4441_v15 = vrot.slane %v4419_v31, %v15965_v34 }
 0x1c6   :  { %13420 = vmatmul.mubr.f32.vlgmr.msra.gmra.mrb[14].mxu0 %v16568_v21  ;;  %v4449_v5 = vcombine.high %v4427_v29, %v4427_v29  ;;  %4477 = vst.msk [vmem:[#allocation8 + $0x85] sm:$0x1] %vm783_vm8, %v4427_v29  ;;  %3737 = vst.msk [vmem:[#allocation8 + $0x54] sm:$0x1] %vm783_vm8, %v3662_v54  ;;  %v3666_v48 = vcombine.high %v3662_v54, %v3662_v54  ;;  %v14300_v63 = vadd.f32 %v16656_v52, %v4343_v50 }
 0x1c7   :  { %3747 = vst.msk [vmem:[#allocation8 + $0xf4] sm:$0x1] %vm783_vm8, %v3715_v55  ;;  %3734 = vst.msk [vmem:[#allocation8 + $0x24] sm:$0x1] %vm783_vm8, %v3663_v53  ;;  %14266 = vmatprep.subr.bf16.mxu1 %v16565_v46  ;;  %14220 = vmatpush3.bf16.msra.mxu0 %v16555_v14  ;;  %v14225_v24 = vpack.c.bf16 %v10557_v51, %v10550_v26  ;;  %v4448_v27 = vrot.slane %v4420_v36, %v15965_v34 }
 0x1c8   :  { %13486 = vmatmul.mubr.f32.vlgmr.msra.gmra.mrb[14].mxu1 %v16571_v57  ;;  %3735 = vst.msk [vmem:[#allocation8 + $0x34] sm:$0x1] %vm783_vm8, %v3665_v41  ;;  %3738 = vst.msk [vmem:[#allocation8 + $0x64] sm:$0x1] %vm783_vm8, %v3664_v49  ;;  %v4450_v40 = vcombine.high %v4434_v3, %v4434_v3  ;;  %v4451_v45 = vcombine.high %v4441_v15, %v4441_v15  ;;  %14222 = vmatprep.subr.bf16.mxu0 %v16605_v35 }
 0x1c9   :  { %4478 = vst.msk [vmem:[#allocation8 + $0x95] sm:$0x1] %vm783_vm8, %v4441_v15  ;;  %4479 = vst.msk [vmem:[#allocation8 + $0xa5] sm:$0x1] %vm783_vm8, %v4449_v5  ;;  %14268 = vmatpush3.bf16.msra.mxu1 %v16565_v46  ;;  %v4355_v32 = vcombine.high %v14300_v63, %v14300_v63  ;;  %v4362_v10 = vrot.slane %v14300_v63, %v15965_v34  ;;  %13430 = vmatprep.mubr.f32.mxu0 %v10529_v42 }
 0x1ca   :  { %4481 = vst.msk [vmem:[#allocation8 + $0xc5] sm:$0x1] %vm783_vm8, %v4434_v3  ;;  %3739 = vst.msk [vmem:[#allocation8 + $0x74] sm:$0x1] %vm783_vm8, %v3666_v48  ;;  %14270 = vmatprep.subr.bf16.mxu1 %v16609_v9  ;;  %v14273_v26 = vpack.c.bf16 %v11294_v43, %v11287_v13  ;;  %v4452_v51 = vcombine.high %v4448_v27, %v4448_v27  ;;  %13496 = vmatprep.mubr.f32.mxu1 %v11266_v30 }
 0x1cb   :  { %4480 = vst.msk [vmem:[#allocation8 + $0xb5] sm:$0x1] %vm783_vm8, %v4451_v45  ;;  %4482 = vst.msk [vmem:[#allocation8 + $0xd5] sm:$0x1] %vm783_vm8, %v4448_v27  ;;  %v4369_v52 = vrot.slane %v4355_v32, %v15965_v34  ;;  %v4370_v50 = vcombine.high %v4362_v10, %v4362_v10  ;;  %v4378_v6 = vrot.slane %v4362_v10, %v15965_v34  ;;  %14224 = vmatpush3.bf16.msra.mxu0 %v16605_v35 }
 0x1cc   :  { %4483 = vst.msk [vmem:[#allocation8 + $0xe5] sm:$0x1] %vm783_vm8, %v4450_v40  ;;  %4484 = vst.msk [vmem:[#allocation8 + $0xf5] sm:$0x1] %vm783_vm8, %v4452_v51  ;;  %14226 = vmatprep.subr.bf16.mxu0 %v14225_v24 }
 0x1cd   :  { %14272 = vmatpush3.bf16.msra.mxu1 %v16609_v9  ;;  %v4371_v1 = vcombine.high %v4369_v52, %v4369_v52  ;;  %v4385_v13 = vrot.slane %v4369_v52, %v15965_v34  ;;  %v4392_v43 = vrot.slane %v4370_v50, %v15965_v34  ;;  %v4400_v42 = vcombine.high %v4378_v6, %v4378_v6 }
 0x1ce   :  { %4469 = vst.msk [vmem:[#allocation8 + $0x5] sm:$0x1] %vm783_vm8, %v4378_v6  ;;  %14274 = vmatprep.subr.bf16.mxu1 %v14273_v26  ;;  %13431 = vmatmul.mubr.f32.vlgmr.msra.gmra.mrb[14].mxu0 %v10539_v23 }
 0x1cf   :  { %v4399_v2 = vrot.slane %v4371_v1, %v15965_v34  ;;  %v4401_v19 = vcombine.high %v4385_v13, %v4385_v13  ;;  %v4402_v30 = vcombine.high %v4392_v43, %v4392_v43  ;;  %4470 = vst.msk [vmem:[#allocation8 + $0x15] sm:$0x1] %vm783_vm8, %v4392_v43  ;;  %4471 = vst.msk [vmem:[#allocation8 + $0x25] sm:$0x1] %vm783_vm8, %v4400_v42  ;;  %14228 = vmatpush3.bf16.msra.mxu0 %v14225_v24 }
 0x1d0   :  { %4473 = vst.msk [vmem:[#allocation8 + $0x45] sm:$0x1] %vm783_vm8, %v4385_v13  ;;  %13497 = vmatmul.mubr.f32.vlgmr.msra.gmra.mrb[14].mxu1 %v11276_v38  ;;  %14230 = vmatprep.subr.bf16.mxu0 %v14229_v16 }
 0x1d1   :  { %14276 = vmatpush3.bf16.msra.mxu1 %v14273_v26  ;;  %v4403_v8 = vcombine.high %v4399_v2, %v4399_v2  ;;  %4472 = vst.msk [vmem:[#allocation8 + $0x35] sm:$0x1] %vm783_vm8, %v4402_v30  ;;  %4474 = vst.msk [vmem:[#allocation8 + $0x55] sm:$0x1] %vm783_vm8, %v4399_v2  ;;  %13441 = vmatprep.mubr.f32.mxu0 %v16469_v20 }
 0x1d2   :  { %4475 = vst.msk [vmem:[#allocation8 + $0x65] sm:$0x1] %vm783_vm8, %v4401_v19  ;;  %14278 = vmatprep.subr.bf16.mxu1 %v14277_v61  ;;  %13507 = vmatprep.mubr.f32.mxu1 %v16471_v28 }
 0x1d3   :  { %4476 = vst.msk [vmem:[#allocation8 + $0x75] sm:$0x1] %vm783_vm8, %v4403_v8  ;;  %14232 = vmatpush3.bf16.msra.mxu0 %v14229_v16  ;;  %v11881_v8 = vld [vmem:[#allocation7 + $0x8] ss:$0 sm:$0xff] }
 0x1d4   :  { %14234 = vmatprep.subr.bf16.mxu0 %v16555_v14 }
 0x1d5   :  { %14280 = vmatpush3.bf16.msra.mxu1 %v14277_v61 }
 0x1d6   :  { %14282 = vmatprep.subr.bf16.mxu1 %v16565_v46  ;;  %13442 = vmatmul.mubr.f32.vlgmr.msra.gmra.mrb[14].mxu0 %v16520_v25 }
 0x1d7   :  { %14236 = vmatpush3.bf16.msra.mxu0 %v16555_v14  ;;  %13452 = vmatprep.mubr.f32.mxu0 %v16469_v20 }
 0x1d8   :  { %13508 = vmatmul.mubr.f32.vlgmr.msra.gmra.mrb[14].mxu1 %v16522_v22  ;;  %14238 = vmatprep.subr.bf16.mxu0 %v16605_v35 }
 0x1d9   :  { %14284 = vmatpush3.bf16.msra.mxu1 %v16565_v46  ;;  %13518 = vmatprep.mubr.f32.mxu1 %v16471_v28 }
 0x1da   :  { %14286 = vmatprep.subr.bf16.mxu1 %v16609_v9 }
 0x1db   :  { %14240 = vmatpush3.bf16.msra.mxu0 %v16605_v35 }
 0x1dd   :  { %14288 = vmatpush3.bf16.msra.mxu1 %v16609_v9 }
 0x1de   :  { %13453 = vmatmul.mubr.f32.vlgmr.msra.gmra.mrb[14].mxu0 %v16520_v25 }
 0x1e0   :  { %13519 = vmatmul.mubr.f32.vlgmr.msra.gmra.mrb[14].mxu1 %v16522_v22 }
 0x1e7   :  { %v12926_v14 = vpop.f32.mrb[6].mxu0 }
 0x1e8   :  { %v14301_v21 = vadd.f32 %v12926_v14, %v11879_v11  ;;  %v5080_v46 = vpop.f32.mrb[7].mxu0 }
 0x1e9   :  { %v14302_v57 = vadd.f32 %v11879_v11, %v5080_v46 }
 0x1ea   :  { %v5141_v18 = vcombine.high %v14301_v21, %v14301_v21  ;;  %v5148_v4 = vrot.slane %v14301_v21, %v15965_v34 }
 0x1eb   :  { %v5092_v20 = vcombine.high %v14302_v57, %v14302_v57  ;;  %v5099_v28 = vrot.slane %v14302_v57, %v15965_v34 }
 0x1ec   :  { %v5155_v39 = vrot.slane %v5141_v18, %v15965_v34  ;;  %v5156_v35 = vcombine.high %v5148_v4, %v5148_v4  ;;  %v5164_v9 = vrot.slane %v5148_v4, %v15965_v34  ;;  %v12992_v25 = vpop.f32.mrb[6].mxu1  ;;  %v11882_v4 = vld [vmem:[#allocation7 + $0x9] ss:$0 sm:$0xff] }
 0x1ed   :  { %v14303_v23 = vadd.f32 %v12992_v25, %v11880_v0  ;;  %v5106_v22 = vrot.slane %v5092_v20, %v15965_v34  ;;  %v5107_v38 = vcombine.high %v5099_v28, %v5099_v28  ;;  %v5115_v17 = vrot.slane %v5099_v28, %v15965_v34  ;;  %v5817_v62 = vpop.f32.mrb[7].mxu1 }
 0x1ee   :  { %v5157_v44 = vcombine.high %v5155_v39, %v5155_v39  ;;  %v5171_v12 = vrot.slane %v5155_v39, %v15965_v34  ;;  %v5178_v58 = vrot.slane %v5156_v35, %v15965_v34  ;;  %v5186_v33 = vcombine.high %v5164_v9, %v5164_v9  ;;  %5214 = vst.msk [vmem:[#allocation8 + $0x86] sm:$0x1] %vm783_vm8, %v5164_v9 }
 0x1ef   :  { %v5878_v7 = vcombine.high %v14303_v23, %v14303_v23  ;;  %v5885_v47 = vrot.slane %v14303_v23, %v15965_v34  ;;  %v5108_v37 = vcombine.high %v5106_v22, %v5106_v22  ;;  %v5122_v59 = vrot.slane %v5106_v22, %v15965_v34  ;;  %5206 = vst.msk [vmem:[#allocation8 + $0x6] sm:$0x1] %vm783_vm8, %v5115_v17 }
 0x1f0   :  { %v5185_v56 = vrot.slane %v5157_v44, %v15965_v34  ;;  %v5187_v60 = vcombine.high %v5171_v12, %v5171_v12  ;;  %v5188_v31 = vcombine.high %v5178_v58, %v5178_v58  ;;  %5215 = vst.msk [vmem:[#allocation8 + $0x96] sm:$0x1] %vm783_vm8, %v5178_v58  ;;  %5216 = vst.msk [vmem:[#allocation8 + $0xa6] sm:$0x1] %vm783_vm8, %v5186_v33 }
 0x1f1   :  { %5218 = vst.msk [vmem:[#allocation8 + $0xc6] sm:$0x1] %vm783_vm8, %v5171_v12  ;;  %v5129_v29 = vrot.slane %v5107_v38, %v15965_v34  ;;  %v5892_v54 = vrot.slane %v5878_v7, %v15965_v34  ;;  %v5893_v55 = vcombine.high %v5885_v47, %v5885_v47  ;;  %v5901_v53 = vrot.slane %v5885_v47, %v15965_v34 }
 0x1f2   :  { %v5136_v49 = vrot.slane %v5108_v37, %v15965_v34  ;;  %5210 = vst.msk [vmem:[#allocation8 + $0x46] sm:$0x1] %vm783_vm8, %v5122_v59  ;;  %v5189_v41 = vcombine.high %v5185_v56, %v5185_v56  ;;  %5217 = vst.msk [vmem:[#allocation8 + $0xb6] sm:$0x1] %vm783_vm8, %v5188_v31  ;;  %v5137_v36 = vcombine.high %v5115_v17, %v5115_v17 }
 0x1f3   :  { %5219 = vst.msk [vmem:[#allocation8 + $0xd6] sm:$0x1] %vm783_vm8, %v5185_v56  ;;  %5220 = vst.msk [vmem:[#allocation8 + $0xe6] sm:$0x1] %vm783_vm8, %v5187_v60  ;;  %v5138_v3 = vcombine.high %v5122_v59, %v5122_v59  ;;  %v5139_v15 = vcombine.high %v5129_v29, %v5129_v29  ;;  %v5894_v5 = vcombine.high %v5892_v54, %v5892_v54 }
 0x1f4   :  { %5207 = vst.msk [vmem:[#allocation8 + $0x16] sm:$0x1] %vm783_vm8, %v5129_v29  ;;  %v5908_v48 = vrot.slane %v5892_v54, %v15965_v34  ;;  %v5915_v63 = vrot.slane %v5893_v55, %v15965_v34  ;;  %v5923_v24 = vcombine.high %v5901_v53, %v5901_v53  ;;  %5951 = vst.msk [vmem:[#allocation8 + $0x87] sm:$0x1] %vm783_vm8, %v5901_v53 }
 0x1f5   :  { %5211 = vst.msk [vmem:[#allocation8 + $0x56] sm:$0x1] %vm783_vm8, %v5136_v49  ;;  %5221 = vst.msk [vmem:[#allocation8 + $0xf6] sm:$0x1] %vm783_vm8, %v5189_v41  ;;  %v5140_v27 = vcombine.high %v5136_v49, %v5136_v49  ;;  %v14304_v40 = vadd.f32 %v11880_v0, %v5817_v62  ;;  %v5922_v45 = vrot.slane %v5894_v5, %v15965_v34 }
 0x1f6   :  { %5208 = vst.msk [vmem:[#allocation8 + $0x26] sm:$0x1] %vm783_vm8, %v5137_v36  ;;  %5209 = vst.msk [vmem:[#allocation8 + $0x36] sm:$0x1] %vm783_vm8, %v5139_v15  ;;  %v5924_v32 = vcombine.high %v5908_v48, %v5908_v48  ;;  %v5925_v10 = vcombine.high %v5915_v63, %v5915_v63 }
 0x1f7   :  { %5212 = vst.msk [vmem:[#allocation8 + $0x66] sm:$0x1] %vm783_vm8, %v5138_v3  ;;  %5952 = vst.msk [vmem:[#allocation8 + $0x97] sm:$0x1] %vm783_vm8, %v5915_v63  ;;  %v5829_v26 = vcombine.high %v14304_v40, %v14304_v40  ;;  %v5836_v51 = vrot.slane %v14304_v40, %v15965_v34  ;;  %v5926_v52 = vcombine.high %v5922_v45, %v5922_v45 }
 0x1f8   :  { %5953 = vst.msk [vmem:[#allocation8 + $0xa7] sm:$0x1] %vm783_vm8, %v5923_v24  ;;  %5955 = vst.msk [vmem:[#allocation8 + $0xc7] sm:$0x1] %vm783_vm8, %v5908_v48 }
 0x1f9   :  { %5213 = vst.msk [vmem:[#allocation8 + $0x76] sm:$0x1] %vm783_vm8, %v5140_v27  ;;  %5954 = vst.msk [vmem:[#allocation8 + $0xb7] sm:$0x1] %vm783_vm8, %v5925_v10  ;;  %v5843_v50 = vrot.slane %v5829_v26, %v15965_v34  ;;  %v5844_v6 = vcombine.high %v5836_v51, %v5836_v51  ;;  %v5852_v16 = vrot.slane %v5836_v51, %v15965_v34 }
 0x1fa   :  { %5956 = vst.msk [vmem:[#allocation8 + $0xd7] sm:$0x1] %vm783_vm8, %v5922_v45  ;;  %5957 = vst.msk [vmem:[#allocation8 + $0xe7] sm:$0x1] %vm783_vm8, %v5924_v32 }
 0x1fb   :  { %5958 = vst.msk [vmem:[#allocation8 + $0xf7] sm:$0x1] %vm783_vm8, %v5926_v52  ;;  %v5845_v61 = vcombine.high %v5843_v50, %v5843_v50  ;;  %v5859_v1 = vrot.slane %v5843_v50, %v15965_v34  ;;  %v5866_v13 = vrot.slane %v5844_v6, %v15965_v34  ;;  %v5874_v43 = vcombine.high %v5852_v16, %v5852_v16 }
 0x1fc   :  { %5943 = vst.msk [vmem:[#allocation8 + $0x7] sm:$0x1] %vm783_vm8, %v5852_v16 }
 0x1fd   :  { %v5873_v42 = vrot.slane %v5845_v61, %v15965_v34  ;;  %v5875_v2 = vcombine.high %v5859_v1, %v5859_v1  ;;  %v5876_v19 = vcombine.high %v5866_v13, %v5866_v13  ;;  %5944 = vst.msk [vmem:[#allocation8 + $0x17] sm:$0x1] %vm783_vm8, %v5866_v13  ;;  %5945 = vst.msk [vmem:[#allocation8 + $0x27] sm:$0x1] %vm783_vm8, %v5874_v43 }
 0x1fe   :  { %5947 = vst.msk [vmem:[#allocation8 + $0x47] sm:$0x1] %vm783_vm8, %v5859_v1 }
 0x1ff   :  { %v5877_v30 = vcombine.high %v5873_v42, %v5873_v42  ;;  %5946 = vst.msk [vmem:[#allocation8 + $0x37] sm:$0x1] %vm783_vm8, %v5876_v19  ;;  %5948 = vst.msk [vmem:[#allocation8 + $0x57] sm:$0x1] %vm783_vm8, %v5873_v42 }
 0x200   :  { %5949 = vst.msk [vmem:[#allocation8 + $0x67] sm:$0x1] %vm783_vm8, %v5875_v2 }
 0x201   :  { %5950 = vst.msk [vmem:[#allocation8 + $0x77] sm:$0x1] %vm783_vm8, %v5877_v30  ;;  %v11883_v30 = vld [vmem:[#allocation7 + $0xa] ss:$0 sm:$0xff] }
 0x217   :  { %v13058_v11 = vpop.f32.mrb[8].mxu0 }
 0x218   :  { %v14305_v14 = vadd.f32 %v13058_v11, %v11881_v8  ;;  %v6554_v21 = vpop.f32.mrb[9].mxu0  ;;  %v11884_v11 = vld [vmem:[#allocation7 + $0xb] ss:$0 sm:$0xff] }
 0x219   :  { %v14306_v46 = vadd.f32 %v11881_v8, %v6554_v21 }
 0x21a   :  { %v6615_v57 = vcombine.high %v14305_v14, %v14305_v14  ;;  %v6622_v18 = vrot.slane %v14305_v14, %v15965_v34 }
 0x21b   :  { %v6566_v0 = vcombine.high %v14306_v46, %v14306_v46  ;;  %v6573_v20 = vrot.slane %v14306_v46, %v15965_v34 }
 0x21c   :  { %v6629_v28 = vrot.slane %v6615_v57, %v15965_v34  ;;  %v6630_v39 = vcombine.high %v6622_v18, %v6622_v18  ;;  %v6638_v35 = vrot.slane %v6622_v18, %v15965_v34  ;;  %v13124_v9 = vpop.f32.mrb[8].mxu1 }
 0x21d   :  { %v14307_v25 = vadd.f32 %v13124_v9, %v11882_v4  ;;  %v6580_v23 = vrot.slane %v6566_v0, %v15965_v34  ;;  %v6581_v22 = vcombine.high %v6573_v20, %v6573_v20  ;;  %v6589_v38 = vrot.slane %v6573_v20, %v15965_v34  ;;  %v7291_v17 = vpop.f32.mrb[9].mxu1 }
 0x21e   :  { %v6631_v62 = vcombine.high %v6629_v28, %v6629_v28  ;;  %v6645_v44 = vrot.slane %v6629_v28, %v15965_v34  ;;  %v6652_v12 = vrot.slane %v6630_v39, %v15965_v34  ;;  %v6660_v58 = vcombine.high %v6638_v35, %v6638_v35  ;;  %6688 = vst.msk [vmem:[#allocation8 + $0x88] sm:$0x1] %vm783_vm8, %v6638_v35 }
 0x21f   :  { %v7352_v33 = vcombine.high %v14307_v25, %v14307_v25  ;;  %v7359_v7 = vrot.slane %v14307_v25, %v15965_v34  ;;  %v6582_v47 = vcombine.high %v6580_v23, %v6580_v23  ;;  %v6596_v37 = vrot.slane %v6580_v23, %v15965_v34  ;;  %6680 = vst.msk [vmem:[#allocation8 + $0x8] sm:$0x1] %vm783_vm8, %v6589_v38 }
 0x220   :  { %v6659_v59 = vrot.slane %v6631_v62, %v15965_v34  ;;  %v6661_v56 = vcombine.high %v6645_v44, %v6645_v44  ;;  %v6662_v60 = vcombine.high %v6652_v12, %v6652_v12  ;;  %6689 = vst.msk [vmem:[#allocation8 + $0x98] sm:$0x1] %vm783_vm8, %v6652_v12  ;;  %6690 = vst.msk [vmem:[#allocation8 + $0xa8] sm:$0x1] %vm783_vm8, %v6660_v58 }
 0x221   :  { %6692 = vst.msk [vmem:[#allocation8 + $0xc8] sm:$0x1] %vm783_vm8, %v6645_v44  ;;  %v6603_v31 = vrot.slane %v6581_v22, %v15965_v34  ;;  %v7366_v29 = vrot.slane %v7352_v33, %v15965_v34  ;;  %v7367_v54 = vcombine.high %v7359_v7, %v7359_v7  ;;  %v7375_v55 = vrot.slane %v7359_v7, %v15965_v34 }
 0x222   :  { %v6610_v53 = vrot.slane %v6582_v47, %v15965_v34  ;;  %6684 = vst.msk [vmem:[#allocation8 + $0x48] sm:$0x1] %vm783_vm8, %v6596_v37  ;;  %v6663_v49 = vcombine.high %v6659_v59, %v6659_v59  ;;  %6691 = vst.msk [vmem:[#allocation8 + $0xb8] sm:$0x1] %vm783_vm8, %v6662_v60  ;;  %v6611_v41 = vcombine.high %v6589_v38, %v6589_v38 }
 0x223   :  { %6693 = vst.msk [vmem:[#allocation8 + $0xd8] sm:$0x1] %vm783_vm8, %v6659_v59  ;;  %6694 = vst.msk [vmem:[#allocation8 + $0xe8] sm:$0x1] %vm783_vm8, %v6661_v56  ;;  %v6612_v36 = vcombine.high %v6596_v37, %v6596_v37  ;;  %v6613_v3 = vcombine.high %v6603_v31, %v6603_v31  ;;  %v7368_v15 = vcombine.high %v7366_v29, %v7366_v29 }
 0x224   :  { %6681 = vst.msk [vmem:[#allocation8 + $0x18] sm:$0x1] %vm783_vm8, %v6603_v31  ;;  %v7382_v5 = vrot.slane %v7366_v29, %v15965_v34  ;;  %v7389_v48 = vrot.slane %v7367_v54, %v15965_v34  ;;  %v7397_v63 = vcombine.high %v7375_v55, %v7375_v55  ;;  %7425 = vst.msk [vmem:[#allocation8 + $0x89] sm:$0x1] %vm783_vm8, %v7375_v55 }
 0x225   :  { %6685 = vst.msk [vmem:[#allocation8 + $0x58] sm:$0x1] %vm783_vm8, %v6610_v53  ;;  %6695 = vst.msk [vmem:[#allocation8 + $0xf8] sm:$0x1] %vm783_vm8, %v6663_v49  ;;  %v6614_v24 = vcombine.high %v6610_v53, %v6610_v53  ;;  %v14308_v27 = vadd.f32 %v11882_v4, %v7291_v17  ;;  %v7396_v40 = vrot.slane %v7368_v15, %v15965_v34 }
 0x226   :  { %6682 = vst.msk [vmem:[#allocation8 + $0x28] sm:$0x1] %vm783_vm8, %v6611_v41  ;;  %6683 = vst.msk [vmem:[#allocation8 + $0x38] sm:$0x1] %vm783_vm8, %v6613_v3  ;;  %v7398_v45 = vcombine.high %v7382_v5, %v7382_v5  ;;  %v7399_v32 = vcombine.high %v7389_v48, %v7389_v48 }
 0x227   :  { %6686 = vst.msk [vmem:[#allocation8 + $0x68] sm:$0x1] %vm783_vm8, %v6612_v36  ;;  %7426 = vst.msk [vmem:[#allocation8 + $0x99] sm:$0x1] %vm783_vm8, %v7389_v48  ;;  %v7303_v10 = vcombine.high %v14308_v27, %v14308_v27  ;;  %v7310_v26 = vrot.slane %v14308_v27, %v15965_v34  ;;  %v7400_v51 = vcombine.high %v7396_v40, %v7396_v40 }
 0x228   :  { %7427 = vst.msk [vmem:[#allocation8 + $0xa9] sm:$0x1] %vm783_vm8, %v7397_v63  ;;  %7429 = vst.msk [vmem:[#allocation8 + $0xc9] sm:$0x1] %vm783_vm8, %v7382_v5 }
 0x229   :  { %6687 = vst.msk [vmem:[#allocation8 + $0x78] sm:$0x1] %vm783_vm8, %v6614_v24  ;;  %7428 = vst.msk [vmem:[#allocation8 + $0xb9] sm:$0x1] %vm783_vm8, %v7399_v32  ;;  %v7317_v52 = vrot.slane %v7303_v10, %v15965_v34  ;;  %v7318_v50 = vcombine.high %v7310_v26, %v7310_v26  ;;  %v7326_v6 = vrot.slane %v7310_v26, %v15965_v34 }
 0x22a   :  { %7430 = vst.msk [vmem:[#allocation8 + $0xd9] sm:$0x1] %vm783_vm8, %v7396_v40  ;;  %7431 = vst.msk [vmem:[#allocation8 + $0xe9] sm:$0x1] %vm783_vm8, %v7398_v45 }
 0x22b   :  { %7432 = vst.msk [vmem:[#allocation8 + $0xf9] sm:$0x1] %vm783_vm8, %v7400_v51  ;;  %v7319_v16 = vcombine.high %v7317_v52, %v7317_v52  ;;  %v7333_v61 = vrot.slane %v7317_v52, %v15965_v34  ;;  %v7340_v1 = vrot.slane %v7318_v50, %v15965_v34  ;;  %v7348_v13 = vcombine.high %v7326_v6, %v7326_v6 }
 0x22c   :  { %7417 = vst.msk [vmem:[#allocation8 + $0x9] sm:$0x1] %vm783_vm8, %v7326_v6 }
 0x22d   :  { %v7347_v43 = vrot.slane %v7319_v16, %v15965_v34  ;;  %v7349_v42 = vcombine.high %v7333_v61, %v7333_v61  ;;  %v7350_v2 = vcombine.high %v7340_v1, %v7340_v1  ;;  %7418 = vst.msk [vmem:[#allocation8 + $0x19] sm:$0x1] %vm783_vm8, %v7340_v1  ;;  %7419 = vst.msk [vmem:[#allocation8 + $0x29] sm:$0x1] %vm783_vm8, %v7348_v13 }
 0x22e   :  { %7421 = vst.msk [vmem:[#allocation8 + $0x49] sm:$0x1] %vm783_vm8, %v7333_v61 }
 0x22f   :  { %v7351_v19 = vcombine.high %v7347_v43, %v7347_v43  ;;  %7420 = vst.msk [vmem:[#allocation8 + $0x39] sm:$0x1] %vm783_vm8, %v7350_v2  ;;  %7422 = vst.msk [vmem:[#allocation8 + $0x59] sm:$0x1] %vm783_vm8, %v7347_v43 }
 0x230   :  { %7423 = vst.msk [vmem:[#allocation8 + $0x69] sm:$0x1] %vm783_vm8, %v7349_v42 }
 0x231   :  { %7424 = vst.msk [vmem:[#allocation8 + $0x79] sm:$0x1] %vm783_vm8, %v7351_v19  ;;  %v11885_v19 = vld [vmem:[#allocation7 + $0xc] ss:$0 sm:$0xff] }
 0x24d   :  { %v13190_v8 = vpop.f32.mrb[10].mxu0 }
 0x24e   :  { %v14309_v14 = vadd.f32 %v13190_v8, %v11883_v30  ;;  %v8028_v21 = vpop.f32.mrb[11].mxu0 }
 0x24f   :  { %v13256_v46 = vpop.f32.mrb[10].mxu1  ;;  %v14310_v57 = vadd.f32 %v11883_v30, %v8028_v21  ;;  %v11886_v30 = vld [vmem:[#allocation7 + $0xd] ss:$0 sm:$0xff] }
 0x250   :  { %v8089_v18 = vcombine.high %v14309_v14, %v14309_v14  ;;  %v8096_v4 = vrot.slane %v14309_v14, %v15965_v34  ;;  %v14311_v0 = vadd.f32 %v13256_v46, %v11884_v11  ;;  %v8765_v20 = vpop.f32.mrb[11].mxu1 }
 0x251   :  { %v8040_v28 = vcombine.high %v14310_v57, %v14310_v57  ;;  %v8047_v39 = vrot.slane %v14310_v57, %v15965_v34  ;;  %v14312_v35 = vadd.f32 %v11884_v11, %v8765_v20 }
 0x252   :  { %v8103_v9 = vrot.slane %v8089_v18, %v15965_v34  ;;  %v8104_v25 = vcombine.high %v8096_v4, %v8096_v4  ;;  %v8112_v23 = vrot.slane %v8096_v4, %v15965_v34  ;;  %v8826_v22 = vcombine.high %v14311_v0, %v14311_v0 }
 0x253   :  { %v8833_v38 = vrot.slane %v14311_v0, %v15965_v34  ;;  %v8054_v17 = vrot.slane %v8040_v28, %v15965_v34  ;;  %v8055_v62 = vcombine.high %v8047_v39, %v8047_v39  ;;  %v8063_v44 = vrot.slane %v8047_v39, %v15965_v34 }
 0x254   :  { %v8105_v12 = vcombine.high %v8103_v9, %v8103_v9  ;;  %v8119_v58 = vrot.slane %v8103_v9, %v15965_v34  ;;  %v8126_v33 = vrot.slane %v8104_v25, %v15965_v34  ;;  %v8134_v7 = vcombine.high %v8112_v23, %v8112_v23  ;;  %8162 = vst.msk [vmem:[#allocation8 + $0x8a] sm:$0x1] %vm783_vm8, %v8112_v23 }
 0x255   :  { %v8840_v47 = vrot.slane %v8826_v22, %v15965_v34  ;;  %v8841_v37 = vcombine.high %v8833_v38, %v8833_v38  ;;  %v8849_v59 = vrot.slane %v8833_v38, %v15965_v34  ;;  %v8056_v56 = vcombine.high %v8054_v17, %v8054_v17  ;;  %8154 = vst.msk [vmem:[#allocation8 + $0xa] sm:$0x1] %vm783_vm8, %v8063_v44 }
 0x256   :  { %v8133_v60 = vrot.slane %v8105_v12, %v15965_v34  ;;  %v8135_v31 = vcombine.high %v8119_v58, %v8119_v58  ;;  %v8136_v29 = vcombine.high %v8126_v33, %v8126_v33  ;;  %8163 = vst.msk [vmem:[#allocation8 + $0x9a] sm:$0x1] %vm783_vm8, %v8126_v33  ;;  %8164 = vst.msk [vmem:[#allocation8 + $0xaa] sm:$0x1] %vm783_vm8, %v8134_v7 }
 0x257   :  { %8166 = vst.msk [vmem:[#allocation8 + $0xca] sm:$0x1] %vm783_vm8, %v8119_v58  ;;  %v8070_v54 = vrot.slane %v8054_v17, %v15965_v34  ;;  %v8842_v55 = vcombine.high %v8840_v47, %v8840_v47  ;;  %v8856_v53 = vrot.slane %v8840_v47, %v15965_v34  ;;  %v8863_v49 = vrot.slane %v8841_v37, %v15965_v34 }
 0x258   :  { %v8871_v41 = vcombine.high %v8849_v59, %v8849_v59  ;;  %8899 = vst.msk [vmem:[#allocation8 + $0x8b] sm:$0x1] %vm783_vm8, %v8849_v59  ;;  %v8137_v36 = vcombine.high %v8133_v60, %v8133_v60  ;;  %8165 = vst.msk [vmem:[#allocation8 + $0xba] sm:$0x1] %vm783_vm8, %v8136_v29  ;;  %v8077_v3 = vrot.slane %v8055_v62, %v15965_v34 }
 0x259   :  { %8167 = vst.msk [vmem:[#allocation8 + $0xda] sm:$0x1] %vm783_vm8, %v8133_v60  ;;  %8168 = vst.msk [vmem:[#allocation8 + $0xea] sm:$0x1] %vm783_vm8, %v8135_v31  ;;  %v8084_v15 = vrot.slane %v8056_v56, %v15965_v34  ;;  %v8085_v5 = vcombine.high %v8063_v44, %v8063_v44  ;;  %v8870_v48 = vrot.slane %v8842_v55, %v15965_v34 }
 0x25a   :  { %8158 = vst.msk [vmem:[#allocation8 + $0x4a] sm:$0x1] %vm783_vm8, %v8070_v54  ;;  %v8872_v63 = vcombine.high %v8856_v53, %v8856_v53  ;;  %v8873_v24 = vcombine.high %v8863_v49, %v8863_v49  ;;  %8900 = vst.msk [vmem:[#allocation8 + $0x9b] sm:$0x1] %vm783_vm8, %v8863_v49  ;;  %v8086_v27 = vcombine.high %v8070_v54, %v8070_v54 }
 0x25b   :  { %8901 = vst.msk [vmem:[#allocation8 + $0xab] sm:$0x1] %vm783_vm8, %v8871_v41  ;;  %8903 = vst.msk [vmem:[#allocation8 + $0xcb] sm:$0x1] %vm783_vm8, %v8856_v53  ;;  %v8087_v40 = vcombine.high %v8077_v3, %v8077_v3  ;;  %v8088_v45 = vcombine.high %v8084_v15, %v8084_v15  ;;  %v8777_v32 = vcombine.high %v14312_v35, %v14312_v35 }
 0x25c   :  { %8169 = vst.msk [vmem:[#allocation8 + $0xfa] sm:$0x1] %vm783_vm8, %v8137_v36  ;;  %8155 = vst.msk [vmem:[#allocation8 + $0x1a] sm:$0x1] %vm783_vm8, %v8077_v3  ;;  %v8784_v10 = vrot.slane %v14312_v35, %v15965_v34  ;;  %v8874_v26 = vcombine.high %v8870_v48, %v8870_v48 }
 0x25d   :  { %8156 = vst.msk [vmem:[#allocation8 + $0x2a] sm:$0x1] %vm783_vm8, %v8085_v5  ;;  %8159 = vst.msk [vmem:[#allocation8 + $0x5a] sm:$0x1] %vm783_vm8, %v8084_v15  ;;  %v8791_v51 = vrot.slane %v8777_v32, %v15965_v34 }
 0x25e   :  { %8902 = vst.msk [vmem:[#allocation8 + $0xbb] sm:$0x1] %vm783_vm8, %v8873_v24  ;;  %8904 = vst.msk [vmem:[#allocation8 + $0xdb] sm:$0x1] %vm783_vm8, %v8870_v48  ;;  %v8792_v52 = vcombine.high %v8784_v10, %v8784_v10  ;;  %v8800_v50 = vrot.slane %v8784_v10, %v15965_v34 }
 0x25f   :  { %8905 = vst.msk [vmem:[#allocation8 + $0xeb] sm:$0x1] %vm783_vm8, %v8872_v63  ;;  %8160 = vst.msk [vmem:[#allocation8 + $0x6a] sm:$0x1] %vm783_vm8, %v8086_v27  ;;  %v8793_v6 = vcombine.high %v8791_v51, %v8791_v51  ;;  %v8807_v16 = vrot.slane %v8791_v51, %v15965_v34 }
 0x260   :  { %8157 = vst.msk [vmem:[#allocation8 + $0x3a] sm:$0x1] %vm783_vm8, %v8087_v40  ;;  %8161 = vst.msk [vmem:[#allocation8 + $0x7a] sm:$0x1] %vm783_vm8, %v8088_v45  ;;  %v8814_v61 = vrot.slane %v8792_v52, %v15965_v34  ;;  %v8822_v1 = vcombine.high %v8800_v50, %v8800_v50 }
 0x261   :  { %8906 = vst.msk [vmem:[#allocation8 + $0xfb] sm:$0x1] %vm783_vm8, %v8874_v26  ;;  %8891 = vst.msk [vmem:[#allocation8 + $0xb] sm:$0x1] %vm783_vm8, %v8800_v50  ;;  %v8821_v13 = vrot.slane %v8793_v6, %v15965_v34  ;;  %v8823_v43 = vcombine.high %v8807_v16, %v8807_v16 }
 0x262   :  { %v8824_v42 = vcombine.high %v8814_v61, %v8814_v61  ;;  %8892 = vst.msk [vmem:[#allocation8 + $0x1b] sm:$0x1] %vm783_vm8, %v8814_v61  ;;  %8893 = vst.msk [vmem:[#allocation8 + $0x2b] sm:$0x1] %vm783_vm8, %v8822_v1 }
 0x263   :  { %8895 = vst.msk [vmem:[#allocation8 + $0x4b] sm:$0x1] %vm783_vm8, %v8807_v16  ;;  %v8825_v2 = vcombine.high %v8821_v13, %v8821_v13  ;;  %8896 = vst.msk [vmem:[#allocation8 + $0x5b] sm:$0x1] %vm783_vm8, %v8821_v13 }
 0x264   :  { %8894 = vst.msk [vmem:[#allocation8 + $0x3b] sm:$0x1] %vm783_vm8, %v8824_v42  ;;  %8897 = vst.msk [vmem:[#allocation8 + $0x6b] sm:$0x1] %vm783_vm8, %v8823_v43 }
 0x265   :  { %8898 = vst.msk [vmem:[#allocation8 + $0x7b] sm:$0x1] %vm783_vm8, %v8825_v2  ;;  %v11887_v2 = vld [vmem:[#allocation7 + $0xe] ss:$0 sm:$0xff] }
 0x281   :  { %v13322_v8 = vpop.f32.mrb[12].mxu0 }
 0x282   :  { %v14313_v14 = vadd.f32 %v13322_v8, %v11885_v19  ;;  %v9502_v46 = vpop.f32.mrb[13].mxu0 }
 0x283   :  { %v13388_v11 = vpop.f32.mrb[12].mxu1  ;;  %v14314_v18 = vadd.f32 %v11885_v19, %v9502_v46  ;;  %v11888_v19 = vld [vmem:[#allocation7 + $0xf] ss:$0 sm:$0xff] }
 0x284   :  { %v14315_v21 = vadd.f32 %v13388_v11, %v11886_v30  ;;  %v10239_v57 = vpop.f32.mrb[13].mxu1  ;;  %v9563_v0 = vcombine.high %v14313_v14, %v14313_v14  ;;  %v9570_v20 = vrot.slane %v14313_v14, %v15965_v34 }
 0x285   :  { %v14316_v4 = vadd.f32 %v11886_v30, %v10239_v57  ;;  %v9514_v35 = vcombine.high %v14314_v18, %v14314_v18  ;;  %v9521_v9 = vrot.slane %v14314_v18, %v15965_v34 }
 0x286   :  { %v10300_v28 = vcombine.high %v14315_v21, %v14315_v21  ;;  %v10307_v39 = vrot.slane %v14315_v21, %v15965_v34  ;;  %v9577_v22 = vrot.slane %v9563_v0, %v15965_v34  ;;  %v9578_v38 = vcombine.high %v9570_v20, %v9570_v20 }
 0x287   :  { %v10251_v25 = vcombine.high %v14316_v4, %v14316_v4  ;;  %v10258_v23 = vrot.slane %v14316_v4, %v15965_v34  ;;  %v9586_v17 = vrot.slane %v9570_v20, %v15965_v34  ;;  %v9528_v58 = vrot.slane %v9514_v35, %v15965_v34 }
 0x288   :  { %v10314_v62 = vrot.slane %v10300_v28, %v15965_v34  ;;  %v10315_v44 = vcombine.high %v10307_v39, %v10307_v39  ;;  %v10323_v12 = vrot.slane %v10307_v39, %v15965_v34  ;;  %v9529_v33 = vcombine.high %v9521_v9, %v9521_v9 }
 0x289   :  { %v9579_v7 = vcombine.high %v9577_v22, %v9577_v22  ;;  %v9593_v47 = vrot.slane %v9577_v22, %v15965_v34  ;;  %v9600_v37 = vrot.slane %v9578_v38, %v15965_v34  ;;  %v9608_v59 = vcombine.high %v9586_v17, %v9586_v17  ;;  %9636 = vst.msk [vmem:[#allocation8 + $0x8c] sm:$0x1] %vm783_vm8, %v9586_v17 }
 0x28a   :  { %v10316_v56 = vcombine.high %v10314_v62, %v10314_v62  ;;  %v10330_v60 = vrot.slane %v10314_v62, %v15965_v34  ;;  %v10337_v31 = vrot.slane %v10315_v44, %v15965_v34  ;;  %v10345_v29 = vcombine.high %v10323_v12, %v10323_v12  ;;  %10373 = vst.msk [vmem:[#allocation8 + $0x8d] sm:$0x1] %vm783_vm8, %v10323_v12 }
 0x28b   :  { %v9607_v54 = vrot.slane %v9579_v7, %v15965_v34  ;;  %v9609_v55 = vcombine.high %v9593_v47, %v9593_v47  ;;  %v9610_v53 = vcombine.high %v9600_v37, %v9600_v37  ;;  %9637 = vst.msk [vmem:[#allocation8 + $0x9c] sm:$0x1] %vm783_vm8, %v9600_v37  ;;  %9638 = vst.msk [vmem:[#allocation8 + $0xac] sm:$0x1] %vm783_vm8, %v9608_v59 }
 0x28c   :  { %9640 = vst.msk [vmem:[#allocation8 + $0xcc] sm:$0x1] %vm783_vm8, %v9593_v47  ;;  %v9530_v49 = vcombine.high %v9528_v58, %v9528_v58  ;;  %v10344_v41 = vrot.slane %v10316_v56, %v15965_v34  ;;  %v10346_v36 = vcombine.high %v10330_v60, %v10330_v60  ;;  %v10347_v3 = vcombine.high %v10337_v31, %v10337_v31 }
 0x28d   :  { %10374 = vst.msk [vmem:[#allocation8 + $0x9d] sm:$0x1] %vm783_vm8, %v10337_v31  ;;  %10375 = vst.msk [vmem:[#allocation8 + $0xad] sm:$0x1] %vm783_vm8, %v10345_v29  ;;  %v9537_v15 = vrot.slane %v9521_v9, %v15965_v34  ;;  %v9611_v5 = vcombine.high %v9607_v54, %v9607_v54  ;;  %v9544_v48 = vrot.slane %v9528_v58, %v15965_v34 }
 0x28e   :  { %10377 = vst.msk [vmem:[#allocation8 + $0xcd] sm:$0x1] %vm783_vm8, %v10330_v60  ;;  %9639 = vst.msk [vmem:[#allocation8 + $0xbc] sm:$0x1] %vm783_vm8, %v9610_v53  ;;  %v9551_v63 = vrot.slane %v9529_v33, %v15965_v34  ;;  %v9558_v24 = vrot.slane %v9530_v49, %v15965_v34  ;;  %v10348_v27 = vcombine.high %v10344_v41, %v10344_v41 }
 0x28f   :  { %9641 = vst.msk [vmem:[#allocation8 + $0xdc] sm:$0x1] %vm783_vm8, %v9607_v54  ;;  %9642 = vst.msk [vmem:[#allocation8 + $0xec] sm:$0x1] %vm783_vm8, %v9609_v55  ;;  %v9559_v40 = vcombine.high %v9537_v15, %v9537_v15  ;;  %v10265_v45 = vrot.slane %v10251_v25, %v15965_v34  ;;  %v10266_v32 = vcombine.high %v10258_v23, %v10258_v23 }
 0x290   :  { %10376 = vst.msk [vmem:[#allocation8 + $0xbd] sm:$0x1] %vm783_vm8, %v10347_v3  ;;  %10378 = vst.msk [vmem:[#allocation8 + $0xdd] sm:$0x1] %vm783_vm8, %v10344_v41  ;;  %v9560_v10 = vcombine.high %v9544_v48, %v9544_v48  ;;  %v9561_v26 = vcombine.high %v9551_v63, %v9551_v63  ;;  %v9562_v51 = vcombine.high %v9558_v24, %v9558_v24 }
 0x291   :  { %10379 = vst.msk [vmem:[#allocation8 + $0xed] sm:$0x1] %vm783_vm8, %v10346_v36  ;;  %9628 = vst.msk [vmem:[#allocation8 + $0xc] sm:$0x1] %vm783_vm8, %v9537_v15  ;;  %v10274_v52 = vrot.slane %v10258_v23, %v15965_v34  ;;  %v10267_v50 = vcombine.high %v10265_v45, %v10265_v45  ;;  %v10281_v6 = vrot.slane %v10265_v45, %v15965_v34 }
 0x292   :  { %9643 = vst.msk [vmem:[#allocation8 + $0xfc] sm:$0x1] %vm783_vm8, %v9611_v5  ;;  %9629 = vst.msk [vmem:[#allocation8 + $0x1c] sm:$0x1] %vm783_vm8, %v9551_v63  ;;  %v10288_v16 = vrot.slane %v10266_v32, %v15965_v34 }
 0x293   :  { %9632 = vst.msk [vmem:[#allocation8 + $0x4c] sm:$0x1] %vm783_vm8, %v9544_v48  ;;  %9633 = vst.msk [vmem:[#allocation8 + $0x5c] sm:$0x1] %vm783_vm8, %v9558_v24  ;;  %v10296_v61 = vcombine.high %v10274_v52, %v10274_v52  ;;  %v10295_v1 = vrot.slane %v10267_v50, %v15965_v34  ;;  %v10297_v13 = vcombine.high %v10281_v6, %v10281_v6 }
 0x294   :  { %10380 = vst.msk [vmem:[#allocation8 + $0xfd] sm:$0x1] %vm783_vm8, %v10348_v27  ;;  %9630 = vst.msk [vmem:[#allocation8 + $0x2c] sm:$0x1] %vm783_vm8, %v9559_v40  ;;  %v10298_v43 = vcombine.high %v10288_v16, %v10288_v16 }
 0x295   :  { %9631 = vst.msk [vmem:[#allocation8 + $0x3c] sm:$0x1] %vm783_vm8, %v9561_v26  ;;  %9634 = vst.msk [vmem:[#allocation8 + $0x6c] sm:$0x1] %vm783_vm8, %v9560_v10  ;;  %v10299_v42 = vcombine.high %v10295_v1, %v10295_v1 }
 0x296   :  { %9635 = vst.msk [vmem:[#allocation8 + $0x7c] sm:$0x1] %vm783_vm8, %v9562_v51  ;;  %10365 = vst.msk [vmem:[#allocation8 + $0xd] sm:$0x1] %vm783_vm8, %v10274_v52 }
 0x297   :  { %10366 = vst.msk [vmem:[#allocation8 + $0x1d] sm:$0x1] %vm783_vm8, %v10288_v16  ;;  %10369 = vst.msk [vmem:[#allocation8 + $0x4d] sm:$0x1] %vm783_vm8, %v10281_v6 }
 0x298   :  { %10367 = vst.msk [vmem:[#allocation8 + $0x2d] sm:$0x1] %vm783_vm8, %v10296_v61  ;;  %10368 = vst.msk [vmem:[#allocation8 + $0x3d] sm:$0x1] %vm783_vm8, %v10298_v43 }
 0x299   :  { %10370 = vst.msk [vmem:[#allocation8 + $0x5d] sm:$0x1] %vm783_vm8, %v10295_v1  ;;  %10371 = vst.msk [vmem:[#allocation8 + $0x6d] sm:$0x1] %vm783_vm8, %v10297_v13 }
 0x29a   :  { %10372 = vst.msk [vmem:[#allocation8 + $0x7d] sm:$0x1] %vm783_vm8, %v10299_v42 }
 0x2b1   :  { %v13454_v30 = vpop.f32.mrb[14].mxu0 }
 0x2b2   :  { %v14317_v8 = vadd.f32 %v13454_v30, %v11887_v2  ;;  %v10976_v14 = vpop.f32.mrb[15].mxu0 }
 0x2b3   :  { %v13520_v11 = vpop.f32.mrb[14].mxu1  ;;  %v14318_v46 = vadd.f32 %v11887_v2, %v10976_v14 }
 0x2b4   :  { %v14319_v21 = vadd.f32 %v13520_v11, %v11888_v19  ;;  %v11713_v57 = vpop.f32.mrb[15].mxu1  ;;  %v11037_v18 = vcombine.high %v14317_v8, %v14317_v8  ;;  %v11044_v4 = vrot.slane %v14317_v8, %v15965_v34 }
 0x2b5   :  { %v14320_v0 = vadd.f32 %v11888_v19, %v11713_v57  ;;  %v10988_v39 = vcombine.high %v14318_v46, %v14318_v46  ;;  %v10995_v35 = vrot.slane %v14318_v46, %v15965_v34 }
 0x2b6   :  { %v11774_v20 = vcombine.high %v14319_v21, %v14319_v21  ;;  %v11781_v28 = vrot.slane %v14319_v21, %v15965_v34  ;;  %v11051_v9 = vrot.slane %v11037_v18, %v15965_v34  ;;  %v11052_v25 = vcombine.high %v11044_v4, %v11044_v4 }
 0x2b7   :  { %v11060_v23 = vrot.slane %v11044_v4, %v15965_v34  ;;  %v11725_v22 = vcombine.high %v14320_v0, %v14320_v0  ;;  %v11002_v44 = vrot.slane %v10988_v39, %v15965_v34  ;;  %v11003_v54 = vcombine.high %v10995_v35, %v10995_v35 }
 0x2b8   :  { %v11788_v38 = vrot.slane %v11774_v20, %v15965_v34  ;;  %v11789_v17 = vcombine.high %v11781_v28, %v11781_v28  ;;  %v11797_v62 = vrot.slane %v11781_v28, %v15965_v34  ;;  %v11053_v12 = vcombine.high %v11051_v9, %v11051_v9 }
 0x2b9   :  { %v11067_v58 = vrot.slane %v11051_v9, %v15965_v34  ;;  %v11074_v33 = vrot.slane %v11052_v25, %v15965_v34  ;;  %v11082_v7 = vcombine.high %v11060_v23, %v11060_v23  ;;  %11110 = vst.msk [vmem:[#allocation8 + $0x8e] sm:$0x1] %vm783_vm8, %v11060_v23  ;;  %v11004_v41 = vcombine.high %v11002_v44, %v11002_v44 }
 0x2ba   :  { %v11790_v47 = vcombine.high %v11788_v38, %v11788_v38  ;;  %v11804_v37 = vrot.slane %v11788_v38, %v15965_v34  ;;  %v11811_v59 = vrot.slane %v11789_v17, %v15965_v34  ;;  %v11819_v56 = vcombine.high %v11797_v62, %v11797_v62  ;;  %11847 = vst.msk [vmem:[#allocation8 + $0x8f] sm:$0x1] %vm783_vm8, %v11797_v62 }
 0x2bb   :  { %v11081_v60 = vrot.slane %v11053_v12, %v15965_v34  ;;  %v11083_v31 = vcombine.high %v11067_v58, %v11067_v58  ;;  %v11084_v29 = vcombine.high %v11074_v33, %v11074_v33  ;;  %11111 = vst.msk [vmem:[#allocation8 + $0x9e] sm:$0x1] %vm783_vm8, %v11074_v33  ;;  %11112 = vst.msk [vmem:[#allocation8 + $0xae] sm:$0x1] %vm783_vm8, %v11082_v7 }
 0x2bc   :  { %11114 = vst.msk [vmem:[#allocation8 + $0xce] sm:$0x1] %vm783_vm8, %v11067_v58  ;;  %v11818_v55 = vrot.slane %v11790_v47, %v15965_v34  ;;  %v11820_v53 = vcombine.high %v11804_v37, %v11804_v37  ;;  %v11821_v49 = vcombine.high %v11811_v59, %v11811_v59  ;;  %11848 = vst.msk [vmem:[#allocation8 + $0x9f] sm:$0x1] %vm783_vm8, %v11811_v59 }
 0x2bd   :  { %11849 = vst.msk [vmem:[#allocation8 + $0xaf] sm:$0x1] %vm783_vm8, %v11819_v56  ;;  %11851 = vst.msk [vmem:[#allocation8 + $0xcf] sm:$0x1] %vm783_vm8, %v11804_v37  ;;  %v11085_v36 = vcombine.high %v11081_v60, %v11081_v60  ;;  %v11011_v3 = vrot.slane %v10995_v35, %v15965_v34  ;;  %v11018_v15 = vrot.slane %v11002_v44, %v15965_v34 }
 0x2be   :  { %11113 = vst.msk [vmem:[#allocation8 + $0xbe] sm:$0x1] %vm783_vm8, %v11084_v29  ;;  %11115 = vst.msk [vmem:[#allocation8 + $0xde] sm:$0x1] %vm783_vm8, %v11081_v60  ;;  %v11025_v5 = vrot.slane %v11003_v54, %v15965_v34  ;;  %v11822_v48 = vcombine.high %v11818_v55, %v11818_v55  ;;  %v11032_v63 = vrot.slane %v11004_v41, %v15965_v34 }
 0x2bf   :  { %11116 = vst.msk [vmem:[#allocation8 + $0xee] sm:$0x1] %vm783_vm8, %v11083_v31  ;;  %11850 = vst.msk [vmem:[#allocation8 + $0xbf] sm:$0x1] %vm783_vm8, %v11821_v49  ;;  %v11732_v24 = vrot.slane %v14320_v0, %v15965_v34  ;;  %v11739_v27 = vrot.slane %v11725_v22, %v15965_v34  ;;  %v11033_v40 = vcombine.high %v11011_v3, %v11011_v3 }
 0x2c0   :  { %11852 = vst.msk [vmem:[#allocation8 + $0xdf] sm:$0x1] %vm783_vm8, %v11818_v55  ;;  %11853 = vst.msk [vmem:[#allocation8 + $0xef] sm:$0x1] %vm783_vm8, %v11820_v53  ;;  %v11034_v45 = vcombine.high %v11018_v15, %v11018_v15  ;;  %v11035_v32 = vcombine.high %v11025_v5, %v11025_v5  ;;  %v11036_v10 = vcombine.high %v11032_v63, %v11032_v63 }
 0x2c1   :  { %11117 = vst.msk [vmem:[#allocation8 + $0xfe] sm:$0x1] %vm783_vm8, %v11085_v36  ;;  %11102 = vst.msk [vmem:[#allocation8 + $0xe] sm:$0x1] %vm783_vm8, %v11011_v3  ;;  %v11740_v26 = vcombine.high %v11732_v24, %v11732_v24  ;;  %v11741_v51 = vcombine.high %v11739_v27, %v11739_v27  ;;  %v11748_v52 = vrot.slane %v11732_v24, %v15965_v34 }
 0x2c2   :  { %11103 = vst.msk [vmem:[#allocation8 + $0x1e] sm:$0x1] %vm783_vm8, %v11025_v5  ;;  %11106 = vst.msk [vmem:[#allocation8 + $0x4e] sm:$0x1] %vm783_vm8, %v11018_v15  ;;  %v11755_v50 = vrot.slane %v11739_v27, %v15965_v34 }
 0x2c3   :  { %11854 = vst.msk [vmem:[#allocation8 + $0xff] sm:$0x1] %vm783_vm8, %v11822_v48  ;;  %11107 = vst.msk [vmem:[#allocation8 + $0x5e] sm:$0x1] %vm783_vm8, %v11032_v63  ;;  %v11762_v6 = vrot.slane %v11740_v26, %v15965_v34  ;;  %v11769_v16 = vrot.slane %v11741_v51, %v15965_v34  ;;  %v11770_v61 = vcombine.high %v11748_v52, %v11748_v52 }
 0x2c4   :  { %11104 = vst.msk [vmem:[#allocation8 + $0x2e] sm:$0x1] %vm783_vm8, %v11033_v40  ;;  %11105 = vst.msk [vmem:[#allocation8 + $0x3e] sm:$0x1] %vm783_vm8, %v11035_v32  ;;  %v11771_v1 = vcombine.high %v11755_v50, %v11755_v50 }
 0x2c5   :  { %11108 = vst.msk [vmem:[#allocation8 + $0x6e] sm:$0x1] %vm783_vm8, %v11034_v45  ;;  %11109 = vst.msk [vmem:[#allocation8 + $0x7e] sm:$0x1] %vm783_vm8, %v11036_v10  ;;  %v11772_v13 = vcombine.high %v11762_v6, %v11762_v6  ;;  %v11773_v43 = vcombine.high %v11769_v16, %v11769_v16 }
 0x2c6   :  { %11839 = vst.msk [vmem:[#allocation8 + $0xf] sm:$0x1] %vm783_vm8, %v11748_v52  ;;  %11843 = vst.msk [vmem:[#allocation8 + $0x4f] sm:$0x1] %vm783_vm8, %v11755_v50 }
 0x2c7   :  { %11840 = vst.msk [vmem:[#allocation8 + $0x1f] sm:$0x1] %vm783_vm8, %v11762_v6  ;;  %11841 = vst.msk [vmem:[#allocation8 + $0x2f] sm:$0x1] %vm783_vm8, %v11770_v61 }
 0x2c8   :  { %11844 = vst.msk [vmem:[#allocation8 + $0x5f] sm:$0x1] %vm783_vm8, %v11769_v16  ;;  %11845 = vst.msk [vmem:[#allocation8 + $0x6f] sm:$0x1] %vm783_vm8, %v11771_v1 }
 0x2c9   :  { %11842 = vst.msk [vmem:[#allocation8 + $0x3f] sm:$0x1] %vm783_vm8, %v11772_v13  ;;  %11846 = vst.msk [vmem:[#allocation8 + $0x7f] sm:$0x1] %vm783_vm8, %v11773_v43 }
 0x2ca   :  { %14567 = shalt.err (!%p14564_p0)
}
 0x2cb   :  { %s14568_s29 = scalar_lea.hbm %s17065_s3, 4096 }
 0x2cc   :  { %p14569_p1 = scmp.ne.s32.totalorder %s17065_s3, %s14568_s29  ;;  %p14572_p2 = scmp.lt.u32.totalorder %s14568_s29, %s17065_s3 }
 0x2ce   :  { %p14574_p3 = pnand %p14572_p2, %p14569_p1 }
 0x2d0   :  { %14577 = shalt.err (!%p14574_p3)
}
 0x2d1   :  { %11866 = dma.vmem_to_hbm [thread:$0]  %s11861_s23, 4096, %s17065_s3, [#allocation4], %s14586_s24, %s14586_s24, %s14587_s25  }
 0x2d2   :  { %14582 = dma.done.wait [#allocation4], 4096  }
 0x2d3   :  { %14583 = vsyncadd [#allocation4], 4294963200 }
 0x2d4   :  { %11870 = vsyncpa [#allocation3], 1 }
 0x2d5   :  { %11871 = vsyncpa [#allocation6], 1 }
 0x2d6   :  { %11872 = vsyncpa [#allocation4], 1 }

</bundles_post_ra>
